<compile_context>
chip_gen: v7x
topology: tpu7x:2x2x1
jax: 0.10.0
libtpu: 0.0.40
codegen_flags: <defaults>
</compile_context>

<pallas_src>
import functools

import jax
import jax.numpy as jnp
from jax.experimental import pallas as pl
from jax.experimental.pallas import tpu as pltpu


def classify_pool_kernel(x_ref, w_ref, b_ref, sel_ref, o_ref, acc_ref, *,
                         inv_hw, act_dtype):
    """One grid step == (block_b images) x (hw_chunk pixel rows).

    x_ref  : (bt, hwc, C1)   channels-last pixels (compute dtype)
    w_ref  : (C1, C_)        folded 1x1-conv + BN weight (compute dtype)
    b_ref  : (1, C_)         folded BN bias, lane-dense (f32)
    sel_ref: (bt, bt*hwc)    0/1 block-diagonal row->image pooling selector
    o_ref  : (bt, C_)        pooled features, lane-dense (f32)
    acc_ref: (bt, C_)        f32 pooled-sum accumulator (VMEM scratch)
    """
    j = pl.program_id(1)

    @pl.when(j == 0)
    def _init():
        acc_ref[...] = jnp.zeros_like(acc_ref)

    bt, hwc, c1 = x_ref.shape
    rows = bt * hwc
    # Collapse (bt, hwc) -> rows; hwc is sublane-aligned so this is a no-op
    # layout-wise.
    xv = x_ref[...].reshape(rows, c1)

    # 1x1 conv == channel matmul on the MXU, f32 accumulation, C_ on lanes.
    feat = jnp.dot(xv, w_ref[...], preferred_element_type=jnp.float32)  # (rows, C_)
    feat = feat + b_ref[...]                                            # folded BN bias

    # SiLU; in bf16 on the real head (halves EUP pushes on v6e/v7x), f32 here.
    act = feat.astype(act_dtype)
    act = act * jax.nn.sigmoid(act)

    # Partial AdaptiveAvgPool2d(1): per-image row sums on the (idle) MXU.
    acc_ref[...] += jnp.dot(sel_ref[...], act,
                            preferred_element_type=jnp.float32)

    @pl.when(j == pl.num_programs(1) - 1)
    def _finalize():
        o_ref[...] = (acc_ref[...] * inv_hw).astype(o_ref.dtype)


# --------------------------------------------------------------------------
# Tiling / VMEM accounting helpers (static, Python-level).
# --------------------------------------------------------------------------
def _pad(n, m):
    return ((n + m - 1) // m) * m


def _divisors(n):
    return [d for d in range(1, n + 1) if n % d == 0]


def _vmem_estimate(bt, hwc, c1, c_hid, x_bytes, w_bytes, act_bytes):
    """Padded-block VMEM estimate: inputs/outputs (with buffering), scratch and
    the fused feat/SiLU temporaries of one grid step."""
    rows = bt * hwc
    est = 2 * bt * _pad(hwc, 8) * _pad(c1, 128) * x_bytes        # x block (x2 buffers)
    est += _pad(c1, 8) * _pad(c_hid, 128) * w_bytes              # weight (Buffered(1))
    est += 8 * _pad(c_hid, 128) * 4                              # bias row (Buffered(1))
    est += _pad(bt, 8) * _pad(rows, 128) * act_bytes             # selector (Buffered(1))
    est += 2 * _pad(bt, 8) * _pad(c_hid, 128) * 4                # pooled output (x2)
    est += _pad(bt, 8) * _pad(c_hid, 128) * 4                    # f32 accumulator
    est += _pad(rows, 8) * _pad(c_hid, 128) * (4 + 2 * act_bytes)  # feat + SiLU temps
    return est


def _pick_block_b(batch, max_bt=16):
    """Images per grid step.  Must divide `batch` and be either == batch or a
    multiple of 8 (second-minor dim of the (bt, C_) output block).  Prefer a
    choice that leaves >= 2 batch-grid steps ('parallel' axis -> v7x 2 TCs)."""
    cands = [d for d in _divisors(batch)
             if d % 8 == 0 and d <= max_bt and batch // d >= 2]
    return max(cands) if cands else batch


def _pick_hw_chunk(hw, bt, c1, c_hid, x_bytes, w_bytes, act_bytes,
                   budget=20 << 20, max_chunk=512):
    """Pixel rows per grid step: largest sublane-aligned divisor of HW that
    keeps the fused chunk inside a conservative VMEM budget."""
    cands = sorted([d for d in _divisors(hw) if d % 8 == 0 and d <= max_chunk],
                   reverse=True)
    if not cands:
        cands = [hw]  # odd HW (e.g. 7x7): single chunk (needs bt == 1 or HW%8==0)
    for c in cands:
        if _vmem_estimate(bt, c, c1, c_hid, x_bytes, w_bytes, act_bytes) <= budget:
            return c
    return cands[-1]


# --------------------------------------------------------------------------
# Forward pass.
# --------------------------------------------------------------------------
@functools.partial(jax.jit, static_argnames=("block_b", "hw_chunk"))
def classify_forward(x_nchw, wc, bc, wl, bl, *, block_b=None, hw_chunk=None):
    """x_nchw: (B, C1, H, W) f32.  wc: (C_, C1) folded conv+BN weight.
    bc: (C_,) folded bias.  wl: (C_, C2).  bl: (1, C2).
    Returns (B, C2) softmax probabilities."""
    B, C1, H, W = x_nchw.shape
    HW = H * W
    C_ = wc.shape[0]

    # bf16 weights/activations feed the MXU at ~2x rate, halve x traffic and
    # halve EUP pushes for the SiLU on v6e/v7x; the tiny / unaligned-C1 demo
    # (C1=4) stays on the exact f32 path (also required on v5e).
    compute_dtype = jnp.bfloat16 if (C1 % 16 == 0) else jnp.float32
    x_bytes = jnp.dtype(compute_dtype).itemsize
    w_bytes = x_bytes
    act_bytes = x_bytes

    bt = _pick_block_b(B) if block_b is None else block_b
    hwc = (hw_chunk if hw_chunk is not None
           else _pick_hw_chunk(HW, bt, C1, C_, x_bytes, w_bytes, act_bytes))
    assert B % bt == 0, "block_b must divide the batch"
    assert bt == B or bt % 8 == 0, "block_b must be the batch or a multiple of 8"
    assert HW % hwc == 0, "hw_chunk must divide H*W"
    if bt > 1:
        assert hwc % 8 == 0, "hw_chunk must be sublane-aligned when block_b > 1"

    vmem_est = _vmem_estimate(bt, hwc, C1, C_, x_bytes, w_bytes, act_bytes)
    vmem_limit = int(min(64 << 20, max(32 << 20, 2 * vmem_est)))

    # Channels-last, lane-dense layout: (B, HW, C1) in the compute dtype.
    # (One XLA transpose pass; a production producer should emit this layout.)
    x_cl = jnp.transpose(x_nchw, (0, 2, 3, 1)).reshape(B, HW, C1)
    x_cl = x_cl.astype(compute_dtype)
    w_t = wc.T.astype(compute_dtype)                      # (C1, C_)
    b_row = bc.reshape(1, C_).astype(jnp.float32)         # (1, C_) lane-dense

    # 0/1 block-diagonal pooling selector: row r of a chunk belongs to image
    # r // hwc.  Exact in any dtype; 1/HW is applied once at finalize.
    row_img = jnp.arange(bt * hwc, dtype=jnp.int32) // hwc
    sel = (jnp.arange(bt, dtype=jnp.int32)[:, None] == row_img[None, :])
    sel = sel.astype(compute_dtype)                       # (bt, bt*hwc)

    kernel = functools.partial(classify_pool_kernel,
                               inv_hw=1.0 / float(HW),
                               act_dtype=compute_dtype)

    pooled = pl.pallas_call(
        kernel,
        out_shape=jax.ShapeDtypeStruct((B, C_), jnp.float32),
        grid_spec=pltpu.PrefetchScalarGridSpec(
            num_scalar_prefetch=0,
            grid=(B // bt, HW // hwc),
            in_specs=[
                pl.BlockSpec((bt, hwc, C1), lambda i, j: (i, j, 0)),
                pl.BlockSpec((C1, C_), lambda i, j: (0, 0),
                             pipeline_mode=pl.Buffered(1)),
                pl.BlockSpec((1, C_), lambda i, j: (0, 0),
                             pipeline_mode=pl.Buffered(1)),
                pl.BlockSpec((bt, bt * hwc), lambda i, j: (0, 0),
                             pipeline_mode=pl.Buffered(1)),
            ],
            out_specs=pl.BlockSpec((bt, C_), lambda i, j: (i, 0)),
            scratch_shapes=[pltpu.VMEM((bt, C_), jnp.float32)],
        ),
        compiler_params=pltpu.CompilerParams(
            dimension_semantics=("parallel", "arbitrary"),
            vmem_limit_bytes=vmem_limit,
        ),
    )(x_cl, w_t, b_row, sel)

    # Dropout(p=0.0) is identity.  Linear + softmax once for the whole batch.
    logits = jnp.dot(pooled, wl, preferred_element_type=jnp.float32) + bl
    return jax.nn.softmax(logits, axis=-1)


def fold_bn_into_conv(conv_w, gamma, beta, mean, var, eps=1e-3):
    """Fold eval-mode BatchNorm into a bias-free 1x1 conv.

    conv_w: (C_, C1, 1, 1) PyTorch layout -> (C_, C1) weight, (C_,) bias.
    """
    scale = gamma / jnp.sqrt(var + eps)                  # (C_,)
    w_folded = conv_w[:, :, 0, 0] * scale[:, None]       # (C_, C1)
    b_folded = beta - mean * scale                       # (C_,)
    return w_folded, b_folded


if __name__ == "__main__":
    # Small, deterministic example consistent with the module:
    # Classify(c1=4, c2=8) applied to x of shape (2, 4, 16, 16).
    B, C1, H, W = 2, 4, 16, 16
    C_HID = 1280   # c_ = 1280 in the module
    C2 = 8

    key = jax.random.PRNGKey(0)
    ks = jax.random.split(key, 8)

    x = jax.random.normal(ks[0], (B, C1, H, W), dtype=jnp.float32)

    # Conv(c1, 1280, k=1): Conv2d weight (1280, c1, 1, 1), no bias.
    conv_w = jax.random.normal(ks[1], (C_HID, C1, 1, 1), dtype=jnp.float32) * 0.1
    # BatchNorm2d(1280, eps=1e-3) eval-mode parameters / running stats.
    bn_gamma = 1.0 + 0.1 * jax.random.normal(ks[2], (C_HID,), dtype=jnp.float32)
    bn_beta = 0.1 * jax.random.normal(ks[3], (C_HID,), dtype=jnp.float32)
    bn_mean = 0.1 * jax.random.normal(ks[4], (C_HID,), dtype=jnp.float32)
    bn_var = 0.5 + jax.random.uniform(ks[5], (C_HID,), dtype=jnp.float32)
    # Linear(1280, c2): weight (c2, 1280), bias (c2,).
    lin_w = jax.random.normal(ks[6], (C2, C_HID), dtype=jnp.float32) * 0.05
    lin_b = 0.1 * jax.random.normal(ks[7], (C2,), dtype=jnp.float32)

    # Plain-JAX glue: fold BN into the conv, transpose linear weight.
    wc, bc = fold_bn_into_conv(conv_w, bn_gamma, bn_beta, bn_mean, bn_var, eps=1e-3)
    wl = lin_w.T                 # (C_, C2)
    bl = lin_b[None, :]          # (1, C2)

    # hw_chunk=128 -> two HW grid steps, exercising the pooled-sum accumulation.
    out = classify_forward(x, wc, bc, wl, bl, hw_chunk=128)
    out = jax.block_until_ready(out)

    # Pure-JAX reference, mirroring the kernel's compute dtype choices.
    cdt = jnp.bfloat16 if (C1 % 16 == 0) else jnp.float32
    x_cl = jnp.transpose(x, (0, 2, 3, 1)).reshape(B, H * W, C1)
    x_cl = x_cl.astype(cdt).astype(jnp.float32)
    w_t = wc.T.astype(cdt).astype(jnp.float32)
    feat = jnp.einsum("bhc,cd->bhd", x_cl, w_t) + bc[None, None, :]
    act = feat.astype(cdt).astype(jnp.float32)
    act = act * jax.nn.sigmoid(act)
    act = act.astype(cdt).astype(jnp.float32)
    pooled_ref = jnp.mean(act, axis=1)                            # (B, C_)
    logits_ref = jnp.dot(pooled_ref, wl,
                         preferred_element_type=jnp.float32) + bl
    ref = jax.nn.softmax(logits_ref, axis=-1)

    assert out.shape == (B, C2)
    assert jnp.allclose(out, ref, atol=1e-4, rtol=1e-4), "mismatch vs reference"

    print("KERNEL_OK")
</pallas_src>

<mosaic_0001>
module attributes {stable_mosaic.version = 11 : i64} {
  func.func @classify_pool_kernel(%arg0: i32, %arg1: i32, %arg2: memref<2x128x4xf32, #tpu.memory_space<vmem>>, %arg3: memref<4x1280xf32, #tpu.memory_space<vmem>>, %arg4: memref<1x1280xf32, #tpu.memory_space<vmem>>, %arg5: memref<2x256xf32, #tpu.memory_space<vmem>>, %arg6: memref<2x1280xf32, #tpu.memory_space<vmem>>, %arg7: memref<2x1280xf32, #tpu.memory_space<vmem>>) attributes {dimension_semantics = [#tpu.dimension_semantics<parallel>, #tpu.dimension_semantics<arbitrary>], iteration_bounds = array<i64: 1, 2>, scalar_prefetch = 0 : i64, scratch_operands = 1 : i64, tpu.core_type = #tpu.core_type<tc>, window_params = [{transform_indices = @transform_0, window_bounds = array<i64: 2, 128, 4>}, {pipeline_mode = #tpu.pipeline_mode<synchronous>, transform_indices = @transform_1, window_bounds = array<i64: 4, 1280>}, {pipeline_mode = #tpu.pipeline_mode<synchronous>, transform_indices = @transform_2, window_bounds = array<i64: 1, 1280>}, {pipeline_mode = #tpu.pipeline_mode<synchronous>, transform_indices = @transform_3, window_bounds = array<i64: 2, 256>}, {transform_indices = @transform_4, window_bounds = array<i64: 2, 1280>}]} {
    %c0_i32 = arith.constant 0 : i32
    %0 = arith.cmpi eq, %arg1, %c0_i32 : i32
    %1 = arith.extui %0 : i1 to i32
    %c0_i32_0 = arith.constant 0 : i32
    %2 = arith.cmpi ne, %1, %c0_i32_0 : i32
    scf.if %2 {
      %cst_16 = arith.constant 0.000000e+00 : f32
      %24 = vector.broadcast %cst_16 : f32 to vector<2x1280xf32>
      %c0_17 = arith.constant 0 : index
      %c0_18 = arith.constant 0 : index
      %25 = vector.load %arg7[%c0_17, %c0_18] : memref<2x1280xf32, #tpu.memory_space<vmem>>, vector<2x1280xf32>
      tpu.vector_store %arg7[%c0_17, %c0_18], %24 {strides = array<i32>} : memref<2x1280xf32, #tpu.memory_space<vmem>>, vector<2x1280xf32>,
    } else {
    }
    %c0 = arith.constant 0 : index
    %c0_1 = arith.constant 0 : index
    %c0_2 = arith.constant 0 : index
    %3 = vector.load %arg2[%c0, %c0_1, %c0_2] : memref<2x128x4xf32, #tpu.memory_space<vmem>>, vector<2x128x4xf32>
    %4 = vector.shape_cast %3 : vector<2x128x4xf32> to vector<256x4xf32>
    %c0_3 = arith.constant 0 : index
    %c0_4 = arith.constant 0 : index
    %5 = vector.load %arg3[%c0_3, %c0_4] : memref<4x1280xf32, #tpu.memory_space<vmem>>, vector<4x1280xf32>
    %cst = arith.constant dense<0.000000e+00> : vector<256x1280xf32>
    %6 = tpu.matmul %4, %5, %cst {dimension_numbers = #tpu.dot_dimension_numbers<[1], [0], [0], [1], [0, 0, 1, 1], [], []>} : vector<256x4xf32>, vector<4x1280xf32>, vector<256x1280xf32> -> vector<256x1280xf32>
    %c0_5 = arith.constant 0 : index
    %c0_6 = arith.constant 0 : index
    %7 = vector.load %arg4[%c0_5, %c0_6] : memref<1x1280xf32, #tpu.memory_space<vmem>>, vector<1x1280xf32>
    %8 = vector.broadcast %7 : vector<1x1280xf32> to vector<256x1280xf32>
    %9 = arith.addf %6, %8 : vector<256x1280xf32>
    %10 = arith.negf %9 : vector<256x1280xf32>
    %11 = math.exp %10 : vector<256x1280xf32>
    %cst_7 = arith.constant 1.000000e+00 : f32
    %12 = vector.broadcast %cst_7 : f32 to vector<256x1280xf32>
    %13 = arith.addf %12, %11 : vector<256x1280xf32>
    %14 = arith.divf %12, %13 : vector<256x1280xf32>
    %15 = arith.mulf %9, %14 : vector<256x1280xf32>
    %c0_8 = arith.constant 0 : index
    %c0_9 = arith.constant 0 : index
    %16 = vector.load %arg7[%c0_8, %c0_9] : memref<2x1280xf32, #tpu.memory_space<vmem>>, vector<2x1280xf32>
    %c0_10 = arith.constant 0 : index
    %c0_11 = arith.constant 0 : index
    %17 = vector.load %arg5[%c0_10, %c0_11] : memref<2x256xf32, #tpu.memory_space<vmem>>, vector<2x256xf32>
    %cst_12 = arith.constant dense<0.000000e+00> : vector<2x1280xf32>
    %18 = tpu.matmul %17, %15, %cst_12 {dimension_numbers = #tpu.dot_dimension_numbers<[1], [0], [0], [1], [0, 0, 1, 1], [], []>} : vector<2x256xf32>, vector<256x1280xf32>, vector<2x1280xf32> -> vector<2x1280xf32>
    %19 = arith.addf %16, %18 : vector<2x1280xf32>
    %c0_13 = arith.constant 0 : index
    %c0_14 = arith.constant 0 : index
    %20 = vector.load %arg7[%c0_13, %c0_14] : memref<2x1280xf32, #tpu.memory_space<vmem>>, vector<2x1280xf32>
    tpu.vector_store %arg7[%c0_13, %c0_14], %19 {strides = array<i32>} : memref<2x1280xf32, #tpu.memory_space<vmem>>, vector<2x1280xf32>,
    %c1_i32 = arith.constant 1 : i32
    %21 = arith.cmpi eq, %arg1, %c1_i32 : i32
    %22 = arith.extui %21 : i1 to i32
    %c0_i32_15 = arith.constant 0 : i32
    %23 = arith.cmpi ne, %22, %c0_i32_15 : i32
    scf.if %23 {
      %c0_16 = arith.constant 0 : index
      %c0_17 = arith.constant 0 : index
      %24 = vector.load %arg7[%c0_16, %c0_17] : memref<2x1280xf32, #tpu.memory_space<vmem>>, vector<2x1280xf32>
      %cst_18 = arith.constant 3.906250e-03 : f32
      %25 = vector.broadcast %cst_18 : f32 to vector<2x1280xf32>
      %26 = arith.mulf %24, %25 : vector<2x1280xf32>
      %c0_19 = arith.constant 0 : index
      %c0_20 = arith.constant 0 : index
      %27 = vector.load %arg6[%c0_19, %c0_20] : memref<2x1280xf32, #tpu.memory_space<vmem>>, vector<2x1280xf32>
      tpu.vector_store %arg6[%c0_19, %c0_20], %26 {strides = array<i32>} : memref<2x1280xf32, #tpu.memory_space<vmem>>, vector<2x1280xf32>,
    } else {
    }
    return
  }
  func.func @transform_0(%arg0: i32, %arg1: i32) -> (i32, i32, i32) {
    %c0_i32 = arith.constant 0 : i32
    %c0_i32_0 = arith.constant 0 : i32
    return %arg0, %arg1, %c0_i32 : i32, i32, i32
  }
  func.func @transform_1(%arg0: i32, %arg1: i32) -> (i32, i32) {
    %c0_i32 = arith.constant 0 : i32
    %c0_i32_0 = arith.constant 0 : i32
    %c0_i32_1 = arith.constant 0 : i32
    return %c0_i32, %c0_i32_0 : i32, i32
  }
  func.func @transform_2(%arg0: i32, %arg1: i32) -> (i32, i32) {
    %c0_i32 = arith.constant 0 : i32
    %c0_i32_0 = arith.constant 0 : i32
    %c0_i32_1 = arith.constant 0 : i32
    return %c0_i32, %c0_i32_0 : i32, i32
  }
  func.func @transform_3(%arg0: i32, %arg1: i32) -> (i32, i32) {
    %c0_i32 = arith.constant 0 : i32
    %c0_i32_0 = arith.constant 0 : i32
    %c0_i32_1 = arith.constant 0 : i32
    return %c0_i32, %c0_i32_0 : i32, i32
  }
  func.func @transform_4(%arg0: i32, %arg1: i32) -> (i32, i32) {
    %c0_i32 = arith.constant 0 : i32
    %c0_i32_0 = arith.constant 0 : i32
    return %arg0, %c0_i32 : i32, i32
  }
}

</mosaic_0001>

<bundles_post_ra>
// kernel: classify_forward.1
= control target key start
LH: loop header
LB: loop body
LE: loop exit
PB: predicated region body
PF: predicated region fallthrough
CT: control target
= control target key end

     0   :  { %s6889_s15 = smov 0   ;;  %s6891_s16 = smov 0   ;;  %s10560_s0 = inlined_call_operand.vmem [shape: f32[2,256,4], index: 0, kind: input, shape index: {}]   ;;  %s10561_s1 = inlined_call_operand.vmem [shape: f32[4,1280], index: 1, kind: input, shape index: {}]   ;;  %s10562_s2 = inlined_call_operand.vmem [shape: f32[1,1280], index: 2, kind: input, shape index: {}]   ;;  %s10563_s3 = inlined_call_operand.vmem [shape: f32[2,256], index: 3, kind: input, shape index: {}]   ;;  %s10564_s4 = inlined_call_operand.vmem [shape: f32[2,1280], index: 4, kind: output, shape index: {}]  }
   0x1   :  { %s6893_s17 = smov 0   ;;  %s6895_s18 = smov 0  }
   0x2   :  { %s6897_s19 = smov 0  }
   0x3 LB: > { %s23_s20 = sadd.s32 1, %s6855_s18  ;;  %p42_p1 = scmp.ne.s32.totalorder %s6847_s16, %s6843_s15  ;;  %s6859_s19 = sphi %s6897_s19, %s14_s19   ;;  %s6855_s18 = sphi %s6895_s18, %s11077_s18   ;;  %s6851_s17 = sphi %s6893_s17, %s11076_s17   ;;  %s6847_s16 = sphi %s6891_s16, %s11075_s16   ;;  %s6843_s15 = sphi %s6889_s15, %s11074_s15  }
   0x4   : > { %p24_p0 = scmp.ge.s32.totalorder %s23_s20, 2  ;;  %p43_p2 = scmp.eq.s32.totalorder %s6859_s19, 0 }
   0x5   : > { %s35_s22 = sadd.s32 1, %s6847_s16  ;;  %p4643_p5 = scmp.ge.s32.totalorder %s6859_s19, 2 }
   0x6   : > { %s11079_s20 = smov (%p24_p0, %s23_s20), 0  ;;  %p44_p3 = por %p43_p2, %p42_p1 }
   0x7   : > { %s31_s21 = ssub.s32 %s6855_s18, %s11079_s20  ;;  %166 = sbr.rel (%p4643_p5) target bundleno = 34 (0x22), region = 28 }
   0x8   : > { %p33_p4 = scmp.eq.s32.totalorder %s31_s21, 0 }
   0xa   : > { %s6924_s23 = scalar_select %p33_p4, %s6847_s16, %s35_s22  }
   0xe   : > { %169 = sbr.rel (!%p44_p3) target bundleno = 34 (0x22), region = 32  ;;  %s171_s24 = sand.u32 (%p44_p3), 1, %s6847_s16  }
   0xf   : > { %s5145_s25 = sshll.u32 (%p44_p3), %s6855_s18, 7  ;;  %s4644_s26 = sshll.u32 (%p44_p3), %s171_s24, 8 }
  0x10   : > { %s6932_s29 = scalar_lea.vmem (%p44_p3), %s10560_s0, %s5145_s25  ;;  %s6937_s30 = scalar_lea.vmem (%p44_p3), [#allocation3], %s4644_s26 }
  0x11   : > { %v269_v0 = vld [vmem:[%s6932_s29] sm:$0xff] (%p44_p3)  ;;  %v271_v1 = vld [vmem:[%s6932_s29 + $0x8] sm:$0xff] (%p44_p3)  ;;  %v273_v2 = vld [vmem:[%s6932_s29 + $0x10] sm:$0xff] (%p44_p3) }
  0x12   : > { %270 = vst [vmem:[%s6937_s30] sm:$0xff] (%p44_p3), %v269_v0  ;;  %272 = vst [vmem:[%s6937_s30 + $0x8] sm:$0xff] (%p44_p3), %v271_v1  ;;  %v275_v3 = vld [vmem:[%s6932_s29 + $0x18] sm:$0xff] (%p44_p3)  ;;  %v277_v4 = vld [vmem:[%s6932_s29 + $0x20] sm:$0xff] (%p44_p3) }
  0x13   : > { %274 = vst [vmem:[%s6937_s30 + $0x10] sm:$0xff] (%p44_p3), %v273_v2  ;;  %v279_v5 = vld [vmem:[%s6932_s29 + $0x28] sm:$0xff] (%p44_p3)  ;;  %276 = vst [vmem:[%s6937_s30 + $0x18] sm:$0xff] (%p44_p3), %v275_v3  ;;  %v281_v6 = vld [vmem:[%s6932_s29 + $0x30] sm:$0xff] (%p44_p3) }
  0x14   : > { %278 = vst [vmem:[%s6937_s30 + $0x20] sm:$0xff] (%p44_p3), %v277_v4  ;;  %280 = vst [vmem:[%s6937_s30 + $0x28] sm:$0xff] (%p44_p3), %v279_v5  ;;  %v283_v7 = vld [vmem:[%s6932_s29 + $0x38] sm:$0xff] (%p44_p3)  ;;  %v285_v8 = vld [vmem:[%s6932_s29 + $0x40] sm:$0xff] (%p44_p3) }
  0x15   : > { %282 = vst [vmem:[%s6937_s30 + $0x30] sm:$0xff] %v281_v6  ;;  %284 = vst [vmem:[%s6937_s30 + $0x38] sm:$0xff] %v283_v7  ;;  %v287_v9 = vld [vmem:[%s6932_s29 + $0x48] sm:$0xff]  ;;  %v289_v10 = vld [vmem:[%s6932_s29 + $0x50] sm:$0xff] }
  0x16   : > { %286 = vst [vmem:[%s6937_s30 + $0x40] sm:$0xff] %v285_v8  ;;  %v291_v11 = vld [vmem:[%s6932_s29 + $0x58] sm:$0xff]  ;;  %288 = vst [vmem:[%s6937_s30 + $0x48] sm:$0xff] %v287_v9  ;;  %v293_v12 = vld [vmem:[%s6932_s29 + $0x60] sm:$0xff] }
  0x17   : > { %290 = vst [vmem:[%s6937_s30 + $0x50] sm:$0xff] %v289_v10  ;;  %292 = vst [vmem:[%s6937_s30 + $0x58] sm:$0xff] %v291_v11  ;;  %v295_v13 = vld [vmem:[%s6932_s29 + $0x68] sm:$0xff]  ;;  %v297_v14 = vld [vmem:[%s6932_s29 + $0x70] sm:$0xff] }
  0x18   : > { %294 = vst [vmem:[%s6937_s30 + $0x60] sm:$0xff] %v293_v12  ;;  %296 = vst [vmem:[%s6937_s30 + $0x68] sm:$0xff] %v295_v13  ;;  %v299_v15 = vld [vmem:[%s6932_s29 + $0x78] sm:$0xff]  ;;  %v301_v16 = vld [vmem:[%s6932_s29 + $0x100] sm:$0xff] }
  0x19   : > { %298 = vst [vmem:[%s6937_s30 + $0x70] sm:$0xff] %v297_v14  ;;  %v303_v17 = vld [vmem:[%s6932_s29 + $0x108] sm:$0xff]  ;;  %300 = vst [vmem:[%s6937_s30 + $0x78] sm:$0xff] %v299_v15  ;;  %v305_v18 = vld [vmem:[%s6932_s29 + $0x110] sm:$0xff] }
  0x1a   : > { %302 = vst [vmem:[%s6937_s30 + $0x80] sm:$0xff] %v301_v16  ;;  %304 = vst [vmem:[%s6937_s30 + $0x88] sm:$0xff] %v303_v17  ;;  %v307_v19 = vld [vmem:[%s6932_s29 + $0x118] sm:$0xff]  ;;  %v309_v20 = vld [vmem:[%s6932_s29 + $0x120] sm:$0xff] }
  0x1b   : > { %306 = vst [vmem:[%s6937_s30 + $0x90] sm:$0xff] %v305_v18  ;;  %308 = vst [vmem:[%s6937_s30 + $0x98] sm:$0xff] %v307_v19  ;;  %v311_v21 = vld [vmem:[%s6932_s29 + $0x128] sm:$0xff]  ;;  %v313_v22 = vld [vmem:[%s6932_s29 + $0x130] sm:$0xff] }
  0x1c   : > { %310 = vst [vmem:[%s6937_s30 + $0xa0] sm:$0xff] %v309_v20  ;;  %v315_v23 = vld [vmem:[%s6932_s29 + $0x138] sm:$0xff]  ;;  %312 = vst [vmem:[%s6937_s30 + $0xa8] sm:$0xff] %v311_v21  ;;  %v317_v24 = vld [vmem:[%s6932_s29 + $0x140] sm:$0xff] }
  0x1d   : > { %314 = vst [vmem:[%s6937_s30 + $0xb0] sm:$0xff] %v313_v22  ;;  %316 = vst [vmem:[%s6937_s30 + $0xb8] sm:$0xff] %v315_v23  ;;  %v319_v25 = vld [vmem:[%s6932_s29 + $0x148] sm:$0xff]  ;;  %v321_v26 = vld [vmem:[%s6932_s29 + $0x150] sm:$0xff] }
  0x1e   : > { %318 = vst [vmem:[%s6937_s30 + $0xc0] sm:$0xff] %v317_v24  ;;  %320 = vst [vmem:[%s6937_s30 + $0xc8] sm:$0xff] %v319_v25  ;;  %v323_v27 = vld [vmem:[%s6932_s29 + $0x158] sm:$0xff]  ;;  %v325_v28 = vld [vmem:[%s6932_s29 + $0x160] sm:$0xff] }
  0x1f   : > { %322 = vst [vmem:[%s6937_s30 + $0xd0] sm:$0xff] %v321_v26  ;;  %v327_v29 = vld [vmem:[%s6932_s29 + $0x168] sm:$0xff]  ;;  %324 = vst [vmem:[%s6937_s30 + $0xd8] sm:$0xff] %v323_v27  ;;  %v329_v30 = vld [vmem:[%s6932_s29 + $0x170] sm:$0xff] }
  0x20   : > { %326 = vst [vmem:[%s6937_s30 + $0xe0] sm:$0xff] %v325_v28  ;;  %328 = vst [vmem:[%s6937_s30 + $0xe8] sm:$0xff] %v327_v29  ;;  %v331_v31 = vld [vmem:[%s6932_s29 + $0x178] sm:$0xff] }
  0x21   : > { %330 = vst [vmem:[%s6937_s30 + $0xf0] sm:$0xff] %v329_v30  ;;  %332 = vst [vmem:[%s6937_s30 + $0xf8] sm:$0xff] %v331_v31 }
  0x22 PF: > { %p4647_p6 = scmp.ge.s32.totalorder %s6859_s19, 1  ;;  %p337_p7 = scmp.lt.s32.totalorder %s6859_s19, 3 }
  0x24   : > { %p338_p8 = pnand %p4647_p6, %p337_p7 }
  0x26   : > { %341 = sbr.rel (%p338_p8) target bundleno = 1168 (0x490), region = 70 }
  0x2d   : > { %s344_s5 = sand.u32 1, %s6843_s15   ;;  %p4649_p9 = scmp.ne.s32.totalorder %s6851_s17, 0 }
  0x2e   : > { %s4648_s6 = sshll.u32 %s344_s5, 8  ;;  %v6861_v32 = vmov (!%p4649_p9), 0.0  }
  0x2f   : > { %s7003_s7 = scalar_lea.vmem [#allocation3], %s4648_s6  ;;  %379 = sbr.rel (%p4649_p9) target bundleno = 54 (0x36), region = 78  ;;  %380 = vst [vmem:[#allocation2] sm:$0xff] (!%p4649_p9), %v6861_v32  ;;  %381 = vst [vmem:[#allocation2 + $0x8] sm:$0xff] (!%p4649_p9), %v6861_v32 }
  0x30   : > { %382 = vst [vmem:[#allocation2 + $0x10] sm:$0xf] (!%p4649_p9), %v6861_v32 }
  0x36 PF: > { %v415_v33 = vld [vmem:[%s10561_s1] sm:$0xff]  ;;  %vm581_vm0 = vcmask 1043456   ;;  %v417_v34 = vld [vmem:[%s10561_s1 + $0x10] sm:$0xff]  ;;  %v10570_v36 = vmov 0.0   ;;  %vm484_vm1 = vcmask 31744   ;;  %v416_v41 = vld [vmem:[%s10561_s1 + $0x8] sm:$0xff]  ;;  %v424_v12 = vlaneseq }
  0x37   : > { %v479_v35 = vcombine.high %v415_v33, %v415_v33  ;;  %666 = vmatprep.mubr.f32.mxu0 %v10570_v36  ;;  %810 = vmatprep.mubr.f32.mxu1 %v10570_v36  ;;  %v481_v37 = vcombine.high %v417_v34, %v417_v34  ;;  %v7015_v38 = vld [vmem:[%s7003_s7] sm:$0xff]  ;;  %v7031_v40 = vld [vmem:[%s7003_s7 + $0x8] sm:$0xff]  ;;  %v480_v43 = vcombine.high %v416_v41, %v416_v41  ;;  %v7048_v44 = vld [vmem:[%s7003_s7 + $0x10] sm:$0xff]  ;;  %p5141_p10 = scmp.ne.s32.totalorder %s6851_s17, 1 }
  0x38   : > { %v7020_v39 = vld [vmem:[%s7003_s7 + $0xc0] sm:$0xff]  ;;  %v7039_v42 = vld [vmem:[%s7003_s7 + $0xc8] sm:$0xff]  ;;  %v7052_v45 = vld [vmem:[%s7003_s7 + $0xd0] sm:$0xff]  ;;  %v7438_v13 = vshrl.u32 %v424_v12, 7 }
  0x39   : > { %4650 = vmatprep.subr.msk.mxu0 %vm581_vm0, %v479_v35  ;;  %5466 = vmatprep.subr.msk.mxu1 %vm581_vm0, %v479_v35  ;;  %v418_v46 = vld [vmem:[%s10561_s1 + $0x18] sm:$0xff]  ;;  %v7061_v48 = vld [vmem:[%s10561_s1 + $0x20] sm:$0xff]  ;;  %v7071_v50 = vld [vmem:[%s7003_s7 + $0x18] sm:$0xff] }
  0x3a   : > { %4651 = vmatpush1.msk.msra.mxu0 %vm581_vm0, %v415_v33  ;;  %5467 = vmatpush1.msk.msra.mxu1 %vm581_vm0, %v415_v33  ;;  %v482_v47 = vcombine.high %v418_v46, %v418_v46  ;;  %v483_v49 = vcombine.high %v7061_v48, %v7061_v48  ;;  %v7075_v51 = vld [vmem:[%s7003_s7 + $0xd8] sm:$0xff]  ;;  %v7085_v52 = vld [vmem:[%s7003_s7 + $0x20] sm:$0xff]  ;;  %v7097_v54 = vld [vmem:[%s7003_s7 + $0x28] sm:$0xff]  ;;  %10604 = vst [vmem:[#allocation4_spill] sm:$0xff] %v7438_v13  ;;  %v10566_v14 = vsub.s32 0, %v7438_v13  ;;  %v10565_v16 = vsub.s32 1, %v7438_v13 }
  0x3b   : > { %4652 = vmatmul.mubr.msk.f32.vlgmr.msra.gmra.mrb[0].mxu0 %vm484_vm1, %v7015_v38  ;;  %4718 = vmatprep.subr.msk.mxu0 %vm581_vm0, %v481_v37  ;;  %v7089_v53 = vld [vmem:[%s7003_s7 + $0xe0] sm:$0xff]  ;;  %v7101_v55 = vld [vmem:[%s7003_s7 + $0xe8] sm:$0xff]  ;;  %v7109_v56 = vld [vmem:[%s7003_s7 + $0x30] sm:$0xff] }
  0x3c   : > { %4676 = vmatmul.mubr.msk.f32.vlgmr.msra.gmra.mrb[0].mxu1 %vm484_vm1, %v7020_v39  ;;  %4719 = vmatpush1.msk.msra.mxu0 %vm581_vm0, %v417_v34  ;;  %v7113_v57 = vld [vmem:[%s7003_s7 + $0xf0] sm:$0xff]  ;;  %v7121_v58 = vld [vmem:[%s7003_s7 + $0x38] sm:$0xff]  ;;  %v7133_v60 = vld [vmem:[%s7003_s7 + $0x40] sm:$0xff] }
  0x3d   : > { %672 = vmatprep.mubr.f32.mxu0 %v10570_v36  ;;  %816 = vmatprep.mubr.f32.mxu1 %v10570_v36  ;;  %v7125_v59 = vld [vmem:[%s7003_s7 + $0xf8] sm:$0xff]  ;;  %v7142_v61 = vld [vmem:[%s7003_s7 + $0x48] sm:$0xff]  ;;  %v7152_v62 = vld [vmem:[%s7003_s7 + $0x50] sm:$0xff] }
  0x3e   : > { %4684 = vmatprep.subr.msk.mxu1 %vm581_vm0, %v480_v43  ;;  %4786 = vmatprep.subr.msk.mxu0 %vm581_vm0, %v483_v49  ;;  %v7161_v63 = vld [vmem:[%s7003_s7 + $0x58] sm:$0xff]  ;;  %v7170_v0 = vld [vmem:[%s7003_s7 + $0x60] sm:$0xff]  ;;  %v7179_v1 = vld [vmem:[%s7003_s7 + $0x68] sm:$0xff] }
  0x3f   : > { %4653 = vmatmul.mubr.msk.f32.gmra.mrb[2].mxu0 %vm484_vm1, %v7031_v40  ;;  %4685 = vmatpush1.msk.msra.mxu1 %vm581_vm0, %v416_v41  ;;  %v7188_v2 = vld [vmem:[%s7003_s7 + $0x70] sm:$0xff]  ;;  %v7197_v3 = vld [vmem:[%s7003_s7 + $0x78] sm:$0xff]  ;;  %v7206_v4 = vld [vmem:[%s7003_s7 + $0x80] sm:$0xff] }
  0x40   : > { %4677 = vmatmul.mubr.msk.f32.gmra.mrb[2].mxu1 %vm484_vm1, %v7039_v42  ;;  %678 = vmatprep.mubr.f32.mxu0 %v10570_v36  ;;  %v7215_v5 = vld [vmem:[%s7003_s7 + $0x88] sm:$0xff]  ;;  %v7224_v6 = vld [vmem:[%s7003_s7 + $0x90] sm:$0xff]  ;;  %v7233_v7 = vld [vmem:[%s7003_s7 + $0x98] sm:$0xff] }
  0x41   : > { %822 = vmatprep.mubr.f32.mxu1 %v10570_v36  ;;  %4752 = vmatprep.subr.msk.mxu1 %vm581_vm0, %v482_v47  ;;  %v7242_v8 = vld [vmem:[%s7003_s7 + $0xa0] sm:$0xff]  ;;  %v7251_v9 = vld [vmem:[%s7003_s7 + $0xa8] sm:$0xff]  ;;  %v7260_v10 = vld [vmem:[%s7003_s7 + $0xb0] sm:$0xff] }
  0x42   : > { %v7269_v11 = vld [vmem:[%s7003_s7 + $0xb8] sm:$0xff]  ;;  %v7453_v15 = vld [vmem:[%s10562_s2] sm:$0xff] }
  0x43   : > { %4654 = vmatmul.mubr.msk.f32.gmra.mrb[4].mxu0 %vm484_vm1, %v7048_v44  ;;  %v7462_v17 = vrot.slane %v7453_v15, %v10566_v14  ;;  %v7470_v18 = vrot.slane %v7453_v15, %v10565_v16 }
  0x44   : > { %4678 = vmatmul.mubr.msk.f32.gmra.mrb[4].mxu1 %vm484_vm1, %v7052_v45  ;;  %684 = vmatprep.mubr.f32.mxu0 %v10570_v36 }
  0x45   : > { %828 = vmatprep.mubr.f32.mxu1 %v10570_v36 }
  0x47   : > { %4655 = vmatmul.mubr.msk.f32.gmra.mrb[6].mxu0 %vm484_vm1, %v7071_v50 }
  0x48   : > { %4679 = vmatmul.mubr.msk.f32.gmra.mrb[6].mxu1 %vm484_vm1, %v7075_v51  ;;  %690 = vmatprep.mubr.f32.mxu0 %v10570_v36 }
  0x49   : > { %834 = vmatprep.mubr.f32.mxu1 %v10570_v36 }
  0x4b   : > { %4656 = vmatmul.mubr.msk.f32.gmra.mrb[8].mxu0 %vm484_vm1, %v7085_v52 }
  0x4c   : > { %4680 = vmatmul.mubr.msk.f32.gmra.mrb[8].mxu1 %vm484_vm1, %v7089_v53  ;;  %696 = vmatprep.mubr.f32.mxu0 %v10570_v36 }
  0x4d   : > { %840 = vmatprep.mubr.f32.mxu1 %v10570_v36 }
  0x4f   : > { %4657 = vmatmul.mubr.msk.f32.gmra.mrb[10].mxu0 %vm484_vm1, %v7097_v54 }
  0x50   : > { %4681 = vmatmul.mubr.msk.f32.gmra.mrb[10].mxu1 %vm484_vm1, %v7101_v55  ;;  %702 = vmatprep.mubr.f32.mxu0 %v10570_v36 }
  0x51   : > { %846 = vmatprep.mubr.f32.mxu1 %v10570_v36 }
  0x53   : > { %4658 = vmatmul.mubr.msk.f32.gmra.mrb[12].mxu0 %vm484_vm1, %v7109_v56 }
  0x54   : > { %4682 = vmatmul.mubr.msk.f32.gmra.mrb[12].mxu1 %vm484_vm1, %v7113_v57  ;;  %708 = vmatprep.mubr.f32.mxu0 %v10570_v36 }
  0x55   : > { %852 = vmatprep.mubr.f32.mxu1 %v10570_v36 }
  0x57   : > { %4659 = vmatmul.mubr.msk.f32.gmra.mrb[14].mxu0 %vm484_vm1, %v7121_v58 }
  0x58   : > { %4683 = vmatmul.mubr.msk.f32.gmra.mrb[14].mxu1 %vm484_vm1, %v7125_v59  ;;  %714 = vmatprep.mubr.f32.mxu0 %v10570_v36 }
  0x59   : > { %923 = vmatprep.mubr.f32.mxu1 %v10570_v36 }
  0x5b   : > { %4660 = vmatmul.mubr.msk.f32.gmra.mrb[16].mxu0 %vm484_vm1, %v7133_v60 }
  0x5c   : > { %4686 = vmatmul.mubr.msk.f32.vlgmr.msra.gmra.mrb[16].mxu1 %vm484_vm1, %v7015_v38  ;;  %720 = vmatprep.mubr.f32.mxu0 %v10570_v36 }
  0x5d   : > { %929 = vmatprep.mubr.f32.mxu1 %v10570_v36  ;;  %4753 = vmatpush1.msk.msra.mxu1 %vm581_vm0, %v418_v46 }
  0x5f   : > { %4661 = vmatmul.mubr.msk.f32.gmra.mrb[18].mxu0 %vm484_vm1, %v7142_v61 }
  0x60   : > { %4687 = vmatmul.mubr.msk.f32.gmra.mrb[18].mxu1 %vm484_vm1, %v7031_v40  ;;  %726 = vmatprep.mubr.f32.mxu0 %v10570_v36 }
  0x61   : > { %935 = vmatprep.mubr.f32.mxu1 %v10570_v36 }
  0x63   : > { %4662 = vmatmul.mubr.msk.f32.gmra.mrb[20].mxu0 %vm484_vm1, %v7152_v62 }
  0x64   : > { %4688 = vmatmul.mubr.msk.f32.gmra.mrb[20].mxu1 %vm484_vm1, %v7048_v44  ;;  %732 = vmatprep.mubr.f32.mxu0 %v10570_v36 }
  0x65   : > { %941 = vmatprep.mubr.f32.mxu1 %v10570_v36 }
  0x67   : > { %4663 = vmatmul.mubr.msk.f32.gmra.mrb[22].mxu0 %vm484_vm1, %v7161_v63 }
  0x68   : > { %4689 = vmatmul.mubr.msk.f32.gmra.mrb[22].mxu1 %vm484_vm1, %v7071_v50  ;;  %738 = vmatprep.mubr.f32.mxu0 %v10570_v36 }
  0x69   : > { %947 = vmatprep.mubr.f32.mxu1 %v10570_v36 }
  0x6b   : > { %4664 = vmatmul.mubr.msk.f32.gmra.mrb[24].mxu0 %vm484_vm1, %v7170_v0 }
  0x6c   : > { %4690 = vmatmul.mubr.msk.f32.gmra.mrb[24].mxu1 %vm484_vm1, %v7085_v52  ;;  %744 = vmatprep.mubr.f32.mxu0 %v10570_v36 }
  0x6d   : > { %953 = vmatprep.mubr.f32.mxu1 %v10570_v36 }
  0x6f   : > { %4665 = vmatmul.mubr.msk.f32.gmra.mrb[26].mxu0 %vm484_vm1, %v7179_v1 }
  0x70   : > { %4691 = vmatmul.mubr.msk.f32.gmra.mrb[26].mxu1 %vm484_vm1, %v7097_v54  ;;  %750 = vmatprep.mubr.f32.mxu0 %v10570_v36 }
  0x71   : > { %959 = vmatprep.mubr.f32.mxu1 %v10570_v36 }
  0x73   : > { %4666 = vmatmul.mubr.msk.f32.gmra.mrb[28].mxu0 %vm484_vm1, %v7188_v2 }
  0x74   : > { %4692 = vmatmul.mubr.msk.f32.gmra.mrb[28].mxu1 %vm484_vm1, %v7109_v56  ;;  %756 = vmatprep.mubr.f32.mxu0 %v10570_v36 }
  0x75   : > { %965 = vmatprep.mubr.f32.mxu1 %v10570_v36 }
  0x77   : > { %4667 = vmatmul.mubr.msk.f32.gmra.mrb[30].mxu0 %vm484_vm1, %v7197_v3 }
  0x78   : > { %4693 = vmatmul.mubr.msk.f32.gmra.mrb[30].mxu1 %vm484_vm1, %v7121_v58  ;;  %762 = vmatprep.mubr.f32.mxu0 %v10570_v36 }
  0x79   : > { %971 = vmatprep.mubr.f32.mxu1 %v10570_v36 }
  0x7b   : > { %4668 = vmatmul.mubr.msk.f32.gmra.mrb[32].mxu0 %vm484_vm1, %v7206_v4 }
  0x7c   : > { %4694 = vmatmul.mubr.msk.f32.gmra.mrb[32].mxu1 %vm484_vm1, %v7133_v60  ;;  %768 = vmatprep.mubr.f32.mxu0 %v10570_v36 }
  0x7d   : > { %977 = vmatprep.mubr.f32.mxu1 %v10570_v36 }
  0x7f   : > { %4669 = vmatmul.mubr.msk.f32.gmra.mrb[34].mxu0 %vm484_vm1, %v7215_v5 }
  0x80   : > { %4695 = vmatmul.mubr.msk.f32.gmra.mrb[34].mxu1 %vm484_vm1, %v7142_v61  ;;  %774 = vmatprep.mubr.f32.mxu0 %v10570_v36 }
  0x81   : > { %983 = vmatprep.mubr.f32.mxu1 %v10570_v36 }
  0x83   : > { %4670 = vmatmul.mubr.msk.f32.gmra.mrb[36].mxu0 %vm484_vm1, %v7224_v6 }
  0x84   : > { %4696 = vmatmul.mubr.msk.f32.gmra.mrb[36].mxu1 %vm484_vm1, %v7152_v62  ;;  %780 = vmatprep.mubr.f32.mxu0 %v10570_v36 }
  0x85   : > { %989 = vmatprep.mubr.f32.mxu1 %v10570_v36 }
  0x87   : > { %4671 = vmatmul.mubr.msk.f32.gmra.mrb[38].mxu0 %vm484_vm1, %v7233_v7 }
  0x88   : > { %4697 = vmatmul.mubr.msk.f32.gmra.mrb[38].mxu1 %vm484_vm1, %v7161_v63  ;;  %786 = vmatprep.mubr.f32.mxu0 %v10570_v36 }
  0x89   : > { %995 = vmatprep.mubr.f32.mxu1 %v10570_v36 }
  0x8b   : > { %4672 = vmatmul.mubr.msk.f32.gmra.mrb[40].mxu0 %vm484_vm1, %v7242_v8 }
  0x8c   : > { %4698 = vmatmul.mubr.msk.f32.gmra.mrb[40].mxu1 %vm484_vm1, %v7170_v0  ;;  %792 = vmatprep.mubr.f32.mxu0 %v10570_v36 }
  0x8d   : > { %1001 = vmatprep.mubr.f32.mxu1 %v10570_v36 }
  0x8f   : > { %4673 = vmatmul.mubr.msk.f32.gmra.mrb[42].mxu0 %vm484_vm1, %v7251_v9 }
  0x90   : > { %4699 = vmatmul.mubr.msk.f32.gmra.mrb[42].mxu1 %vm484_vm1, %v7179_v1  ;;  %798 = vmatprep.mubr.f32.mxu0 %v10570_v36 }
  0x91   : > { %1007 = vmatprep.mubr.f32.mxu1 %v10570_v36 }
  0x93   : > { %4674 = vmatmul.mubr.msk.f32.gmra.mrb[44].mxu0 %vm484_vm1, %v7260_v10 }
  0x94   : > { %4700 = vmatmul.mubr.msk.f32.gmra.mrb[44].mxu1 %vm484_vm1, %v7188_v2  ;;  %804 = vmatprep.mubr.f32.mxu0 %v10570_v36 }
  0x95   : > { %1013 = vmatprep.mubr.f32.mxu1 %v10570_v36 }
  0x97   : > { %4675 = vmatmul.mubr.msk.f32.gmra.mrb[46].mxu0 %vm484_vm1, %v7269_v11 }
  0x98   : > { %4701 = vmatmul.mubr.msk.f32.gmra.mrb[46].mxu1 %vm484_vm1, %v7197_v3  ;;  %1180 = vmatprep.mubr.f32.mxu0 %v10570_v36 }
  0x99   : > { %1019 = vmatprep.mubr.f32.mxu1 %v10570_v36 }
  0x9b   : > { %4720 = vmatmul.mubr.msk.f32.vlgmr.msra.gmra.mrb[48].mxu0 %vm484_vm1, %v7015_v38 }
  0x9c   : > { %4702 = vmatmul.mubr.msk.f32.gmra.mrb[48].mxu1 %vm484_vm1, %v7206_v4  ;;  %4787 = vmatpush1.msk.msra.mxu0 %vm581_vm0, %v7061_v48 }
  0x9d   : > { %1186 = vmatprep.mubr.f32.mxu0 %v10570_v36  ;;  %1025 = vmatprep.mubr.f32.mxu1 %v10570_v36 }
  0x9f   : > { %4721 = vmatmul.mubr.msk.f32.gmra.mrb[50].mxu0 %vm484_vm1, %v7031_v40 }
  0xa0   : > { %4703 = vmatmul.mubr.msk.f32.gmra.mrb[50].mxu1 %vm484_vm1, %v7215_v5  ;;  %1192 = vmatprep.mubr.f32.mxu0 %v10570_v36 }
  0xa1   : > { %1031 = vmatprep.mubr.f32.mxu1 %v10570_v36 }
  0xa3   : > { %4722 = vmatmul.mubr.msk.f32.gmra.mrb[52].mxu0 %vm484_vm1, %v7048_v44 }
  0xa4   : > { %4704 = vmatmul.mubr.msk.f32.gmra.mrb[52].mxu1 %vm484_vm1, %v7224_v6  ;;  %1198 = vmatprep.mubr.f32.mxu0 %v10570_v36 }
  0xa5   : > { %1037 = vmatprep.mubr.f32.mxu1 %v10570_v36 }
  0xa7   : > { %4723 = vmatmul.mubr.msk.f32.gmra.mrb[54].mxu0 %vm484_vm1, %v7071_v50 }
  0xa8   : > { %4705 = vmatmul.mubr.msk.f32.gmra.mrb[54].mxu1 %vm484_vm1, %v7233_v7  ;;  %1204 = vmatprep.mubr.f32.mxu0 %v10570_v36 }
  0xa9   : > { %1043 = vmatprep.mubr.f32.mxu1 %v10570_v36 }
  0xab   : > { %4724 = vmatmul.mubr.msk.f32.gmra.mrb[56].mxu0 %vm484_vm1, %v7085_v52 }
  0xac   : > { %4706 = vmatmul.mubr.msk.f32.gmra.mrb[56].mxu1 %vm484_vm1, %v7242_v8  ;;  %1210 = vmatprep.mubr.f32.mxu0 %v10570_v36 }
  0xad   : > { %1049 = vmatprep.mubr.f32.mxu1 %v10570_v36 }
  0xaf   : > { %4725 = vmatmul.mubr.msk.f32.gmra.mrb[58].mxu0 %vm484_vm1, %v7097_v54 }
  0xb0   : > { %4707 = vmatmul.mubr.msk.f32.gmra.mrb[58].mxu1 %vm484_vm1, %v7251_v9  ;;  %1216 = vmatprep.mubr.f32.mxu0 %v10570_v36 }
  0xb1   : > { %1055 = vmatprep.mubr.f32.mxu1 %v10570_v36 }
  0xb3   : > { %4726 = vmatmul.mubr.msk.f32.gmra.mrb[60].mxu0 %vm484_vm1, %v7109_v56 }
  0xb4   : > { %4708 = vmatmul.mubr.msk.f32.gmra.mrb[60].mxu1 %vm484_vm1, %v7260_v10  ;;  %1222 = vmatprep.mubr.f32.mxu0 %v10570_v36 }
  0xb5   : > { %1061 = vmatprep.mubr.f32.mxu1 %v10570_v36 }
  0xb7   : > { %4727 = vmatmul.mubr.msk.f32.gmra.mrb[62].mxu0 %vm484_vm1, %v7121_v58 }
  0xb8   : > { %4709 = vmatmul.mubr.msk.f32.gmra.mrb[62].mxu1 %vm484_vm1, %v7269_v11  ;;  %1228 = vmatprep.mubr.f32.mxu0 %v10570_v36 }
  0xb9   : > { %1067 = vmatprep.mubr.f32.mxu1 %v10570_v36 }
  0xbb   : > { %4728 = vmatmul.mubr.msk.f32.gmra.mrb[64].mxu0 %vm484_vm1, %v7133_v60 }
  0xbc   : > { %4710 = vmatmul.mubr.msk.f32.gmra.mrb[64].mxu1 %vm484_vm1, %v7020_v39  ;;  %1234 = vmatprep.mubr.f32.mxu0 %v10570_v36 }
  0xbd   : > { %1073 = vmatprep.mubr.f32.mxu1 %v10570_v36 }
  0xbf   : > { %4729 = vmatmul.mubr.msk.f32.gmra.mrb[66].mxu0 %vm484_vm1, %v7142_v61 }
  0xc0   : > { %4711 = vmatmul.mubr.msk.f32.gmra.mrb[66].mxu1 %vm484_vm1, %v7039_v42  ;;  %1240 = vmatprep.mubr.f32.mxu0 %v10570_v36 }
  0xc1   : > { %1079 = vmatprep.mubr.f32.mxu1 %v10570_v36 }
  0xc3   : > { %4730 = vmatmul.mubr.msk.f32.gmra.mrb[68].mxu0 %vm484_vm1, %v7152_v62 }
  0xc4   : > { %4712 = vmatmul.mubr.msk.f32.gmra.mrb[68].mxu1 %vm484_vm1, %v7052_v45  ;;  %1246 = vmatprep.mubr.f32.mxu0 %v10570_v36 }
  0xc5   : > { %1085 = vmatprep.mubr.f32.mxu1 %v10570_v36 }
  0xc7   : > { %4731 = vmatmul.mubr.msk.f32.gmra.mrb[70].mxu0 %vm484_vm1, %v7161_v63 }
  0xc8   : > { %4713 = vmatmul.mubr.msk.f32.gmra.mrb[70].mxu1 %vm484_vm1, %v7075_v51  ;;  %1252 = vmatprep.mubr.f32.mxu0 %v10570_v36 }
  0xc9   : > { %1091 = vmatprep.mubr.f32.mxu1 %v10570_v36 }
  0xcb   : > { %4732 = vmatmul.mubr.msk.f32.gmra.mrb[72].mxu0 %vm484_vm1, %v7170_v0 }
  0xcc   : > { %4714 = vmatmul.mubr.msk.f32.gmra.mrb[72].mxu1 %vm484_vm1, %v7089_v53  ;;  %1258 = vmatprep.mubr.f32.mxu0 %v10570_v36 }
  0xcd   : > { %1097 = vmatprep.mubr.f32.mxu1 %v10570_v36 }
  0xcf   : > { %4733 = vmatmul.mubr.msk.f32.gmra.mrb[74].mxu0 %vm484_vm1, %v7179_v1 }
  0xd0   : > { %4715 = vmatmul.mubr.msk.f32.gmra.mrb[74].mxu1 %vm484_vm1, %v7101_v55  ;;  %1264 = vmatprep.mubr.f32.mxu0 %v10570_v36 }
  0xd1   : > { %1103 = vmatprep.mubr.f32.mxu1 %v10570_v36 }
  0xd3   : > { %4734 = vmatmul.mubr.msk.f32.gmra.mrb[76].mxu0 %vm484_vm1, %v7188_v2 }
  0xd4   : > { %4716 = vmatmul.mubr.msk.f32.gmra.mrb[76].mxu1 %vm484_vm1, %v7113_v57  ;;  %1270 = vmatprep.mubr.f32.mxu0 %v10570_v36 }
  0xd5   : > { %1109 = vmatprep.mubr.f32.mxu1 %v10570_v36 }
  0xd7   : > { %4735 = vmatmul.mubr.msk.f32.gmra.mrb[78].mxu0 %vm484_vm1, %v7197_v3 }
  0xd8   : > { %4717 = vmatmul.mubr.msk.f32.gmra.mrb[78].mxu1 %vm484_vm1, %v7125_v59  ;;  %1276 = vmatprep.mubr.f32.mxu0 %v10570_v36 }
  0xd9   : > { %1437 = vmatprep.mubr.f32.mxu1 %v10570_v36 }
  0xdb   : > { %4736 = vmatmul.mubr.msk.f32.gmra.mrb[80].mxu0 %vm484_vm1, %v7206_v4 }
  0xdc   : > { %4754 = vmatmul.mubr.msk.f32.vlgmr.msra.gmra.mrb[80].mxu1 %vm484_vm1, %v7015_v38  ;;  %1282 = vmatprep.mubr.f32.mxu0 %v10570_v36 }
  0xdd   : > { %1443 = vmatprep.mubr.f32.mxu1 %v10570_v36 }
  0xdf   : > { %4737 = vmatmul.mubr.msk.f32.gmra.mrb[82].mxu0 %vm484_vm1, %v7215_v5 }
  0xe0   : > { %4755 = vmatmul.mubr.msk.f32.gmra.mrb[82].mxu1 %vm484_vm1, %v7031_v40  ;;  %1288 = vmatprep.mubr.f32.mxu0 %v10570_v36 }
  0xe1   : > { %1449 = vmatprep.mubr.f32.mxu1 %v10570_v36 }
  0xe3   : > { %4738 = vmatmul.mubr.msk.f32.gmra.mrb[84].mxu0 %vm484_vm1, %v7224_v6 }
  0xe4   : > { %4756 = vmatmul.mubr.msk.f32.gmra.mrb[84].mxu1 %vm484_vm1, %v7048_v44  ;;  %1294 = vmatprep.mubr.f32.mxu0 %v10570_v36 }
  0xe5   : > { %1455 = vmatprep.mubr.f32.mxu1 %v10570_v36 }
  0xe7   : > { %4739 = vmatmul.mubr.msk.f32.gmra.mrb[86].mxu0 %vm484_vm1, %v7233_v7 }
  0xe8   : > { %4757 = vmatmul.mubr.msk.f32.gmra.mrb[86].mxu1 %vm484_vm1, %v7071_v50  ;;  %1300 = vmatprep.mubr.f32.mxu0 %v10570_v36 }
  0xe9   : > { %1461 = vmatprep.mubr.f32.mxu1 %v10570_v36 }
  0xeb   : > { %4740 = vmatmul.mubr.msk.f32.gmra.mrb[88].mxu0 %vm484_vm1, %v7242_v8 }
  0xec   : > { %4758 = vmatmul.mubr.msk.f32.gmra.mrb[88].mxu1 %vm484_vm1, %v7085_v52  ;;  %1306 = vmatprep.mubr.f32.mxu0 %v10570_v36 }
  0xed   : > { %1467 = vmatprep.mubr.f32.mxu1 %v10570_v36 }
  0xef   : > { %4741 = vmatmul.mubr.msk.f32.gmra.mrb[90].mxu0 %vm484_vm1, %v7251_v9 }
  0xf0   : > { %4759 = vmatmul.mubr.msk.f32.gmra.mrb[90].mxu1 %vm484_vm1, %v7097_v54  ;;  %1312 = vmatprep.mubr.f32.mxu0 %v10570_v36 }
  0xf1   : > { %1473 = vmatprep.mubr.f32.mxu1 %v10570_v36 }
  0xf3   : > { %4742 = vmatmul.mubr.msk.f32.gmra.mrb[92].mxu0 %vm484_vm1, %v7260_v10 }
  0xf4   : > { %4760 = vmatmul.mubr.msk.f32.gmra.mrb[92].mxu1 %vm484_vm1, %v7109_v56  ;;  %1318 = vmatprep.mubr.f32.mxu0 %v10570_v36 }
  0xf5   : > { %1479 = vmatprep.mubr.f32.mxu1 %v10570_v36 }
  0xf7   : > { %4743 = vmatmul.mubr.msk.f32.gmra.mrb[94].mxu0 %vm484_vm1, %v7269_v11 }
  0xf8   : > { %4761 = vmatmul.mubr.msk.f32.gmra.mrb[94].mxu1 %vm484_vm1, %v7121_v58  ;;  %1324 = vmatprep.mubr.f32.mxu0 %v10570_v36 }
  0xf9   : > { %1485 = vmatprep.mubr.f32.mxu1 %v10570_v36 }
  0xfb   : > { %4744 = vmatmul.mubr.msk.f32.gmra.mrb[96].mxu0 %vm484_vm1, %v7020_v39 }
  0xfc   : > { %4762 = vmatmul.mubr.msk.f32.gmra.mrb[96].mxu1 %vm484_vm1, %v7133_v60  ;;  %1330 = vmatprep.mubr.f32.mxu0 %v10570_v36 }
  0xfd   : > { %1491 = vmatprep.mubr.f32.mxu1 %v10570_v36 }
  0xff   : > { %4745 = vmatmul.mubr.msk.f32.gmra.mrb[98].mxu0 %vm484_vm1, %v7039_v42 }
 0x100   : > { %4763 = vmatmul.mubr.msk.f32.gmra.mrb[98].mxu1 %vm484_vm1, %v7142_v61  ;;  %1336 = vmatprep.mubr.f32.mxu0 %v10570_v36 }
 0x101   : > { %1497 = vmatprep.mubr.f32.mxu1 %v10570_v36 }
 0x103   : > { %4746 = vmatmul.mubr.msk.f32.gmra.mrb[100].mxu0 %vm484_vm1, %v7052_v45 }
 0x104   : > { %4764 = vmatmul.mubr.msk.f32.gmra.mrb[100].mxu1 %vm484_vm1, %v7152_v62  ;;  %1342 = vmatprep.mubr.f32.mxu0 %v10570_v36 }
 0x105   : > { %1503 = vmatprep.mubr.f32.mxu1 %v10570_v36 }
 0x107   : > { %4747 = vmatmul.mubr.msk.f32.gmra.mrb[102].mxu0 %vm484_vm1, %v7075_v51 }
 0x108   : > { %4765 = vmatmul.mubr.msk.f32.gmra.mrb[102].mxu1 %vm484_vm1, %v7161_v63  ;;  %1348 = vmatprep.mubr.f32.mxu0 %v10570_v36 }
 0x109   : > { %1509 = vmatprep.mubr.f32.mxu1 %v10570_v36 }
 0x10b   : > { %4748 = vmatmul.mubr.msk.f32.gmra.mrb[104].mxu0 %vm484_vm1, %v7089_v53 }
 0x10c   : > { %4766 = vmatmul.mubr.msk.f32.gmra.mrb[104].mxu1 %vm484_vm1, %v7170_v0  ;;  %1354 = vmatprep.mubr.f32.mxu0 %v10570_v36 }
 0x10d   : > { %1515 = vmatprep.mubr.f32.mxu1 %v10570_v36 }
 0x10e   : > { %v668_v19 = vpop.f32.mrb[0].mxu0 }
 0x10f   : > { %v7474_v20 = vadd.f32 %v668_v19, %v7462_v17  ;;  %v670_v21 = vpop.f32.mrb[1].mxu0  ;;  %4749 = vmatmul.mubr.msk.f32.gmra.mrb[106].mxu0 %vm484_vm1, %v7101_v55  ;;  %v812_v22 = vpop.f32.mrb[0].mxu1 }
 0x110   : > { %v7479_v23 = vadd.f32 %v670_v21, %v7470_v18  ;;  %4767 = vmatmul.mubr.msk.f32.gmra.mrb[106].mxu1 %vm484_vm1, %v7179_v1  ;;  %1360 = vmatprep.mubr.f32.mxu0 %v10570_v36  ;;  %v7485_v24 = vadd.f32 %v812_v22, %v7462_v17  ;;  %v814_v25 = vpop.f32.mrb[1].mxu1 }
 0x111   : > { %v4820_v26 = vmul.f32 -1.442695, %v7474_v20  ;;  %1521 = vmatprep.mubr.f32.mxu1 %v10570_v36  ;;  %v7490_v27 = vadd.f32 %v814_v25, %v7470_v18 }
 0x112   : > { %v4821_v28 = vmul.f32 -1.442695, %v7479_v23  ;;  %v674_v29 = vpop.f32.mrb[2].mxu0  ;;  %v5060_v30 = vmul.f32 -1.442695, %v7485_v24 }
 0x113   : > { %10605 = vst [vmem:[#allocation5_spill] sm:$0xff] %v7490_v27  ;;  %5516 = vpow2.f32 %v4820_v26  ;;  %v7495_v31 = vadd.f32 %v674_v29, %v7462_v17  ;;  %v676_v32 = vpop.f32.mrb[3].mxu0  ;;  %4750 = vmatmul.mubr.msk.f32.gmra.mrb[108].mxu0 %vm484_vm1, %v7113_v57  ;;  %v5061_v33 = vmul.f32 -1.442695, %v7490_v27  ;;  %v818_v34 = vpop.f32.mrb[2].mxu1 }
 0x114   : > { %5518 = vpow2.f32 %v4821_v28  ;;  %v7501_v35 = vadd.f32 %v676_v32, %v7470_v18  ;;  %4768 = vmatmul.mubr.msk.f32.gmra.mrb[108].mxu1 %vm484_vm1, %v7188_v2  ;;  %1366 = vmatprep.mubr.f32.mxu0 %v10570_v36  ;;  %v7507_v37 = vadd.f32 %v818_v34, %v7462_v17  ;;  %v820_v39 = vpop.f32.mrb[3].mxu1 }
 0x115   : > { %v4830_v41 = vmul.f32 -1.442695, %v7495_v31  ;;  %1527 = vmatprep.mubr.f32.mxu1 %v10570_v36  ;;  %5520 = vpow2.f32 %v5060_v30  ;;  %v7512_v42 = vadd.f32 %v820_v39, %v7470_v18 }
 0x116   : > { %v4831_v43 = vmul.f32 -1.442695, %v7501_v35  ;;  %v680_v45 = vpop.f32.mrb[4].mxu0  ;;  %5522 = vpow2.f32 %v5061_v33  ;;  %v5070_v46 = vmul.f32 -1.442695, %v7507_v37 }
 0x117   : > { %10606 = vst [vmem:[#allocation6_spill] sm:$0xff] %v7512_v42  ;;  %5524 = vpow2.f32 %v4830_v41  ;;  %v7517_v47 = vadd.f32 %v680_v45, %v7462_v17  ;;  %v682_v48 = vpop.f32.mrb[5].mxu0  ;;  %4751 = vmatmul.mubr.msk.f32.gmra.mrb[110].mxu0 %vm484_vm1, %v7125_v59  ;;  %v5071_v49 = vmul.f32 -1.442695, %v7512_v42  ;;  %v824_v51 = vpop.f32.mrb[4].mxu1 }
 0x118   : > { %5526 = vpow2.f32 %v4831_v43  ;;  %v7523_v53 = vadd.f32 %v682_v48, %v7470_v18  ;;  %4769 = vmatmul.mubr.msk.f32.gmra.mrb[110].mxu1 %vm484_vm1, %v7197_v3  ;;  %1694 = vmatprep.mubr.f32.mxu0 %v10570_v36  ;;  %v7529_v55 = vadd.f32 %v824_v51, %v7462_v17  ;;  %v826_v57 = vpop.f32.mrb[5].mxu1 }
 0x119   : > { %v4840_v63 = vmul.f32 -1.442695, %v7517_v47  ;;  %1533 = vmatprep.mubr.f32.mxu1 %v10570_v36  ;;  %5528 = vpow2.f32 %v5070_v46  ;;  %v7534_v59 = vadd.f32 %v826_v57, %v7470_v18 }
 0x11a   : > { %v4841_v0 = vmul.f32 -1.442695, %v7523_v53  ;;  %v686_v1 = vpop.f32.mrb[6].mxu0  ;;  %5530 = vpow2.f32 %v5071_v49  ;;  %v5080_v2 = vmul.f32 -1.442695, %v7529_v55 }
 0x11b   : > { %10607 = vst [vmem:[#allocation7_spill] sm:$0xff] %v7534_v59  ;;  %5532 = vpow2.f32 %v4840_v63  ;;  %v7539_v3 = vadd.f32 %v686_v1, %v7462_v17  ;;  %v688_v12 = vpop.f32.mrb[7].mxu0  ;;  %4788 = vmatmul.mubr.msk.f32.vlgmr.msra.gmra.mrb[112].mxu0 %vm484_vm1, %v7015_v38  ;;  %v5081_v19 = vmul.f32 -1.442695, %v7534_v59  ;;  %v7544_v21 = vpop.f32.mrb[6].mxu1 }
 0x11c   : > { %5534 = vpow2.f32 %v4841_v0  ;;  %v7547_v22 = vadd.f32 %v688_v12, %v7470_v18  ;;  %4770 = vmatmul.mubr.msk.f32.gmra.mrb[112].mxu1 %vm484_vm1, %v7206_v4  ;;  %1700 = vmatprep.mubr.f32.mxu0 %v10570_v36  ;;  %v7552_v25 = vpop.f32.mrb[7].mxu1 }
 0x11d   : > { %v5517_v26 = vpop.eup %5516  ;;  %v4850_v28 = vmul.f32 -1.442695, %v7539_v3  ;;  %1539 = vmatprep.mubr.f32.mxu1 %v10570_v36  ;;  %5536 = vpow2.f32 %v5080_v2 }
 0x11e   : > { %v5519_v38 = vpop.eup %5518  ;;  %v2847_v29 = vadd.f32 1.0, %v5517_v26  ;;  %v4851_v30 = vmul.f32 -1.442695, %v7547_v22  ;;  %v692_v32 = vpop.f32.mrb[8].mxu0  ;;  %5538 = vpow2.f32 %v5081_v19 }
 0x11f   : > { %v7557_v33 = vpop.eup %5520  ;;  %v2848_v34 = vadd.f32 1.0, %v5519_v38  ;;  %5540 = vpow2.f32 %v4850_v28  ;;  %v7560_v4 = vadd.f32 %v692_v32, %v7462_v17  ;;  %v694_v39 = vpop.f32.mrb[9].mxu0  ;;  %4789 = vmatmul.mubr.msk.f32.gmra.mrb[114].mxu0 %vm484_vm1, %v7031_v40 }
 0x120   : > { %v7564_v41 = vpop.f32.mrb[8].mxu1  ;;  %v7566_v43 = vpop.eup %5522  ;;  %5542 = vrcp.f32 %v2847_v29  ;;  %v7569_v45 = vadd.f32 %v694_v39, %v7470_v18  ;;  %4771 = vmatmul.mubr.msk.f32.gmra.mrb[114].mxu1 %vm484_vm1, %v7215_v5  ;;  %1706 = vmatprep.mubr.f32.mxu0 %v10570_v36 }
 0x121   : > { %v7574_v46 = vpop.f32.mrb[9].mxu1  ;;  %v5525_v48 = vpop.eup %5524  ;;  %5544 = vrcp.f32 %v2848_v34  ;;  %v4860_v49 = vmul.f32 -1.442695, %v7560_v4  ;;  %1545 = vmatprep.mubr.f32.mxu1 %v10570_v36 }
 0x122   : > { %v5527_v40 = vpop.eup %5526  ;;  %v2857_v51 = vadd.f32 1.0, %v5525_v48  ;;  %5546 = vpow2.f32 %v4851_v30  ;;  %v4861_v57 = vmul.f32 -1.442695, %v7569_v45  ;;  %v698_v63 = vpop.f32.mrb[10].mxu0 }
 0x123   : > { %v7579_v0 = vpop.eup %5528  ;;  %v2858_v1 = vadd.f32 1.0, %v5527_v40  ;;  %5548 = vpow2.f32 %v4860_v49  ;;  %v7582_v5 = vadd.f32 %v698_v63, %v7462_v17  ;;  %v700_v2 = vpop.f32.mrb[11].mxu0  ;;  %4790 = vmatmul.mubr.msk.f32.gmra.mrb[116].mxu0 %vm484_vm1, %v7048_v44 }
 0x124   : > { %v7586_v12 = vpop.f32.mrb[10].mxu1  ;;  %v7588_v19 = vpop.eup %5530  ;;  %5550 = vrcp.f32 %v2857_v51  ;;  %v7591_v26 = vadd.f32 %v700_v2, %v7470_v18  ;;  %4772 = vmatmul.mubr.msk.f32.gmra.mrb[116].mxu1 %vm484_vm1, %v7224_v6  ;;  %1712 = vmatprep.mubr.f32.mxu0 %v10570_v36 }
 0x125   : > { %v7596_v28 = vpop.f32.mrb[11].mxu1  ;;  %v5533_v38 = vpop.eup %5532  ;;  %5552 = vrcp.f32 %v2858_v1  ;;  %v4870_v29 = vmul.f32 -1.442695, %v7582_v5  ;;  %1551 = vmatprep.mubr.f32.mxu1 %v10570_v36 }
 0x126   : > { %v5535_v44 = vpop.eup %5534  ;;  %v2867_v30 = vadd.f32 1.0, %v5533_v38  ;;  %5554 = vpow2.f32 %v4861_v57  ;;  %v4871_v32 = vmul.f32 -1.442695, %v7591_v26  ;;  %v704_v34 = vpop.f32.mrb[12].mxu0 }
 0x127   : > { %v7601_v39 = vpop.eup %5536  ;;  %v2868_v48 = vadd.f32 1.0, %v5535_v44  ;;  %5556 = vpow2.f32 %v4870_v29  ;;  %v7604_v6 = vadd.f32 %v704_v34, %v7462_v17  ;;  %v706_v49 = vpop.f32.mrb[13].mxu0  ;;  %4791 = vmatmul.mubr.msk.f32.gmra.mrb[118].mxu0 %vm484_vm1, %v7071_v50 }
 0x128   : > { %v7608_v40 = vpop.f32.mrb[12].mxu1  ;;  %v7610_v51 = vpop.eup %5538  ;;  %5558 = vrcp.f32 %v2867_v30  ;;  %v7613_v57 = vadd.f32 %v706_v49, %v7470_v18  ;;  %4773 = vmatmul.mubr.msk.f32.gmra.mrb[118].mxu1 %vm484_vm1, %v7233_v7  ;;  %1718 = vmatprep.mubr.f32.mxu0 %v10570_v36  ;;  %v3087_v30 = vadd.f32 1.0, %v7557_v33 }
 0x129   : > { %v7618_v63 = vpop.f32.mrb[13].mxu1  ;;  %v5541_v1 = vpop.eup %5540  ;;  %5560 = vrcp.f32 %v2868_v48  ;;  %v4880_v2 = vmul.f32 -1.442695, %v7604_v6  ;;  %1557 = vmatprep.mubr.f32.mxu1 %v10570_v36 }
 0x12a   : > { %v5543_v50 = vpop.eup %5542  ;;  %v2877_v38 = vadd.f32 1.0, %v5541_v1  ;;  %5562 = vpow2.f32 %v4871_v32  ;;  %v4881_v29 = vmul.f32 -1.442695, %v7613_v57  ;;  %v710_v44 = vpop.f32.mrb[14].mxu0 }
 0x12b   : > { %v5545_v34 = vpop.eup %5544  ;;  %5564 = vpow2.f32 %v4880_v2  ;;  %v7625_v7 = vadd.f32 %v710_v44, %v7462_v17  ;;  %v712_v49 = vpop.f32.mrb[15].mxu0  ;;  %4792 = vmatmul.mubr.msk.f32.gmra.mrb[120].mxu0 %vm484_vm1, %v7085_v52 }
 0x12c   : > { %v7629_v48 = vpop.f32.mrb[14].mxu1  ;;  %v5547_v16 = vpop.eup %5546  ;;  %5566 = vrcp.f32 %v2877_v38  ;;  %v7632_v32 = vadd.f32 %v712_v49, %v7470_v18  ;;  %4774 = vmatmul.mubr.msk.f32.gmra.mrb[120].mxu1 %vm484_vm1, %v7242_v8  ;;  %1724 = vmatprep.mubr.f32.mxu0 %v10570_v36  ;;  %v3807_v8 = vmul.f32 %v5543_v50, %v7474_v20 }
 0x12d   : > { %v7637_v33 = vpop.f32.mrb[15].mxu1  ;;  %v5549_v1 = vpop.eup %5548  ;;  %v2878_v2 = vadd.f32 1.0, %v5547_v16  ;;  %5568 = vpow2.f32 %v4881_v29  ;;  %v4890_v44 = vmul.f32 -1.442695, %v7625_v7  ;;  %1563 = vmatprep.mubr.f32.mxu1 %v10570_v36  ;;  %v3808_v36 = vmul.f32 %v5545_v34, %v7479_v23 }
 0x12e   : > { %v5551_v52 = vpop.eup %5550  ;;  %v2887_v14 = vadd.f32 1.0, %v5549_v1  ;;  %v4891_v38 = vmul.f32 -1.442695, %v7632_v32  ;;  %v716_v49 = vpop.f32.mrb[16].mxu0  ;;  %5570 = vrcp.f32 %v3087_v30 }
 0x12f   : > { %v5553_v59 = vpop.eup %5552  ;;  %v3817_v42 = vmul.f32 %v5551_v52, %v7495_v31  ;;  %5572 = vrcp.f32 %v2878_v2  ;;  %v7645_v27 = vadd.f32 %v716_v49, %v7462_v17  ;;  %v718_v16 = vpop.f32.mrb[17].mxu0  ;;  %4793 = vmatmul.mubr.msk.f32.gmra.mrb[122].mxu0 %vm484_vm1, %v7097_v54  ;;  %v10608_v31 = vmov 0.0  }
 0x130   : > { %v7649_v29 = vpop.f32.mrb[16].mxu1  ;;  %v5555_v1 = vpop.eup %5554  ;;  %v3818_v30 = vmul.f32 %v5553_v59, %v7501_v35  ;;  %5574 = vrcp.f32 %v2887_v14  ;;  %v7654_v20 = vadd.f32 %v718_v16, %v7470_v18  ;;  %4775 = vmatmul.mubr.msk.f32.gmra.mrb[122].mxu1 %vm484_vm1, %v7251_v9  ;;  %1730 = vmatprep.mubr.f32.mxu0 %v10608_v31 }
 0x131   : > { %v7659_v50 = vpop.f32.mrb[17].mxu1  ;;  %v5557_v2 = vpop.eup %5556  ;;  %v5148_v54 = vpack.c.bf16 %v3817_v42, %v3807_v8  ;;  %v2888_v52 = vadd.f32 1.0, %v5555_v1  ;;  %5576 = vpow2.f32 %v4890_v44  ;;  %v4900_v49 = vmul.f32 -1.442695, %v7645_v27  ;;  %1569 = vmatprep.mubr.f32.mxu1 %v10608_v31 }
 0x132   : > { %10609 = vst [vmem:[#allocation8_spill] sm:$0xff] %v7659_v50  ;;  %v5559_v23 = vpop.eup %5558  ;;  %v2897_v14 = vadd.f32 1.0, %v5557_v2  ;;  %5578 = vpow2.f32 %v4891_v38  ;;  %v4901_v35 = vmul.f32 -1.442695, %v7654_v20  ;;  %v722_v59 = vpop.f32.mrb[18].mxu0  ;;  %v5146_v34 = vpack.c.bf16 %v3818_v30, %v3808_v36 }
 0x133   : > { %v5561_v9 = vpop.eup %5560  ;;  %5580 = vrcp.f32 %v2888_v52  ;;  %v7665_v16 = vadd.f32 %v722_v59, %v7462_v17  ;;  %v724_v50 = vpop.f32.mrb[19].mxu0  ;;  %4794 = vmatmul.mubr.msk.f32.gmra.mrb[124].mxu0 %vm484_vm1, %v7109_v56  ;;  %v3088_v1 = vadd.f32 1.0, %v7566_v43 }
 0x134   : > { %v7669_v42 = vpop.f32.mrb[18].mxu1  ;;  %v5563_v44 = vpop.eup %5562  ;;  %5582 = vrcp.f32 %v2897_v14  ;;  %4776 = vmatmul.mubr.msk.f32.gmra.mrb[124].mxu1 %vm484_vm1, %v7260_v10  ;;  %5147 = vmatprep.subr.bf16.mxu1 %v5146_v34  ;;  %v7677_v30 = vadd.f32 %v724_v50, %v7470_v18  ;;  %v3827_v14 = vmul.f32 %v5559_v23, %v7517_v47  ;;  %v3097_v34 = vadd.f32 1.0, %v7579_v0 }
 0x135   : > { %v7673_v38 = vpop.f32.mrb[19].mxu1  ;;  %v5565_v36 = vpop.eup %5564  ;;  %v2898_v8 = vadd.f32 1.0, %v5563_v44  ;;  %5584 = vpow2.f32 %v4900_v49  ;;  %5149 = vmatpush1.bf16.msra.mxu1 %v5148_v54  ;;  %1736 = vmatprep.mubr.f32.mxu0 %v10608_v31  ;;  %v4910_v43 = vmul.f32 -1.442695, %v7665_v16  ;;  %v3828_v0 = vmul.f32 %v5561_v9, %v7523_v53  ;;  %v7712_v53 = vld [vmem:[%s7003_s7 + $0xc0] sm:$0xff] }
 0x136   : > { %v5567_v56 = vpop.eup %5566  ;;  %v2907_v2 = vadd.f32 1.0, %v5565_v36  ;;  %5586 = vpow2.f32 %v4901_v35  ;;  %v728_v52 = vpop.f32.mrb[20].mxu0  ;;  %1575 = vmatprep.mubr.f32.mxu1 %v10608_v31 }
 0x137   : > { %v5569_v10 = vpop.eup %5568  ;;  %v3837_v59 = vmul.f32 %v5567_v56, %v7539_v3  ;;  %5588 = vrcp.f32 %v2898_v8  ;;  %v730_v49 = vpop.f32.mrb[21].mxu0  ;;  %4795 = vmatmul.mubr.msk.f32.gmra.mrb[126].mxu0 %vm484_vm1, %v7121_v58  ;;  %v4911_v58 = vmul.f32 -1.442695, %v7677_v30  ;;  %v7698_v44 = vadd.f32 %v728_v52, %v7462_v17 }
 0x138   : > { %v7686_v50 = vpop.f32.mrb[20].mxu1  ;;  %v7688_v54 = vpop.eup %5570  ;;  %5590 = vrcp.f32 %v2907_v2  ;;  %v2908_v35 = vadd.f32 1.0, %v5569_v10  ;;  %4777 = vmatmul.mubr.msk.f32.gmra.mrb[126].mxu1 %vm484_vm1, %v7269_v11  ;;  %1742 = vmatprep.mubr.f32.mxu0 %v10608_v31  ;;  %v3098_v2 = vadd.f32 1.0, %v7588_v19 }
 0x139   : > { %v7694_v47 = vpop.f32.mrb[21].mxu1  ;;  %v5573_v3 = vpop.eup %5572  ;;  %v5152_v23 = vpack.c.bf16 %v3837_v59, %v3827_v14  ;;  %5592 = vrcp.f32 %v3088_v1  ;;  %1581 = vmatprep.mubr.f32.mxu1 %v10608_v31  ;;  %v7709_v59 = vadd.f32 %v730_v49, %v7470_v18  ;;  %v7723_v49 = vadd.f32 %v7544_v21, %v7462_v17 }
 0x13a   : > { %v5575_v36 = vpop.eup %5574  ;;  %v3838_v11 = vmul.f32 %v5573_v3, %v7547_v22  ;;  %5594 = vrcp.f32 %v2908_v35  ;;  %v734_v8 = vpop.f32.mrb[22].mxu0 }
 0x13b   : > { %v5577_v56 = vpop.eup %5576  ;;  %5596 = vpow2.f32 %v4910_v43  ;;  %v736_v1 = vpop.f32.mrb[23].mxu0  ;;  %4796 = vmatmul.mubr.msk.f32.gmra.mrb[128].mxu0 %vm484_vm1, %v7133_v60  ;;  %v4920_v43 = vmul.f32 -1.442695, %v7698_v44 }
 0x13c   : > { %v7706_v52 = vpop.f32.mrb[22].mxu1  ;;  %v5579_v10 = vpop.eup %5578  ;;  %v2917_v14 = vadd.f32 1.0, %v5577_v56  ;;  %5598 = vrcp.f32 %v3097_v34  ;;  %4778 = vmatmul.mubr.msk.f32.gmra.mrb[128].mxu1 %vm484_vm1, %v7712_v53  ;;  %v5150_v22 = vpack.c.bf16 %v3838_v11, %v3828_v0  ;;  %1748 = vmatprep.mubr.f32.mxu0 %v10608_v31  ;;  %v3847_v0 = vmul.f32 %v5575_v36, %v7560_v4 }
 0x13d   : > { %v7717_v19 = vpop.f32.mrb[23].mxu1  ;;  %v5581_v9 = vpop.eup %5580  ;;  %v2918_v60 = vadd.f32 1.0, %v5579_v10  ;;  %5600 = vpow2.f32 %v4911_v58  ;;  %1587 = vmatprep.mubr.f32.mxu1 %v10608_v31  ;;  %v7728_v58 = vadd.f32 %v734_v8, %v7462_v17  ;;  %v7737_v4 = vadd.f32 %v7552_v25, %v7470_v18 }
 0x13e   : > { %v5583_v35 = vpop.eup %5582  ;;  %5602 = vrcp.f32 %v2917_v14  ;;  %5151 = vmatprep.subr.bf16.mxu1 %v5150_v22  ;;  %v740_v34 = vpop.f32.mrb[24].mxu0  ;;  %v4921_v22 = vmul.f32 -1.442695, %v7709_v59  ;;  %v3848_v25 = vmul.f32 %v5581_v9, %v7569_v45  ;;  %v7768_v9 = vld [vmem:[%s7003_s7 + $0xd0] sm:$0xff] }
 0x13f   : > { %v5585_v3 = vpop.eup %5584  ;;  %v3857_v11 = vmul.f32 %v5583_v35, %v7582_v5  ;;  %5604 = vrcp.f32 %v2918_v60  ;;  %5153 = vmatpush1.bf16.msra.mxu1 %v5152_v23  ;;  %v742_v56 = vpop.f32.mrb[25].mxu0  ;;  %4797 = vmatmul.mubr.msk.f32.gmra.mrb[130].mxu0 %vm484_vm1, %v7142_v61  ;;  %10611 = vst [vmem:[#allocation10_spill] sm:$0xff] %v7737_v4  ;;  %v7740_v5 = vld [vmem:[%s7003_s7 + $0xc8] sm:$0xff] }
 0x140   : > { %v7732_v10 = vpop.f32.mrb[24].mxu1  ;;  %v5587_v21 = vpop.eup %5586  ;;  %v2927_v14 = vadd.f32 1.0, %v5585_v3  ;;  %5606 = vrcp.f32 %v3098_v2  ;;  %10612 = vst [vmem:[#allocation11_spill] sm:$0xff] %v7740_v5  ;;  %4779 = vmatmul.mubr.msk.f32.gmra.mrb[130].mxu1 %vm484_vm1, %v7740_v5  ;;  %1754 = vmatprep.mubr.f32.mxu0 %v10608_v31  ;;  %v3107_v2 = vadd.f32 1.0, %v7601_v39  ;;  %v3108_v3 = vadd.f32 1.0, %v7610_v51 }
 0x141   : > { %10610 = vst [vmem:[#allocation9_spill] sm:$0xff] %v7732_v10  ;;  %v7745_v23 = vpop.f32.mrb[25].mxu1  ;;  %v5589_v61 = vpop.eup %5588  ;;  %v5156_v36 = vpack.c.bf16 %v3857_v11, %v3847_v0  ;;  %v2928_v8 = vadd.f32 1.0, %v5587_v21  ;;  %5608 = vpow2.f32 %v4920_v43  ;;  %1593 = vmatprep.mubr.f32.mxu1 %v10608_v31  ;;  %v4930_v0 = vmul.f32 -1.442695, %v7728_v58 }
 0x142   : > { %10613 = vst [vmem:[#allocation12_spill] sm:$0xff] %v7745_v23  ;;  %v5591_v60 = vpop.eup %5590  ;;  %v3858_v35 = vmul.f32 %v5589_v61, %v7591_v26  ;;  %5610 = vrcp.f32 %v2927_v14  ;;  %v746_v10 = vpop.f32.mrb[26].mxu0  ;;  %v7756_v43 = vadd.f32 %v736_v1, %v7470_v18  ;;  %v7765_v51 = vadd.f32 %v740_v34, %v7462_v17  ;;  %v6805_v23 = vld [vmem:[%s7003_s7 + $0x70] sm:$0xff] }
 0x143   : > { %v7752_v5 = vpop.eup %5592  ;;  %5612 = vrcp.f32 %v2928_v8  ;;  %v7758_v39 = vpop.f32.mrb[27].mxu0  ;;  %4798 = vmatmul.mubr.msk.f32.gmra.mrb[132].mxu0 %vm484_vm1, %v7152_v62  ;;  %v7777_v62 = vmul.f32 %v7688_v54, %v7485_v24  ;;  %v5090_v34 = vmul.f32 -1.442695, %v7723_v49  ;;  %v5091_v61 = vmul.f32 -1.442695, %v7737_v4 }
 0x144   : > { %v7762_v45 = vpop.f32.mrb[26].mxu1  ;;  %v5595_v26 = vpop.eup %5594  ;;  %5614 = vpow2.f32 %v4921_v22  ;;  %4780 = vmatmul.mubr.msk.f32.gmra.mrb[132].mxu1 %vm484_vm1, %v7768_v9  ;;  %v5154_v11 = vpack.c.bf16 %v3858_v35, %v3848_v25  ;;  %1760 = vmatprep.mubr.f32.mxu0 %v10608_v31  ;;  %v4931_v24 = vmul.f32 -1.442695, %v7756_v43  ;;  %v7789_v54 = vadd.f32 %v742_v56, %v7470_v18 }
 0x145   : > { %10614 = vst [vmem:[#allocation13_spill] sm:$0xff] %v7762_v45  ;;  %v7773_v1 = vpop.f32.mrb[27].mxu1  ;;  %v5597_v21 = vpop.eup %5596  ;;  %10616 = vst [vmem:[#allocation15_spill] sm:$0xff] %v7777_v62  ;;  %5616 = vrcp.f32 %v3107_v2  ;;  %1599 = vmatprep.mubr.f32.mxu1 %v10608_v31 }
 0x146   : > { %10615 = vst [vmem:[#allocation14_spill] sm:$0xff] %v7773_v1  ;;  %v5599_v14 = vpop.eup %5598  ;;  %v2937_v22 = vadd.f32 1.0, %v5597_v21  ;;  %5618 = vrcp.f32 %v3108_v3  ;;  %5155 = vmatprep.subr.bf16.mxu1 %v5154_v11  ;;  %v7782_v8 = vpop.f32.mrb[28].mxu0  ;;  %v6799_v3 = vld [vmem:[%s7003_s7 + $0x58] sm:$0xff] }
 0x147   : > { %v5601_v25 = vpop.eup %5600  ;;  %v7785_v35 = vmul.f32 %v5599_v14, %v7507_v37  ;;  %5620 = vpow2.f32 %v4930_v0  ;;  %5157 = vmatpush1.bf16.msra.mxu1 %v5156_v36  ;;  %v7791_v2 = vpop.f32.mrb[29].mxu0  ;;  %4799 = vmatmul.mubr.msk.f32.gmra.mrb[134].mxu0 %vm484_vm1, %v6799_v3  ;;  %v4940_v37 = vmul.f32 -1.442695, %v7765_v51  ;;  %v7800_v0 = vadd.f32 %v7564_v41, %v7462_v17  ;;  %v7803_v14 = vld [vmem:[%s7003_s7 + $0xd8] sm:$0xff] }
 0x148   : > { %v7795_v11 = vpop.f32.mrb[28].mxu1  ;;  %v5603_v21 = vpop.eup %5602  ;;  %5622 = vrcp.f32 %v2937_v22  ;;  %v2938_v1 = vadd.f32 1.0, %v5601_v25  ;;  %4781 = vmatmul.mubr.msk.f32.gmra.mrb[134].mxu1 %vm484_vm1, %v7803_v14  ;;  %1766 = vmatprep.mubr.f32.mxu0 %v10608_v31  ;;  %v3867_v3 = vmul.f32 %v5591_v60, %v7604_v6  ;;  %v7821_v6 = vadd.f32 %v7574_v46, %v7470_v18 }
 0x149   : > { %10617 = vst [vmem:[#allocation16_spill] sm:$0xff] %v7785_v35  ;;  %10618 = vst [vmem:[#allocation17_spill] sm:$0xff] %v7795_v11  ;;  %v7808_v56 = vpop.f32.mrb[29].mxu1  ;;  %v5605_v36 = vpop.eup %5604  ;;  %v3877_v22 = vmul.f32 %v5603_v21, %v7625_v7  ;;  %5624 = vpow2.f32 %v5090_v34  ;;  %1605 = vmatprep.mubr.f32.mxu1 %v10608_v31  ;;  %v3868_v11 = vmul.f32 %v5595_v26, %v7613_v57  ;;  %v4941_v34 = vmul.f32 -1.442695, %v7789_v54  ;;  %v6801_v57 = vld [vmem:[%s7003_s7 + $0x60] sm:$0xff] }
 0x14a   : > { %10619 = vst [vmem:[#allocation18_spill] sm:$0xff] %v7808_v56  ;;  %v7815_v41 = vpop.eup %5606  ;;  %v3878_v45 = vmul.f32 %v5605_v36, %v7632_v32  ;;  %5626 = vrcp.f32 %v2938_v1  ;;  %10620 = vst [vmem:[#allocation19_spill] sm:$0xff] %v7821_v6  ;;  %v7823_v7 = vpop.f32.mrb[30].mxu0  ;;  %v7827_v25 = vadd.f32 %v746_v10, %v7462_v17  ;;  %v5100_v1 = vmul.f32 -1.442695, %v7800_v0  ;;  %v7837_v36 = vld [vmem:[%s7003_s7 + $0xe0] sm:$0xff] }
 0x14b   : > { %v5609_v60 = vpop.eup %5608  ;;  %v5160_v21 = vpack.c.bf16 %v3877_v22, %v3867_v3  ;;  %5628 = vpow2.f32 %v4931_v24  ;;  %v7829_v62 = vpop.f32.mrb[31].mxu0  ;;  %4800 = vmatmul.mubr.msk.f32.gmra.mrb[136].mxu0 %vm484_vm1, %v6801_v57  ;;  %10622 = vst [vmem:[#allocation21_spill] sm:$0xff] %v7837_v36  ;;  %v7846_v22 = vadd.f32 %v7586_v12, %v7462_v17  ;;  %v7857_v12 = vadd.f32 %v7758_v39, %v7470_v18 }
 0x14c   : > { %v7833_v32 = vpop.f32.mrb[30].mxu1  ;;  %v5611_v26 = vpop.eup %5610  ;;  %v2947_v46 = vadd.f32 1.0, %v5609_v60  ;;  %5630 = vpow2.f32 %v5091_v61  ;;  %4782 = vmatmul.mubr.msk.f32.gmra.mrb[136].mxu1 %vm484_vm1, %v7837_v36  ;;  %v5158_v24 = vpack.c.bf16 %v3878_v45, %v3868_v11  ;;  %1772 = vmatprep.mubr.f32.mxu0 %v10608_v31  ;;  %v5101_v60 = vmul.f32 -1.442695, %v7821_v6  ;;  %v7893_v36 = vld [vmem:[%s7003_s7 + $0xf0] sm:$0xff] }
 0x14d   : > { %10621 = vst [vmem:[#allocation20_spill] sm:$0xff] %v7833_v32  ;;  %v7842_v10 = vpop.f32.mrb[31].mxu1  ;;  %v5613_v3 = vpop.eup %5612  ;;  %5632 = vpow2.f32 %v4940_v37  ;;  %1611 = vmatprep.mubr.f32.mxu1 %v10608_v31  ;;  %v4950_v37 = vmul.f32 -1.442695, %v7827_v25  ;;  %v7868_v32 = vld [vmem:[%s7003_s7 + $0xe8] sm:$0xff]  ;;  %10629 = vst [vmem:[#allocation28_spill] sm:$0xff] %v7893_v36 }
 0x14e   : > { %10623 = vst [vmem:[#allocation22_spill] sm:$0xff] %v7842_v10  ;;  %v5615_v61 = vpop.eup %5614  ;;  %5634 = vrcp.f32 %v2947_v46  ;;  %5159 = vmatprep.subr.bf16.mxu1 %v5158_v24  ;;  %v7850_v45 = vpop.f32.mrb[32].mxu0  ;;  %v6803_v46 = vld [vmem:[%s7003_s7 + $0x68] sm:$0xff]  ;;  %10625 = vst [vmem:[#allocation24_spill] sm:$0xff] %v7868_v32 }
 0x14f   : > { %v7852_v11 = vpop.eup %5616  ;;  %v2948_v57 = vadd.f32 1.0, %v5615_v61  ;;  %5636 = vpow2.f32 %v4941_v34  ;;  %5161 = vmatpush1.bf16.msra.mxu1 %v5160_v21  ;;  %v7859_v35 = vpop.f32.mrb[33].mxu0  ;;  %4801 = vmatmul.mubr.msk.f32.gmra.mrb[138].mxu0 %vm484_vm1, %v6803_v46  ;;  %v5110_v34 = vmul.f32 -1.442695, %v7846_v22 }
 0x150   : > { %v7863_v10 = vpop.f32.mrb[32].mxu1  ;;  %v7865_v24 = vpop.eup %5618  ;;  %5638 = vpow2.f32 %v5100_v1  ;;  %4783 = vmatmul.mubr.msk.f32.gmra.mrb[138].mxu1 %vm484_vm1, %v7868_v32  ;;  %1778 = vmatprep.mubr.f32.mxu0 %v10608_v31  ;;  %v7879_v1 = vadd.f32 %v7596_v28, %v7470_v18 }
 0x151   : > { %10624 = vst [vmem:[#allocation23_spill] sm:$0xff] %v7863_v10  ;;  %v7873_v39 = vpop.f32.mrb[33].mxu1  ;;  %v5621_v21 = vpop.eup %5620  ;;  %5640 = vrcp.f32 %v2948_v57  ;;  %1617 = vmatprep.mubr.f32.mxu1 %v10608_v31  ;;  %v4951_v57 = vmul.f32 -1.442695, %v7857_v12 }
 0x152   : > { %10626 = vst [vmem:[#allocation25_spill] sm:$0xff] %v7873_v39  ;;  %v5623_v61 = vpop.eup %5622  ;;  %v2957_v46 = vadd.f32 1.0, %v5621_v21  ;;  %5642 = vpow2.f32 %v5101_v60  ;;  %10627 = vst [vmem:[#allocation26_spill] sm:$0xff] %v7879_v1  ;;  %v7881_v10 = vpop.f32.mrb[34].mxu0  ;;  %v3887_v39 = vmul.f32 %v5611_v26, %v7645_v27  ;;  %v3888_v26 = vmul.f32 %v5613_v3, %v7654_v20  ;;  %v6807_v3 = vld [vmem:[%s7003_s7 + $0x78] sm:$0xff] }
 0x153   : > { %v5625_v56 = vpop.eup %5624  ;;  %v3897_v6 = vmul.f32 %v5623_v61, %v7665_v16  ;;  %5644 = vpow2.f32 %v4950_v37  ;;  %v7886_v32 = vpop.f32.mrb[35].mxu0  ;;  %4802 = vmatmul.mubr.msk.f32.gmra.mrb[140].mxu0 %vm484_vm1, %v6805_v23  ;;  %v5111_v20 = vmul.f32 -1.442695, %v7879_v1 }
 0x154   : > { %v7890_v60 = vpop.f32.mrb[34].mxu1  ;;  %v5627_v21 = vpop.eup %5626  ;;  %5646 = vrcp.f32 %v2957_v46  ;;  %v3117_v28 = vadd.f32 1.0, %v5625_v56  ;;  %4784 = vmatmul.mubr.msk.f32.gmra.mrb[140].mxu1 %vm484_vm1, %v7893_v36  ;;  %1784 = vmatprep.mubr.f32.mxu0 %v10608_v31  ;;  %v7905_v46 = vadd.f32 %v7782_v8, %v7462_v17  ;;  %v434_v8 = vsub.s32 2, %v7438_v13 }
 0x155   : > { %10628 = vst [vmem:[#allocation27_spill] sm:$0xff] %v7890_v60  ;;  %v7898_v27 = vpop.f32.mrb[35].mxu1  ;;  %v5629_v16 = vpop.eup %5628  ;;  %v5164_v37 = vpack.c.bf16 %v3897_v6, %v3887_v39  ;;  %v3898_v23 = vmul.f32 %v5627_v21, %v7677_v30  ;;  %5648 = vpow2.f32 %v5110_v34  ;;  %1623 = vmatprep.mubr.f32.mxu1 %v10608_v31 }
 0x156   : > { %10630 = vst [vmem:[#allocation29_spill] sm:$0xff] %v7898_v27  ;;  %v5631_v56 = vpop.eup %5630  ;;  %5650 = vrcp.f32 %v3117_v28  ;;  %v2958_v61 = vadd.f32 1.0, %v5629_v16  ;;  %v7907_v60 = vpop.f32.mrb[36].mxu0  ;;  %v7918_v28 = vld [vmem:[%s7003_s7 + $0xf8] sm:$0xff] }
 0x157   : > { %v5633_v27 = vpop.eup %5632  ;;  %v3118_v36 = vadd.f32 1.0, %v5631_v56  ;;  %5652 = vpow2.f32 %v4951_v57  ;;  %v5162_v6 = vpack.c.bf16 %v3898_v23, %v3888_v26  ;;  %v7910_v30 = vpop.f32.mrb[37].mxu0  ;;  %4803 = vmatmul.mubr.msk.f32.gmra.mrb[142].mxu0 %vm484_vm1, %v6807_v3  ;;  %10632 = vst [vmem:[#allocation31_spill] sm:$0xff] %v7918_v28  ;;  %v7927_v26 = vadd.f32 %v7791_v2, %v7470_v18  ;;  %v6809_v2 = vld [vmem:[%s7003_s7 + $0x80] sm:$0xff] }
 0x158   : > { %v7914_v39 = vpop.f32.mrb[36].mxu1  ;;  %v5635_v34 = vpop.eup %5634  ;;  %5654 = vrcp.f32 %v2958_v61  ;;  %v2967_v21 = vadd.f32 1.0, %v5633_v27  ;;  %4785 = vmatmul.mubr.msk.f32.gmra.mrb[142].mxu1 %vm484_vm1, %v7918_v28  ;;  %1790 = vmatprep.mubr.f32.mxu0 %v10608_v31  ;;  %v7931_v27 = vadd.f32 %v7608_v40, %v7462_v17  ;;  %v4960_v61 = vmul.f32 -1.442695, %v7905_v46 }
 0x159   : > { %10631 = vst [vmem:[#allocation30_spill] sm:$0xff] %v7914_v39  ;;  %v7923_v57 = vpop.f32.mrb[37].mxu1  ;;  %v5637_v16 = vpop.eup %5636  ;;  %5656 = vrcp.f32 %v3118_v36  ;;  %5163 = vmatprep.subr.bf16.mxu1 %v5162_v6  ;;  %v7944_v6 = vadd.f32 %v7618_v63, %v7470_v18 }
 0x15a   : > { %10633 = vst [vmem:[#allocation32_spill] sm:$0xff] %v7923_v57  ;;  %v5639_v23 = vpop.eup %5638  ;;  %5658 = vrcp.f32 %v2967_v21  ;;  %v2968_v56 = vadd.f32 1.0, %v5637_v16  ;;  %5165 = vmatpush1.bf16.msra.mxu1 %v5164_v37  ;;  %v7934_v3 = vpop.f32.mrb[38].mxu0  ;;  %v7947_v37 = vrot.slane %v7453_v15, %v434_v8  ;;  %v438_v21 = vsub.s32 3, %v7438_v13 }
 0x15b   : > { %v5641_v57 = vpop.eup %5640  ;;  %v3127_v39 = vadd.f32 1.0, %v5639_v23  ;;  %5660 = vpow2.f32 %v5111_v20  ;;  %v7936_v36 = vpop.f32.mrb[39].mxu0  ;;  %4804 = vmatmul.mubr.msk.f32.gmra.mrb[144].mxu0 %vm484_vm1, %v6809_v2  ;;  %10635 = vst [vmem:[#allocation34_spill] sm:$0xff] %v7944_v6  ;;  %v4961_v2 = vmul.f32 -1.442695, %v7927_v26  ;;  %v7957_v15 = vadd.f32 %v7823_v7, %v7462_v17  ;;  %v6810_v7 = vld [vmem:[%s7003_s7 + $0x88] sm:$0xff] }
 0x15c   : > { %v7940_v28 = vpop.f32.mrb[38].mxu1  ;;  %v5643_v40 = vpop.eup %5642  ;;  %5662 = vrcp.f32 %v2968_v56  ;;  %1796 = vmatprep.mubr.f32.mxu0 %v10608_v31  ;;  %v5120_v56 = vmul.f32 -1.442695, %v7931_v27  ;;  %v7961_v8 = vadd.f32 %v7629_v48, %v7462_v17  ;;  %v7970_v13 = vmul.f32 %v7852_v11, %v7529_v55 }
 0x15d   : > { %10634 = vst [vmem:[#allocation33_spill] sm:$0xff] %v7940_v28  ;;  %v7951_v20 = vpop.f32.mrb[39].mxu1  ;;  %v5645_v16 = vpop.eup %5644  ;;  %5664 = vrcp.f32 %v3127_v39  ;;  %v3128_v23 = vadd.f32 1.0, %v5643_v40  ;;  %v7966_v40 = vmul.f32 %v5635_v34, %v7698_v44  ;;  %v5121_v44 = vmul.f32 -1.442695, %v7944_v6 }
 0x15e   : > { %10636 = vst [vmem:[#allocation35_spill] sm:$0xff] %v7951_v20  ;;  %v5647_v28 = vpop.eup %5646  ;;  %v2977_v63 = vadd.f32 1.0, %v5645_v16  ;;  %5666 = vpow2.f32 %v4960_v61  ;;  %v7963_v20 = vpop.f32.mrb[40].mxu0  ;;  %10637 = vst [vmem:[#allocation36_spill] sm:$0xff] %v7970_v13  ;;  %v7982_v34 = vadd.f32 %v7637_v33, %v7470_v18  ;;  %v8034_v13 = vadd.f32 %v7649_v29, %v7947_v37 }
 0x15f   : > { %v5649_v39 = vpop.eup %5648  ;;  %v3917_v61 = vmul.f32 %v5647_v28, %v7728_v58  ;;  %5668 = vrcp.f32 %v3128_v23  ;;  %v7973_v16 = vpop.f32.mrb[41].mxu0  ;;  %4805 = vmatmul.mubr.msk.f32.gmra.mrb[146].mxu0 %vm484_vm1, %v6810_v7  ;;  %v7993_v23 = vadd.f32 %v7829_v62, %v7470_v18  ;;  %v5130_v7 = vmul.f32 -1.442695, %v7961_v8 }
 0x160   : > { %v7977_v48 = vpop.f32.mrb[40].mxu1  ;;  %v5651_v1 = vpop.eup %5650  ;;  %5670 = vrcp.f32 %v2977_v63  ;;  %v3137_v4 = vadd.f32 1.0, %v5649_v39  ;;  %10639 = vst [vmem:[#allocation38_spill] sm:$0xff] %v7982_v34  ;;  %1802 = vmatprep.mubr.f32.mxu0 %v10608_v31  ;;  %v4970_v39 = vmul.f32 -1.442695, %v7957_v15 }
 0x161   : > { %10638 = vst [vmem:[#allocation37_spill] sm:$0xff] %v7977_v48  ;;  %v7985_v55 = vpop.f32.mrb[41].mxu1  ;;  %v5653_v58 = vpop.eup %5652  ;;  %v5168_v11 = vpack.c.bf16 %v3917_v61, %v7966_v40  ;;  %v7989_v28 = vmul.f32 %v5651_v1, %v7723_v49  ;;  %5672 = vpow2.f32 %v4961_v2  ;;  %v3908_v40 = vmul.f32 %v5641_v57, %v7709_v59  ;;  %v8018_v59 = vld [vmem:[%s10562_s2] sm:$0xff] }
 0x162   : > { %10640 = vst [vmem:[#allocation39_spill] sm:$0xff] %v7985_v55  ;;  %v5655_v63 = vpop.eup %5654  ;;  %5674 = vrcp.f32 %v3137_v4  ;;  %v2978_v33 = vadd.f32 1.0, %v5653_v58  ;;  %v7997_v55 = vpop.f32.mrb[42].mxu0  ;;  %v6811_v4 = vld [vmem:[%s7003_s7 + $0x90] sm:$0xff]  ;;  %v8013_v58 = vadd.f32 %v7850_v45, %v7462_v17  ;;  %10643 = vst [vmem:[#allocation42_spill] sm:$0xff] %v8018_v59  ;;  %v8029_v45 = vadd.f32 %v7859_v35, %v7470_v18 }
 0x163   : > { %10641 = vst [vmem:[#allocation40_spill] sm:$0xff] %v7989_v28  ;;  %v7999_v48 = vpop.eup %5656  ;;  %v3918_v1 = vmul.f32 %v5655_v63, %v7756_v43  ;;  %5676 = vpow2.f32 %v5120_v56  ;;  %v8005_v62 = vpop.f32.mrb[43].mxu0  ;;  %4806 = vmatmul.mubr.msk.f32.gmra.mrb[148].mxu0 %vm484_vm1, %v6811_v4  ;;  %v8021_v43 = vrot.slane %v8018_v59, %v438_v21  ;;  %v4971_v63 = vmul.f32 -1.442695, %v7993_v23 }
 0x164   : > { %v8009_v2 = vpop.f32.mrb[42].mxu1  ;;  %v5659_v61 = vpop.eup %5658  ;;  %5678 = vrcp.f32 %v2978_v33  ;;  %1808 = vmatprep.mubr.f32.mxu0 %v10608_v31  ;;  %v5131_v21 = vmul.f32 -1.442695, %v7982_v34 }
 0x165   : > { %10642 = vst [vmem:[#allocation41_spill] sm:$0xff] %v8009_v2  ;;  %v8024_v57 = vpop.f32.mrb[43].mxu1  ;;  %v5661_v56 = vpop.eup %5660  ;;  %5680 = vpow2.f32 %v5121_v44  ;;  %v5166_v33 = vpack.c.bf16 %v3918_v1, %v3908_v40  ;;  %v6813_v2 = vld [vmem:[%s7003_s7 + $0x98] sm:$0xff]  ;;  %v10647_v1 = vld [vmem:[#allocation8_spill] sm:$0xff] }
 0x166   : > { %10644 = vst [vmem:[#allocation43_spill] sm:$0xff] %v8024_v57  ;;  %v5663_v4 = vpop.eup %5662  ;;  %v3138_v49 = vadd.f32 1.0, %v5661_v56  ;;  %5682 = vpow2.f32 %v4970_v39  ;;  %v8036_v28 = vpop.f32.mrb[44].mxu0  ;;  %v4980_v39 = vmul.f32 -1.442695, %v8013_v58  ;;  %v8047_v29 = vadd.f32 %v10647_v1, %v8021_v43 }
 0x167   : > { %v5665_v57 = vpop.eup %5664  ;;  %5684 = vpow2.f32 %v5130_v7  ;;  %5167 = vmatprep.subr.bf16.mxu1 %v5166_v33  ;;  %v8038_v44 = vpop.f32.mrb[45].mxu0  ;;  %4807 = vmatmul.mubr.msk.f32.gmra.mrb[150].mxu0 %vm484_vm1, %v6813_v2  ;;  %v4981_v2 = vmul.f32 -1.442695, %v8029_v45 }
 0x168   : > { %10645 = vst [vmem:[#allocation44_spill] sm:$0xff] %v8038_v44  ;;  %v8042_v35 = vpop.f32.mrb[44].mxu1  ;;  %v5667_v40 = vpop.eup %5666  ;;  %5686 = vrcp.f32 %v3138_v49  ;;  %5169 = vmatpush1.bf16.msra.mxu1 %v5168_v11  ;;  %1814 = vmatprep.mubr.f32.mxu0 %v10608_v31  ;;  %v4822_v49 = vmul.f32 -1.442695, %v8034_v13  ;;  %v3927_v11 = vmul.f32 %v5659_v61, %v7765_v51  ;;  %v8060_v34 = vmul.f32 %v5665_v57, %v7800_v0 }
 0x169   : > { %10646 = vst [vmem:[#allocation45_spill] sm:$0xff] %v8042_v35  ;;  %v8050_v7 = vpop.f32.mrb[45].mxu1  ;;  %v8052_v56 = vpop.eup %5668  ;;  %v2987_v33 = vadd.f32 1.0, %v5667_v40  ;;  %5688 = vpow2.f32 %v4971_v63  ;;  %v6814_v63 = vld [vmem:[%s7003_s7 + $0xa0] sm:$0xff]  ;;  %v8078_v57 = vadd.f32 %v7881_v10, %v7462_v17 }
 0x16a   : > { %10648 = vst [vmem:[#allocation8_spill] sm:$0xff] %v8050_v7  ;;  %v5671_v35 = vpop.eup %5670  ;;  %5690 = vpow2.f32 %v5131_v21  ;;  %v8056_v59 = vpop.f32.mrb[46].mxu0  ;;  %10650 = vst [vmem:[#allocation47_spill] sm:$0xff] %v8060_v34 }
 0x16b   : > { %10649 = vst [vmem:[#allocation46_spill] sm:$0xff] %v8056_v59  ;;  %v5673_v1 = vpop.eup %5672  ;;  %v3937_v7 = vmul.f32 %v5671_v35, %v7827_v25  ;;  %5692 = vrcp.f32 %v2987_v33  ;;  %v8063_v6 = vpop.f32.mrb[47].mxu0  ;;  %4808 = vmatmul.mubr.msk.f32.gmra.mrb[152].mxu0 %vm484_vm1, %v6814_v63  ;;  %v4823_v59 = vmul.f32 -1.442695, %v8047_v29  ;;  %v3928_v63 = vmul.f32 %v5663_v4, %v7789_v54 }
 0x16c   : > { %v8067_v40 = vpop.f32.mrb[46].mxu1  ;;  %v5675_v21 = vpop.eup %5674  ;;  %v2988_v44 = vadd.f32 1.0, %v5673_v1  ;;  %5694 = vpow2.f32 %v4980_v39  ;;  %1820 = vmatprep.mubr.f32.mxu0 %v10608_v31 }
 0x16d   : > { %10651 = vst [vmem:[#allocation48_spill] sm:$0xff] %v8067_v40  ;;  %v8071_v51 = vpop.f32.mrb[47].mxu1  ;;  %v5677_v0 = vpop.eup %5676  ;;  %v5172_v25 = vpack.c.bf16 %v3937_v7, %v3927_v11  ;;  %v8074_v61 = vmul.f32 %v5675_v21, %v7846_v22  ;;  %5696 = vpow2.f32 %v4981_v2  ;;  %v6815_v2 = vld [vmem:[%s7003_s7 + $0xa8] sm:$0xff]  ;;  %v8094_v21 = vadd.f32 %v7669_v42, %v7947_v37 }
 0x16e   : > { %10652 = vst [vmem:[#allocation49_spill] sm:$0xff] %v8071_v51  ;;  %v5679_v35 = vpop.eup %5678  ;;  %5698 = vrcp.f32 %v2988_v44  ;;  %v3147_v39 = vadd.f32 1.0, %v5677_v0  ;;  %v8080_v33 = vpop.f32.mrb[48].mxu0  ;;  %v8106_v42 = vadd.f32 %v7886_v32, %v7470_v18 }
 0x16f   : > { %10653 = vst [vmem:[#allocation50_spill] sm:$0xff] %v8074_v61  ;;  %v5681_v1 = vpop.eup %5680  ;;  %v3938_v7 = vmul.f32 %v5679_v35, %v7857_v12  ;;  %5700 = vpow2.f32 %v4822_v49  ;;  %v8086_v22 = vpop.f32.mrb[49].mxu0  ;;  %4809 = vmatmul.mubr.msk.f32.gmra.mrb[154].mxu0 %vm484_vm1, %v6815_v2  ;;  %v4990_v49 = vmul.f32 -1.442695, %v8078_v57 }
 0x170   : > { %v8090_v10 = vpop.f32.mrb[48].mxu1  ;;  %v5683_v44 = vpop.eup %5682  ;;  %5702 = vrcp.f32 %v3147_v39  ;;  %v3148_v11 = vadd.f32 1.0, %v5681_v1  ;;  %1826 = vmatprep.mubr.f32.mxu0 %v10608_v31 }
 0x171   : > { %10654 = vst [vmem:[#allocation51_spill] sm:$0xff] %v8090_v10  ;;  %v8097_v54 = vpop.f32.mrb[49].mxu1  ;;  %v5685_v12 = vpop.eup %5684  ;;  %v2997_v4 = vadd.f32 1.0, %v5683_v44  ;;  %5704 = vpow2.f32 %v4823_v59  ;;  %v5170_v0 = vpack.c.bf16 %v3938_v7, %v3928_v63  ;;  %v6816_v44 = vld [vmem:[%s7003_s7 + $0xb0] sm:$0xff] }
 0x172   : > { %10655 = vst [vmem:[#allocation52_spill] sm:$0xff] %v8097_v54  ;;  %v8100_v35 = vpop.eup %5686  ;;  %5706 = vrcp.f32 %v3148_v11  ;;  %v3157_v39 = vadd.f32 1.0, %v5685_v12  ;;  %v8102_v1 = vpop.f32.mrb[50].mxu0  ;;  %v4832_v11 = vmul.f32 -1.442695, %v8094_v21  ;;  %v8127_v54 = vadd.f32 %v7907_v60, %v7462_v17 }
 0x173   : > { %v5689_v2 = vpop.eup %5688  ;;  %5708 = vrcp.f32 %v2997_v4  ;;  %5171 = vmatprep.subr.bf16.mxu1 %v5170_v0  ;;  %v8108_v51 = vpop.f32.mrb[51].mxu0  ;;  %4810 = vmatmul.mubr.msk.f32.gmra.mrb[156].mxu0 %vm484_vm1, %v6816_v44  ;;  %v8120_v0 = vadd.f32 %v7673_v38, %v8021_v43  ;;  %v8141_v60 = vadd.f32 %v7686_v50, %v7947_v37 }
 0x174   : > { %v8112_v59 = vpop.f32.mrb[50].mxu1  ;;  %v5691_v63 = vpop.eup %5690  ;;  %5710 = vrcp.f32 %v3157_v39  ;;  %v2998_v7 = vadd.f32 1.0, %v5689_v2  ;;  %5173 = vmatpush1.bf16.msra.mxu1 %v5172_v25  ;;  %1832 = vmatprep.mubr.f32.mxu0 %v10608_v31  ;;  %v4991_v25 = vmul.f32 -1.442695, %v8106_v42 }
 0x175   : > { %10656 = vst [vmem:[#allocation53_spill] sm:$0xff] %v8112_v59  ;;  %v8116_v12 = vpop.f32.mrb[51].mxu1  ;;  %v5693_v32 = vpop.eup %5692  ;;  %v3158_v4 = vadd.f32 1.0, %v5691_v63  ;;  %5712 = vpow2.f32 %v4990_v49  ;;  %v6817_v49 = vld [vmem:[%s7003_s7 + $0xb8] sm:$0xff] }
 0x176   : > { %10657 = vst [vmem:[#allocation54_spill] sm:$0xff] %v8116_v12  ;;  %v5695_v44 = vpop.eup %5694  ;;  %5714 = vrcp.f32 %v2998_v7  ;;  %v8122_v59 = vpop.f32.mrb[52].mxu0  ;;  %v8135_v7 = vadd.f32 %v7910_v30, %v7470_v18  ;;  %v5000_v30 = vmul.f32 -1.442695, %v8127_v54 }
 0x177   : > { %v5697_v39 = vpop.eup %5696  ;;  %5716 = vrcp.f32 %v3158_v4  ;;  %v3007_v2 = vadd.f32 1.0, %v5695_v44  ;;  %v8129_v12 = vpop.f32.mrb[53].mxu0  ;;  %4811 = vmatmul.mubr.msk.f32.gmra.mrb[158].mxu0 %vm484_vm1, %v6817_v49  ;;  %v4833_v44 = vmul.f32 -1.442695, %v8120_v0 }
 0x178   : > { %v5699_v38 = vpop.eup %5698  ;;  %v3008_v63 = vadd.f32 1.0, %v5697_v39  ;;  %5718 = vpow2.f32 %v4832_v11  ;;  %1838 = vmatprep.mubr.f32.mxu0 %v10608_v31  ;;  %v8148_v39 = vadd.f32 %v7694_v47, %v8021_v43  ;;  %v8162_v34 = vpop.f32.mrb[52].mxu1 }
 0x179   : > { %v5701_v4 = vpop.eup %5700  ;;  %5720 = vrcp.f32 %v3007_v2  ;;  %10660 = vst [vmem:[#allocation57_spill] sm:$0xff] %v8162_v34  ;;  %v8178_v34 = vadd.f32 %v7936_v36, %v7470_v18 }
 0x17a   : > { %v5703_v10 = vpop.eup %5702  ;;  %5722 = vrcp.f32 %v3008_v63  ;;  %v2849_v49 = vadd.f32 1.0, %v5701_v4  ;;  %v8143_v40 = vpop.f32.mrb[54].mxu0  ;;  %v5001_v4 = vmul.f32 -1.442695, %v8135_v7 }
 0x17b   : > { %10658 = vst [vmem:[#allocation55_spill] sm:$0xff] %v8143_v40  ;;  %v5705_v11 = vpop.eup %5704  ;;  %5724 = vpow2.f32 %v4991_v25  ;;  %v8150_v2 = vpop.f32.mrb[55].mxu0  ;;  %4812 = vmatmul.mubr.msk.f32.gmra.mrb[160].mxu0 %vm484_vm1, %v7712_v53  ;;  %v8159_v25 = vadd.f32 %v7934_v3, %v7462_v17  ;;  %v8165_v61 = vmul.f32 %v5703_v10, %v7931_v27  ;;  %v4842_v53 = vmul.f32 -1.442695, %v8141_v60 }
 0x17c   : > { %10659 = vst [vmem:[#allocation56_spill] sm:$0xff] %v8150_v2  ;;  %v8154_v50 = vpop.eup %5706  ;;  %5726 = vrcp.f32 %v2849_v49  ;;  %v2850_v63 = vadd.f32 1.0, %v5705_v11  ;;  %1844 = vmatprep.mubr.f32.mxu0 %v10608_v31  ;;  %v8170_v49 = vadd.f32 %v7706_v52, %v7947_v37  ;;  %v8172_v11 = vpop.f32.mrb[53].mxu1  ;;  %v3947_v3 = vmul.f32 %v5693_v32, %v7905_v46  ;;  %v10667_v32 = vld [vmem:[#allocation11_spill] sm:$0xff] }
 0x17d   : > { %v5709_v47 = vpop.eup %5708  ;;  %10661 = vst [vmem:[#allocation58_spill] sm:$0xff] %v8165_v61  ;;  %5728 = vpow2.f32 %v4833_v44  ;;  %10662 = vst [vmem:[#allocation59_spill] sm:$0xff] %v8172_v11  ;;  %v8182_v10 = vpop.f32.mrb[54].mxu1  ;;  %v4843_v11 = vmul.f32 -1.442695, %v8148_v39  ;;  %v8190_v46 = vadd.f32 %v7717_v19, %v8021_v43  ;;  %v10670_v19 = vld [vmem:[#allocation6_spill] sm:$0xff] }
 0x17e   : > { %v5711_v2 = vpop.eup %5710  ;;  %v3957_v40 = vmul.f32 %v5709_v47, %v7957_v15  ;;  %5730 = vrcp.f32 %v2850_v63  ;;  %v8180_v27 = vpop.f32.mrb[56].mxu0  ;;  %10664 = vst [vmem:[#allocation61_spill] sm:$0xff] %v8182_v10  ;;  %v5010_v10 = vmul.f32 -1.442695, %v8159_v25 }
 0x17f   : > { %10663 = vst [vmem:[#allocation60_spill] sm:$0xff] %v8180_v27  ;;  %v5713_v44 = vpop.eup %5712  ;;  %v8185_v52 = vmul.f32 %v5711_v2, %v7961_v8  ;;  %5732 = vpow2.f32 %v5000_v30  ;;  %v8192_v15 = vpop.f32.mrb[57].mxu0  ;;  %4813 = vmatmul.mubr.msk.f32.gmra.mrb[162].mxu0 %vm484_vm1, %v10667_v32  ;;  %v3948_v30 = vmul.f32 %v5699_v38, %v7927_v26  ;;  %v8212_v26 = vadd.f32 %v7963_v20, %v7462_v17 }
 0x180   : > { %10666 = vst [vmem:[#allocation63_spill] sm:$0xff] %v8192_v15  ;;  %v5715_v36 = vpop.eup %5714  ;;  %v5176_v63 = vpack.c.bf16 %v3957_v40, %v3947_v3  ;;  %v3017_v47 = vadd.f32 1.0, %v5713_v44  ;;  %5734 = vpow2.f32 %v5001_v4  ;;  %1850 = vmatprep.mubr.f32.mxu0 %v10608_v31  ;;  %v8204_v15 = vpop.f32.mrb[55].mxu1  ;;  %v4852_v40 = vmul.f32 -1.442695, %v8170_v49 }
 0x181   : > { %10665 = vst [vmem:[#allocation62_spill] sm:$0xff] %v8185_v52  ;;  %v8198_v8 = vpop.eup %5716  ;;  %v3958_v2 = vmul.f32 %v5715_v36, %v7993_v23  ;;  %5736 = vpow2.f32 %v4842_v53  ;;  %10668 = vst [vmem:[#allocation11_spill] sm:$0xff] %v8204_v15  ;;  %v5011_v4 = vmul.f32 -1.442695, %v8178_v34  ;;  %v10669_v36 = vld [vmem:[#allocation5_spill] sm:$0xff]  ;;  %v10675_v15 = vld [vmem:[#allocation7_spill] sm:$0xff] }
 0x182   : > { %v5719_v32 = vpop.eup %5718  ;;  %5738 = vrcp.f32 %v3017_v47  ;;  %v8208_v3 = vpop.f32.mrb[58].mxu0  ;;  %v8222_v47 = vmul.f32 %v7752_v5, %v10669_v36  ;;  %v5020_v36 = vmul.f32 -1.442695, %v8212_v26 }
 0x183   : > { %v5721_v44 = vpop.eup %5720  ;;  %v2859_v27 = vadd.f32 1.0, %v5719_v32  ;;  %5740 = vpow2.f32 %v4843_v11  ;;  %v5174_v38 = vpack.c.bf16 %v3958_v2, %v3948_v30  ;;  %v8214_v23 = vpop.f32.mrb[59].mxu0  ;;  %4814 = vmatmul.mubr.msk.f32.gmra.mrb[164].mxu0 %vm484_vm1, %v7768_v9  ;;  %v8226_v32 = vmul.f32 %v7815_v41, %v10670_v19 }
 0x184   : > { %v8218_v53 = vpop.eup %5722  ;;  %5742 = vpow2.f32 %v5010_v10  ;;  %1856 = vmatprep.mubr.f32.mxu0 %v10608_v31  ;;  %v4853_v11 = vmul.f32 -1.442695, %v8190_v46  ;;  %v8235_v41 = vadd.f32 %v7973_v16, %v7470_v18  ;;  %v8250_v16 = vpop.f32.mrb[56].mxu1 }
 0x185   : > { %v5725_v20 = vpop.eup %5724  ;;  %5744 = vrcp.f32 %v2859_v27  ;;  %5175 = vmatprep.subr.bf16.mxu1 %v5174_v38  ;;  %v8262_v61 = vpop.f32.mrb[57].mxu1 }
 0x186   : > { %v5727_v30 = vpop.eup %5726  ;;  %v3018_v9 = vadd.f32 1.0, %v5725_v20  ;;  %5746 = vpow2.f32 %v4852_v40  ;;  %5177 = vmatpush1.bf16.msra.mxu1 %v5176_v63  ;;  %v8230_v2 = vpop.f32.mrb[60].mxu0  ;;  %v10673_v63 = vld [vmem:[#allocation9_spill] sm:$0xff] }
 0x187   : > { %10671 = vst [vmem:[#allocation5_spill] sm:$0xff] %v8230_v2  ;;  %v5729_v5 = vpop.eup %5728  ;;  %5748 = vpow2.f32 %v5011_v4  ;;  %v8237_v10 = vpop.f32.mrb[61].mxu0  ;;  %4815 = vmatmul.mubr.msk.f32.gmra.mrb[166].mxu0 %vm484_vm1, %v7803_v14  ;;  %v8245_v40 = vadd.f32 %v10673_v63, %v7947_v37  ;;  %10674 = vst [vmem:[#allocation9_spill] sm:$0xff] %v8250_v16  ;;  %v8254_v14 = vmul.f32 %v7865_v24, %v10675_v15  ;;  %v10680_v2 = vld [vmem:[#allocation21_spill] sm:$0xff] }
 0x188   : > { %10672 = vst [vmem:[#allocation6_spill] sm:$0xff] %v8237_v10  ;;  %v8241_v27 = vpop.eup %5730  ;;  %5750 = vrcp.f32 %v3018_v9  ;;  %v2860_v19 = vadd.f32 1.0, %v5729_v5  ;;  %1862 = vmatprep.mubr.f32.mxu0 %v10608_v31  ;;  %v10676_v9 = vld [vmem:[#allocation10_spill] sm:$0xff] }
 0x189   : > { %v5733_v38 = vpop.eup %5732  ;;  %5752 = vpow2.f32 %v4853_v11  ;;  %v8258_v5 = vmul.f32 %v7999_v48, %v10676_v9  ;;  %10678 = vst [vmem:[#allocation10_spill] sm:$0xff] %v8262_v61  ;;  %v5021_v11 = vmul.f32 -1.442695, %v8235_v41  ;;  %v4862_v15 = vmul.f32 -1.442695, %v8245_v40 }
 0x18a   : > { %v5735_v20 = vpop.eup %5734  ;;  %5754 = vrcp.f32 %v2860_v19  ;;  %v3027_v63 = vadd.f32 1.0, %v5733_v38  ;;  %v8260_v10 = vpop.f32.mrb[62].mxu0  ;;  %v10681_v19 = vld [vmem:[#allocation12_spill] sm:$0xff]  ;;  %v8286_v61 = vmul.f32 %v5727_v30, %v8034_v13 }
 0x18b   : > { %10677 = vst [vmem:[#allocation7_spill] sm:$0xff] %v8260_v10  ;;  %v5737_v4 = vpop.eup %5736  ;;  %v3028_v52 = vadd.f32 1.0, %v5735_v20  ;;  %5756 = vpow2.f32 %v5020_v36  ;;  %v8265_v16 = vpop.f32.mrb[63].mxu0  ;;  %4816 = vmatmul.mubr.msk.f32.gmra.mrb[168].mxu0 %vm484_vm1, %v10680_v2  ;;  %v8272_v38 = vadd.f32 %v10681_v19, %v8021_v43  ;;  %v8276_v36 = vmul.f32 %v5721_v44, %v8013_v58  ;;  %v10682_v2 = vld [vmem:[#allocation13_spill] sm:$0xff]  ;;  %v10687_v30 = vld [vmem:[#allocation24_spill] sm:$0xff]  ;;  %v10701_v10 = vld [vmem:[#allocation38_spill] sm:$0xff] }
 0x18c   : > { %10679 = vst [vmem:[#allocation64_spill] sm:$0xff] %v8265_v16  ;;  %v5739_v24 = vpop.eup %5738  ;;  %5758 = vrcp.f32 %v3027_v63  ;;  %v2869_v48 = vadd.f32 1.0, %v5737_v4  ;;  %1868 = vmatprep.mubr.f32.mxu0 %v10608_v31  ;;  %v8283_v63 = vadd.f32 %v10682_v2, %v7947_v37  ;;  %10683 = vst [vmem:[#allocation21_spill] sm:$0xff] %v8286_v61  ;;  %v8292_v44 = vpop.f32.mrb[58].mxu1  ;;  %v8298_v2 = vadd.f32 %v7997_v55, %v7462_v17 }
 0x18d   : > { %v5741_v20 = vpop.eup %5740  ;;  %v8279_v9 = vmul.f32 %v5739_v24, %v8078_v57  ;;  %5760 = vrcp.f32 %v3028_v52  ;;  %10685 = vst [vmem:[#allocation13_spill] sm:$0xff] %v8292_v44  ;;  %v10689_v44 = vld [vmem:[#allocation26_spill] sm:$0xff]  ;;  %v8390_v61 = vmul.f32 %v8241_v27, %v8047_v29 }
 0x18e   : > { %v5743_v4 = vpop.eup %5742  ;;  %5762 = vrcp.f32 %v2869_v48  ;;  %v2870_v19 = vadd.f32 1.0, %v5741_v20  ;;  %v8288_v16 = vpop.f32.mrb[64].mxu0  ;;  %v10688_v20 = vld [vmem:[#allocation19_spill] sm:$0xff] }
 0x18f   : > { %10684 = vst [vmem:[#allocation12_spill] sm:$0xff] %v8288_v16  ;;  %v5745_v57 = vpop.eup %5744  ;;  %v5180_v52 = vpack.c.bf16 %v8279_v9, %v8276_v36  ;;  %v3037_v24 = vadd.f32 1.0, %v5743_v4  ;;  %5764 = vpow2.f32 %v5021_v11  ;;  %v8300_v13 = vpop.f32.mrb[65].mxu0  ;;  %4817 = vmatmul.mubr.msk.f32.gmra.mrb[170].mxu0 %vm484_vm1, %v10687_v30  ;;  %v8306_v58 = vmul.f32 %v8052_v56, %v10688_v20  ;;  %v10691_v4 = vld [vmem:[#allocation14_spill] sm:$0xff] }
 0x190   : > { %10686 = vst [vmem:[#allocation65_spill] sm:$0xff] %v8300_v13  ;;  %v5747_v48 = vpop.eup %5746  ;;  %v8310_v16 = vmul.f32 %v8100_v35, %v10689_v44  ;;  %v8313_v11 = vmul.f32 %v5745_v57, %v8094_v21  ;;  %5766 = vrcp.f32 %v2870_v19  ;;  %1874 = vmatprep.mubr.f32.mxu0 %v10608_v31  ;;  %v4863_v9 = vmul.f32 -1.442695, %v8272_v38  ;;  %v10694_v35 = vld [vmem:[#allocation28_spill] sm:$0xff]  ;;  %v10699_v13 = vld [vmem:[#allocation34_spill] sm:$0xff] }
 0x191   : > { %v5749_v55 = vpop.eup %5748  ;;  %5768 = vrcp.f32 %v3037_v24  ;;  %v2879_v36 = vadd.f32 1.0, %v5747_v48  ;;  %v8319_v30 = vadd.f32 %v10691_v4, %v8021_v43  ;;  %v8325_v21 = vadd.f32 %v8005_v62, %v7470_v18 }
 0x192   : > { %10690 = vst [vmem:[#allocation24_spill] sm:$0xff] %v8313_v11  ;;  %v5751_v56 = vpop.eup %5750  ;;  %v3038_v44 = vadd.f32 1.0, %v5749_v55  ;;  %5770 = vpow2.f32 %v4862_v15  ;;  %v8327_v19 = vpop.f32.mrb[66].mxu0  ;;  %v3968_v24 = vmul.f32 %v8218_v53, %v8029_v45  ;;  %v5030_v20 = vmul.f32 -1.442695, %v8298_v2  ;;  %v10697_v45 = vld [vmem:[#allocation44_spill] sm:$0xff] }
 0x193   : > { %10692 = vst [vmem:[#allocation19_spill] sm:$0xff] %v8327_v19  ;;  %v5753_v57 = vpop.eup %5752  ;;  %v3978_v48 = vmul.f32 %v5751_v56, %v8106_v42  ;;  %5772 = vrcp.f32 %v2879_v36  ;;  %v8333_v4 = vpop.f32.mrb[67].mxu0  ;;  %4818 = vmatmul.mubr.msk.f32.gmra.mrb[172].mxu0 %vm484_vm1, %v10694_v35  ;;  %v4872_v55 = vmul.f32 -1.442695, %v8283_v63  ;;  %v8345_v36 = vadd.f32 %v8036_v28, %v7462_v17  ;;  %v10696_v56 = vld [vmem:[#allocation17_spill] sm:$0xff] }
 0x194   : > { %10693 = vst [vmem:[#allocation26_spill] sm:$0xff] %v8333_v4  ;;  %v5755_v15 = vpop.eup %5754  ;;  %5774 = vrcp.f32 %v3038_v44  ;;  %v2880_v62 = vadd.f32 1.0, %v5753_v57  ;;  %1880 = vmatprep.mubr.f32.mxu0 %v10608_v31  ;;  %v8341_v53 = vpop.f32.mrb[59].mxu1  ;;  %v8349_v35 = vadd.f32 %v10696_v56, %v7947_v37  ;;  %v5031_v31 = vmul.f32 -1.442695, %v8325_v21 }
 0x195   : > { %10695 = vst [vmem:[#allocation14_spill] sm:$0xff] %v8341_v53  ;;  %v5757_v42 = vpop.eup %5756  ;;  %5776 = vpow2.f32 %v4863_v9  ;;  %v5178_v44 = vpack.c.bf16 %v3978_v48, %v3968_v24  ;;  %v8354_v19 = vadd.f32 %v10697_v45, %v7470_v18  ;;  %v8360_v28 = vmul.f32 %v8154_v50, %v10699_v13  ;;  %v10705_v13 = vld [vmem:[#allocation20_spill] sm:$0xff] }
 0x196   : > { %v5759_v57 = vpop.eup %5758  ;;  %5778 = vrcp.f32 %v2880_v62  ;;  %v3047_v4 = vadd.f32 1.0, %v5757_v42  ;;  %v8356_v53 = vpop.f32.mrb[68].mxu0  ;;  %v8364_v56 = vmul.f32 %v8198_v8, %v10701_v10  ;;  %v4873_v24 = vmul.f32 -1.442695, %v8319_v30  ;;  %v10703_v62 = vld [vmem:[#allocation31_spill] sm:$0xff]  ;;  %v10704_v42 = vld [vmem:[#allocation18_spill] sm:$0xff] }
 0x197   : > { %10698 = vst [vmem:[#allocation28_spill] sm:$0xff] %v8356_v53  ;;  %v5761_v9 = vpop.eup %5760  ;;  %10700 = vst [vmem:[#allocation17_spill] sm:$0xff] %v8360_v28  ;;  %5780 = vpow2.f32 %v5030_v20  ;;  %5179 = vmatprep.subr.bf16.mxu1 %v5178_v44  ;;  %v8367_v48 = vpop.f32.mrb[69].mxu0  ;;  %4819 = vmatmul.mubr.msk.f32.gmra.mrb[174].mxu0 %vm484_vm1, %v10703_v62  ;;  %v8373_v53 = vadd.f32 %v10704_v42, %v8021_v43  ;;  %v5040_v8 = vmul.f32 -1.442695, %v8345_v36  ;;  %v10706_v62 = vld [vmem:[#allocation46_spill] sm:$0xff] }
 0x198   : > { %10702 = vst [vmem:[#allocation44_spill] sm:$0xff] %v8367_v48  ;;  %v5763_v45 = vpop.eup %5762  ;;  %5782 = vrcp.f32 %v3047_v4  ;;  %5181 = vmatpush1.bf16.msra.mxu1 %v5180_v52  ;;  %v4882_v10 = vmul.f32 -1.442695, %v8349_v35  ;;  %v8379_v20 = vadd.f32 %v10705_v13, %v7947_v37  ;;  %v5041_v4 = vmul.f32 -1.442695, %v8354_v19  ;;  %v8399_v13 = vpop.f32.mrb[60].mxu1 }
 0x199   : > { %v5765_v50 = vpop.eup %5764  ;;  %5784 = vpow2.f32 %v4872_v55  ;;  %v8384_v42 = vadd.f32 %v10706_v62, %v7462_v17  ;;  %v8393_v11 = vmul.f32 %v5755_v15, %v8120_v0  ;;  %10709 = vst [vmem:[#allocation31_spill] sm:$0xff] %v8399_v13  ;;  %v3987_v62 = vmul.f32 %v5759_v57, %v8127_v54  ;;  %v8406_v27 = vpop.f32.mrb[61].mxu1 }
 0x19a   : > { %v5767_v44 = vpop.eup %5766  ;;  %v3048_v48 = vadd.f32 1.0, %v5765_v50  ;;  %5786 = vpow2.f32 %v5031_v31  ;;  %v8386_v52 = vpop.f32.mrb[70].mxu0  ;;  %10711 = vst [vmem:[#allocation20_spill] sm:$0xff] %v8406_v27  ;;  %v4892_v31 = vmul.f32 -1.442695, %v8379_v20 }
 0x19b   : > { %10707 = vst [vmem:[#allocation34_spill] sm:$0xff] %v8386_v52  ;;  %v5769_v55 = vpop.eup %5768  ;;  %5788 = vpow2.f32 %v4873_v24  ;;  %v8397_v50 = vpop.f32.mrb[71].mxu0  ;;  %v8403_v52 = vmul.f32 %v5763_v45, %v8141_v60  ;;  %v4883_v24 = vmul.f32 -1.442695, %v8373_v53  ;;  %v10714_v60 = vld [vmem:[#allocation4_spill] sm:$0xff]  ;;  %v3988_v45 = vmul.f32 %v5761_v9, %v8135_v7 }
 0x19c   : > { %10708 = vst [vmem:[#allocation38_spill] sm:$0xff] %v8397_v50  ;;  %v5771_v17 = vpop.eup %5770  ;;  %v3997_v29 = vmul.f32 %v5769_v55, %v8159_v25  ;;  %5790 = vrcp.f32 %v3048_v48  ;;  %v8410_v50 = vpop.f32.mrb[62].mxu1  ;;  %v442_v25 = vsub.s32 4, %v10714_v60  ;;  %v5050_v55 = vmul.f32 -1.442695, %v8384_v42 }
 0x19d   : > { %10710 = vst [vmem:[#allocation18_spill] sm:$0xff] %v8403_v52  ;;  %v5773_v0 = vpop.eup %5772  ;;  %v2889_v15 = vadd.f32 1.0, %v5771_v17  ;;  %5792 = vpow2.f32 %v5040_v8  ;;  %10712 = vst [vmem:[#allocation46_spill] sm:$0xff] %v8410_v50 }
 0x19e   : > { %v5775_v13 = vpop.eup %5774  ;;  %v5184_v28 = vpack.c.bf16 %v3997_v29, %v3987_v62  ;;  %v8413_v54 = vmul.f32 %v5773_v0, %v8170_v49  ;;  %5794 = vpow2.f32 %v5041_v4  ;;  %v8416_v57 = vpop.f32.mrb[72].mxu0  ;;  %v8430_v7 = vld.sshfl [vmem:[%s10563_s3] sm:$0x33 pattern:$0x76325410]  ;;  %v446_v29 = vsub.s32 5, %v10714_v60 }
 0x19f   : > { %10715 = vst [vmem:[#allocation67_spill] sm:$0xff] %v8416_v57  ;;  %v5777_v48 = vpop.eup %5776  ;;  %v3998_v8 = vmul.f32 %v5775_v13, %v8178_v34  ;;  %5796 = vrcp.f32 %v2889_v15  ;;  %v8421_v17 = vpop.f32.mrb[73].mxu0  ;;  %v8436_v13 = vadd.f32 %v8063_v6, %v7470_v18  ;;  %v8442_v15 = vmul.f32 %v5767_v44, %v8148_v39  ;;  %v10723_v44 = vld [vmem:[#allocation22_spill] sm:$0xff] }
 0x1a0   : > { %10713 = vst [vmem:[#allocation66_spill] sm:$0xff] %v8413_v54  ;;  %10716 = vst [vmem:[#allocation68_spill] sm:$0xff] %v8421_v17  ;;  %v5779_v50 = vpop.eup %5778  ;;  %v2890_v62 = vadd.f32 1.0, %v5777_v48  ;;  %5798 = vpow2.f32 %v4882_v10  ;;  %v8432_v34 = vpop.f32.mrb[63].mxu1  ;;  %v8454_v6 = vcombine.high %v8430_v7, %v8430_v7 }
 0x1a1   : > { %10717 = vst [vmem:[#allocation69_spill] sm:$0xff] %v8432_v34  ;;  %v5781_v9 = vpop.eup %5780  ;;  %5800 = vpow2.f32 %v4883_v24  ;;  %v5182_v0 = vpack.c.bf16 %v3998_v8, %v3988_v45  ;;  %10718 = vst [vmem:[#allocation70_spill] sm:$0xff] %v8442_v15  ;;  %v8445_v48 = vmul.f32 %v5779_v50, %v8190_v46  ;;  %v10720_v34 = vld [vmem:[#allocation42_spill] sm:$0xff]  ;;  %v8460_v50 = vadd.f32 %v10723_v44, %v8021_v43 }
 0x1a2   : > { %v8439_v10 = vpop.eup %5782  ;;  %5802 = vrcp.f32 %v2890_v62  ;;  %v3057_v49 = vadd.f32 1.0, %v5781_v9  ;;  %v8447_v4 = vpop.f32.mrb[74].mxu0  ;;  %v8450_v18 = vrot.slane %v10720_v34, %v442_v25  ;;  %10721 = vst [vmem:[#allocation42_spill] sm:$0xff] %v8454_v6  ;;  %v5051_v25 = vmul.f32 -1.442695, %v8436_v13  ;;  %4206 = vmatprep.mubr.f32.mxu1 %v8454_v6  ;;  %4348 = vmatprep.mubr.f32.mxu0 %v8454_v6 }
 0x1a3   : > { %10719 = vst [vmem:[#allocation71_spill] sm:$0xff] %v8447_v4  ;;  %v5785_v24 = vpop.eup %5784  ;;  %5804 = vpow2.f32 %v5050_v55  ;;  %5183 = vmatprep.subr.bf16.mxu1 %v5182_v0  ;;  %v8456_v45 = vpop.f32.mrb[75].mxu0  ;;  %v8464_v62 = vrot.slane %v10720_v34, %v446_v29  ;;  %v4893_v44 = vmul.f32 -1.442695, %v8460_v50  ;;  %v10731_v4 = vld [vmem:[#allocation27_spill] sm:$0xff]  ;;  %v4007_v52 = vmul.f32 %v8439_v10, %v8212_v26 }
 0x1a4   : > { %10722 = vst [vmem:[#allocation72_spill] sm:$0xff] %v8456_v45  ;;  %v5787_v39 = vpop.eup %5786  ;;  %5806 = vrcp.f32 %v3057_v49  ;;  %v2899_v46 = vadd.f32 1.0, %v5785_v24  ;;  %5185 = vmatpush1.bf16.msra.mxu1 %v5184_v28 }
 0x1a5   : > { %v5789_v8 = vpop.eup %5788  ;;  %v3058_v55 = vadd.f32 1.0, %v5787_v39  ;;  %5808 = vpow2.f32 %v4892_v31  ;;  %v8476_v31 = vadd.f32 %v8080_v33, %v8450_v18  ;;  %v10727_v33 = vld [vmem:[#allocation25_spill] sm:$0xff] }
 0x1a6   : > { %v8468_v9 = vpop.eup %5790  ;;  %5810 = vrcp.f32 %v2899_v46  ;;  %v2900_v49 = vadd.f32 1.0, %v5789_v8  ;;  %v8472_v28 = vpop.f32.mrb[76].mxu0  ;;  %v10726_v46 = vld [vmem:[#allocation23_spill] sm:$0xff]  ;;  %v8491_v27 = vadd.f32 %v10727_v33, %v8021_v43  ;;  %v8502_v33 = vadd.f32 %v10731_v4, %v7947_v37 }
 0x1a7   : > { %10724 = vst [vmem:[#allocation22_spill] sm:$0xff] %v8472_v28  ;;  %v5793_v24 = vpop.eup %5792  ;;  %5812 = vrcp.f32 %v3058_v55  ;;  %v8478_v34 = vpop.f32.mrb[77].mxu0  ;;  %v8483_v8 = vadd.f32 %v10726_v46, %v7947_v37  ;;  %v8487_v55 = vadd.f32 %v8086_v22, %v8464_v62 }
 0x1a8   : > { %10725 = vst [vmem:[#allocation73_spill] sm:$0xff] %v8478_v34  ;;  %v5795_v29 = vpop.eup %5794  ;;  %5814 = vrcp.f32 %v2900_v49  ;;  %v3067_v39 = vadd.f32 1.0, %v5793_v24  ;;  %v8493_v34 = vpop.f32.mrb[64].mxu1 }
 0x1a9   : > { %v5797_v0 = vpop.eup %5796  ;;  %v3068_v60 = vadd.f32 1.0, %v5795_v29  ;;  %5816 = vpow2.f32 %v5051_v25  ;;  %10728 = vst [vmem:[#allocation23_spill] sm:$0xff] %v8493_v34  ;;  %v4824_v29 = vmul.f32 -1.442695, %v8476_v31  ;;  %v4902_v34 = vmul.f32 -1.442695, %v8483_v8 }
 0x1aa   : > { %v5799_v49 = vpop.eup %5798  ;;  %5818 = vrcp.f32 %v3067_v39  ;;  %v8495_v24 = vpop.f32.mrb[78].mxu0  ;;  %v4825_v39 = vmul.f32 -1.442695, %v8487_v55  ;;  %v8522_v54 = vmul.f32 %v5797_v0, %v8245_v40 }
 0x1ab   : > { %10729 = vst [vmem:[#allocation25_spill] sm:$0xff] %v8495_v24  ;;  %v5801_v28 = vpop.eup %5800  ;;  %5820 = vrcp.f32 %v3068_v60  ;;  %v2909_v46 = vadd.f32 1.0, %v5799_v49  ;;  %v8498_v25 = vpop.f32.mrb[79].mxu0  ;;  %v4903_v60 = vmul.f32 -1.442695, %v8491_v27 }
 0x1ac   : > { %10730 = vst [vmem:[#allocation74_spill] sm:$0xff] %v8498_v25  ;;  %v5803_v45 = vpop.eup %5802  ;;  %v2910_v22 = vadd.f32 1.0, %v5801_v28  ;;  %5822 = vpow2.f32 %v4893_v44  ;;  %v8509_v25 = vadd.f32 %v8102_v1, %v8450_v18  ;;  %v10732_v28 = vld [vmem:[#allocation29_spill] sm:$0xff] }
 0x1ad   : > { %v5805_v17 = vpop.eup %5804  ;;  %5824 = vrcp.f32 %v2909_v46  ;;  %v8513_v44 = vadd.f32 %v10732_v28, %v8021_v43  ;;  %v8517_v46 = vpop.f32.mrb[65].mxu1  ;;  %v8537_v10 = vmul.f32 %v5803_v45, %v8272_v38 }
 0x1ae   : > { %v5807_v49 = vpop.eup %5806  ;;  %5826 = vrcp.f32 %v2910_v22  ;;  %v3077_v24 = vadd.f32 1.0, %v5805_v17  ;;  %v8515_v4 = vpop.f32.mrb[80].mxu0  ;;  %10734 = vst [vmem:[#allocation29_spill] sm:$0xff] %v8517_v46  ;;  %v8532_v46 = vadd.f32 %v8108_v51, %v8464_v62  ;;  %v4834_v51 = vmul.f32 -1.442695, %v8509_v25 }
 0x1af   : > { %10733 = vst [vmem:[#allocation27_spill] sm:$0xff] %v8515_v4  ;;  %v5809_v57 = vpop.eup %5808  ;;  %v4017_v17 = vmul.f32 %v5807_v49, %v8298_v2  ;;  %5828 = vpow2.f32 %v4824_v29  ;;  %v8525_v1 = vpop.f32.mrb[81].mxu0  ;;  %v4912_v4 = vmul.f32 -1.442695, %v8502_v33 }
 0x1b0   : > { %v8527_v22 = vpop.f32.mrb[66].mxu1  ;;  %v5811_v28 = vpop.eup %5810  ;;  %5830 = vrcp.f32 %v3077_v24  ;;  %v2919_v15 = vadd.f32 1.0, %v5809_v57  ;;  %v4008_v57 = vmul.f32 %v8468_v9, %v8235_v41 }
 0x1b1   : > { %10735 = vst [vmem:[#allocation75_spill] sm:$0xff] %v8527_v22  ;;  %v8534_v26 = vpop.f32.mrb[67].mxu1  ;;  %v5813_v40 = vpop.eup %5812  ;;  %v5188_v2 = vpack.c.bf16 %v4017_v17, %v4007_v52  ;;  %v8540_v0 = vmul.f32 %v5811_v28, %v8283_v63  ;;  %5832 = vpow2.f32 %v4825_v39  ;;  %v8553_v63 = vadd.f32 %v8122_v59, %v8450_v18 }
 0x1b2   : > { %10736 = vst [vmem:[#allocation76_spill] sm:$0xff] %v8534_v26  ;;  %v5815_v29 = vpop.eup %5814  ;;  %v4018_v24 = vmul.f32 %v5813_v40, %v8325_v21  ;;  %5834 = vrcp.f32 %v2919_v15  ;;  %v8555_v52 = vpop.f32.mrb[82].mxu0  ;;  %v4913_v21 = vmul.f32 -1.442695, %v8513_v44  ;;  %v8560_v39 = vadd.f32 %v8129_v12, %v8464_v62 }
 0x1b3   : > { %v5817_v49 = vpop.eup %5816  ;;  %v8549_v38 = vmul.f32 %v5815_v29, %v8319_v30  ;;  %5836 = vpow2.f32 %v4902_v34  ;;  %10737 = vst [vmem:[#allocation77_spill] sm:$0xff] %v8555_v52  ;;  %v8564_v34 = vpop.f32.mrb[83].mxu0  ;;  %v4835_v17 = vmul.f32 -1.442695, %v8532_v46  ;;  %v4844_v12 = vmul.f32 -1.442695, %v8553_v63 }
 0x1b4   : > { %v5819_v41 = vpop.eup %5818  ;;  %v3078_v45 = vadd.f32 1.0, %v5817_v49  ;;  %5838 = vpow2.f32 %v4903_v60  ;;  %v5186_v15 = vpack.c.bf16 %v4018_v24, %v4008_v57  ;;  %10738 = vst [vmem:[#allocation78_spill] sm:$0xff] %v8564_v34  ;;  %v10739_v60 = vld [vmem:[#allocation30_spill] sm:$0xff]  ;;  %v8574_v24 = vpop.f32.mrb[68].mxu1 }
 0x1b5   : > { %v5821_v9 = vpop.eup %5820  ;;  %5840 = vpow2.f32 %v4912_v4  ;;  %v8569_v28 = vadd.f32 %v10739_v60, %v7947_v37  ;;  %10741 = vst [vmem:[#allocation79_spill] sm:$0xff] %v8574_v24  ;;  %v4027_v24 = vmul.f32 %v5819_v41, %v8345_v36 }
 0x1b6   : > { %v5823_v59 = vpop.eup %5822  ;;  %5842 = vrcp.f32 %v3078_v45  ;;  %5187 = vmatprep.subr.bf16.mxu1 %v5186_v15  ;;  %v8572_v57 = vpop.f32.mrb[84].mxu0  ;;  %v4845_v45 = vmul.f32 -1.442695, %v8560_v39 }
 0x1b7   : > { %v5825_v40 = vpop.eup %5824  ;;  %v2920_v4 = vadd.f32 1.0, %v5823_v59  ;;  %5844 = vpow2.f32 %v4834_v51  ;;  %5189 = vmatpush1.bf16.msra.mxu1 %v5188_v2  ;;  %10740 = vst [vmem:[#allocation30_spill] sm:$0xff] %v8572_v57  ;;  %v8577_v26 = vpop.f32.mrb[85].mxu0  ;;  %v4922_v51 = vmul.f32 -1.442695, %v8569_v28  ;;  %v10743_v59 = vld [vmem:[#allocation32_spill] sm:$0xff] }
 0x1b8   : > { %v5827_v29 = vpop.eup %5826  ;;  %5846 = vpow2.f32 %v4913_v21  ;;  %10742 = vst [vmem:[#allocation80_spill] sm:$0xff] %v8577_v26  ;;  %v8582_v2 = vadd.f32 %v10743_v59, %v8021_v43  ;;  %v8584_v21 = vpop.f32.mrb[69].mxu1 }
 0x1b9   : > { %v5829_v49 = vpop.eup %5828  ;;  %5848 = vrcp.f32 %v2920_v4  ;;  %10744 = vst [vmem:[#allocation32_spill] sm:$0xff] %v8584_v21  ;;  %v8588_v4 = vmul.f32 %v5825_v40, %v8349_v35  ;;  %v8591_v26 = vpop.f32.mrb[70].mxu1  ;;  %v10746_v35 = vld [vmem:[#allocation33_spill] sm:$0xff] }
 0x1ba   : > { %v5831_v60 = vpop.eup %5830  ;;  %v2851_v15 = vadd.f32 1.0, %v5829_v49  ;;  %5850 = vpow2.f32 %v4835_v17  ;;  %10745 = vst [vmem:[#allocation81_spill] sm:$0xff] %v8591_v26  ;;  %v8598_v41 = vadd.f32 %v10746_v35, %v7947_v37 }
 0x1bb   : > { %v5833_v30 = vpop.eup %5832  ;;  %v4037_v57 = vmul.f32 %v5831_v60, %v8384_v42  ;;  %5852 = vpow2.f32 %v4844_v12 }
 0x1bc   : > { %v5835_v17 = vpop.eup %5834  ;;  %5854 = vrcp.f32 %v2851_v15  ;;  %v2852_v49 = vadd.f32 1.0, %v5833_v30  ;;  %v4923_v30 = vmul.f32 -1.442695, %v8582_v2  ;;  %v10748_v15 = vld [vmem:[#allocation55_spill] sm:$0xff]  ;;  %v4932_v35 = vmul.f32 -1.442695, %v8598_v41 }
 0x1bd   : > { %v5837_v34 = vpop.eup %5836  ;;  %v5192_v52 = vpack.c.bf16 %v4037_v57, %v4027_v24  ;;  %v8594_v59 = vmul.f32 %v5835_v17, %v8379_v20  ;;  %5856 = vpow2.f32 %v4845_v45  ;;  %v8603_v57 = vpop.f32.mrb[71].mxu1  ;;  %v8609_v17 = vadd.f32 %v10748_v15, %v8450_v18 }
 0x1be   : > { %v5839_v21 = vpop.eup %5838  ;;  %5858 = vrcp.f32 %v2852_v49  ;;  %v2929_v36 = vadd.f32 1.0, %v5837_v34  ;;  %10747 = vst [vmem:[#allocation33_spill] sm:$0xff] %v8603_v57  ;;  %v4028_v34 = vmul.f32 %v5821_v9, %v8354_v19  ;;  %v10749_v19 = vld [vmem:[#allocation35_spill] sm:$0xff]  ;;  %v8622_v15 = vpop.f32.mrb[86].mxu0 }
 0x1bf   : > { %v5841_v42 = vpop.eup %5840  ;;  %v2930_v12 = vadd.f32 1.0, %v5839_v21  ;;  %5860 = vpow2.f32 %v4922_v51  ;;  %v8612_v51 = vmul.f32 %v5827_v29, %v8373_v53  ;;  %v8617_v9 = vadd.f32 %v10749_v19, %v8021_v43  ;;  %10750 = vst [vmem:[#allocation55_spill] sm:$0xff] %v8622_v15 }
 0x1c0   : > { %v5843_v20 = vpop.eup %5842  ;;  %5862 = vrcp.f32 %v2929_v36  ;;  %v2939_v24 = vadd.f32 1.0, %v5841_v42 }
 0x1c1   : > { %v5845_v45 = vpop.eup %5844  ;;  %v4038_v60 = vmul.f32 %v5843_v20, %v8436_v13  ;;  %5864 = vrcp.f32 %v2930_v12 }
 0x1c2   : > { %v5847_v49 = vpop.eup %5846  ;;  %5866 = vrcp.f32 %v2939_v24  ;;  %v2861_v21 = vadd.f32 1.0, %v5845_v45  ;;  %v4854_v24 = vmul.f32 -1.442695, %v8609_v17  ;;  %v10751_v45 = vld [vmem:[#allocation56_spill] sm:$0xff] }
 0x1c3   : > { %v5849_v36 = vpop.eup %5848  ;;  %v2940_v42 = vadd.f32 1.0, %v5847_v49  ;;  %5868 = vpow2.f32 %v4923_v30  ;;  %v5190_v13 = vpack.c.bf16 %v4038_v60, %v4028_v34  ;;  %v8627_v30 = vadd.f32 %v10751_v45, %v8464_v62  ;;  %v10752_v34 = vld [vmem:[#allocation60_spill] sm:$0xff]  ;;  %v10756_v45 = vld [vmem:[#allocation37_spill] sm:$0xff] }
 0x1c4   : > { %v5851_v12 = vpop.eup %5850  ;;  %v8620_v20 = vmul.f32 %v5849_v36, %v8460_v50  ;;  %5870 = vrcp.f32 %v2861_v21  ;;  %v8631_v50 = vadd.f32 %v10752_v34, %v8450_v18  ;;  %v4933_v36 = vmul.f32 -1.442695, %v8617_v9 }
 0x1c5   : > { %v5853_v53 = vpop.eup %5852  ;;  %5872 = vrcp.f32 %v2940_v42  ;;  %v2862_v29 = vadd.f32 1.0, %v5851_v12  ;;  %5191 = vmatprep.subr.bf16.mxu1 %v5190_v13  ;;  %v10753_v42 = vld [vmem:[#allocation63_spill] sm:$0xff]  ;;  %v10754_v13 = vpack.c.bf16 %v8226_v32, %v8222_v47  ;;  %v8647_v34 = vadd.f32 %v10756_v45, %v7947_v37 }
 0x1c6   : > { %v5855_v49 = vpop.eup %5854  ;;  %v2871_v19 = vadd.f32 1.0, %v5853_v53  ;;  %5874 = vpow2.f32 %v4932_v35  ;;  %5193 = vmatpush1.bf16.msra.mxu1 %v5192_v52  ;;  %v8638_v12 = vadd.f32 %v10753_v42, %v8464_v62  ;;  %v8643_v35 = vpop.f32.mrb[87].mxu0  ;;  %v4855_v40 = vmul.f32 -1.442695, %v8627_v30  ;;  %v10757_v42 = vld [vmem:[#allocation39_spill] sm:$0xff] }
 0x1c7   : > { %v5857_v21 = vpop.eup %5856  ;;  %5876 = vrcp.f32 %v2862_v29  ;;  %5195 = vmatprep.subr.bf16.mxu1 %v10754_v13  ;;  %10755 = vst [vmem:[#allocation35_spill] sm:$0xff] %v8643_v35  ;;  %v8652_v60 = vadd.f32 %v10757_v42, %v8021_v43  ;;  %v4864_v32 = vmul.f32 -1.442695, %v8631_v50  ;;  %v10758_v13 = vld [vmem:[#allocation16_spill] sm:$0xff]  ;;  %v10761_v42 = vpack.c.bf16 %v8258_v5, %v8254_v14  ;;  %v8665_v57 = vpop.f32.mrb[88].mxu0 }
 0x1c8   : > { %v5859_v53 = vpop.eup %5858  ;;  %5878 = vrcp.f32 %v2871_v19  ;;  %v2872_v52 = vadd.f32 1.0, %v5857_v21  ;;  %v10759_v19 = vld [vmem:[#allocation15_spill] sm:$0xff]  ;;  %10762 = vst [vmem:[#allocation56_spill] sm:$0xff] %v8665_v57  ;;  %v3811_v22 = vmul.f32 %v5855_v49, %v8476_v31  ;;  %v8713_v31 = vadd.f32 %v8214_v23, %v8464_v62 }
 0x1c9   : > { %v5861_v29 = vpop.eup %5860  ;;  %5880 = vpow2.f32 %v4854_v24  ;;  %v10760_v21 = vpack.c.bf16 %v10758_v13, %v10759_v19  ;;  %v4865_v24 = vmul.f32 -1.442695, %v8638_v12  ;;  %v4942_v13 = vmul.f32 -1.442695, %v8647_v34  ;;  %v10764_v19 = vld [vmem:[#allocation41_spill] sm:$0xff] }
 0x1ca   : > { %v5863_v15 = vpop.eup %5862  ;;  %5882 = vrcp.f32 %v2872_v52  ;;  %v2949_v47 = vadd.f32 1.0, %v5861_v29  ;;  %v8667_v52 = vpop.f32.mrb[72].mxu1  ;;  %v4943_v5 = vmul.f32 -1.442695, %v8652_v60 }
 0x1cb   : > { %5197 = vmatpush1.bf16.msra.mxu1 %v10760_v21  ;;  %v5865_v35 = vpop.eup %5864  ;;  %v8659_v45 = vmul.f32 %v5863_v15, %v8483_v8  ;;  %5884 = vpow2.f32 %v4933_v36  ;;  %10763 = vst [vmem:[#allocation60_spill] sm:$0xff] %v8667_v52  ;;  %v8672_v21 = vadd.f32 %v10764_v19, %v7947_v37  ;;  %v8674_v8 = vpop.f32.mrb[89].mxu0 }
 0x1cc   : > { %5199 = vmatprep.subr.bf16.mxu1 %v10761_v42  ;;  %v5867_v29 = vpop.eup %5866  ;;  %5886 = vrcp.f32 %v2949_v47  ;;  %10765 = vst [vmem:[#allocation63_spill] sm:$0xff] %v8674_v8  ;;  %v8676_v15 = vpop.f32.mrb[73].mxu1  ;;  %v8684_v47 = vadd.f32 %v8208_v3, %v8450_v18  ;;  %v8689_v19 = vmul.f32 %v5865_v35, %v8491_v27  ;;  %v10772_v35 = vpack.c.bf16 %v8310_v16, %v8306_v58 }
 0x1cd   : > { %10766 = vst [vmem:[#allocation37_spill] sm:$0xff] %v8676_v15  ;;  %v5869_v36 = vpop.eup %5868  ;;  %v8679_v14 = vmul.f32 %v5867_v29, %v8502_v33  ;;  %5888 = vpow2.f32 %v4855_v40  ;;  %v8686_v42 = vpop.f32.mrb[74].mxu1  ;;  %v10768_v15 = vld [vmem:[#allocation43_spill] sm:$0xff]  ;;  %v10769_v33 = vld [vmem:[#allocation40_spill] sm:$0xff]  ;;  %v3812_v16 = vmul.f32 %v5859_v53, %v8487_v55 }
 0x1ce   : > { %10767 = vst [vmem:[#allocation39_spill] sm:$0xff] %v8686_v42  ;;  %v5871_v52 = vpop.eup %5870  ;;  %v2950_v8 = vadd.f32 1.0, %v5869_v36  ;;  %5890 = vpow2.f32 %v4864_v32  ;;  %v8693_v57 = vadd.f32 %v10768_v15, %v8021_v43  ;;  %v10770_v40 = vld [vmem:[#allocation36_spill] sm:$0xff]  ;;  %v8698_v26 = vpop.f32.mrb[75].mxu1  ;;  %v4952_v36 = vmul.f32 -1.442695, %v8672_v21 }
 0x1cf   : > { %v10771_v29 = vpack.c.bf16 %v10769_v33, %v10770_v40  ;;  %v5873_v3 = vpop.eup %5872  ;;  %v3821_v27 = vmul.f32 %v5871_v52, %v8509_v25  ;;  %5892 = vpow2.f32 %v4865_v24  ;;  %v4874_v25 = vmul.f32 -1.442695, %v8684_v47  ;;  %v10774_v52 = vld [vmem:[#allocation47_spill] sm:$0xff] }
 0x1d0   : > { %v5875_v32 = vpop.eup %5874  ;;  %v8708_v15 = vmul.f32 %v5873_v3, %v8513_v44  ;;  %5894 = vrcp.f32 %v2950_v8  ;;  %v10773_v44 = vld [vmem:[#allocation50_spill] sm:$0xff]  ;;  %v10776_v3 = vld [vmem:[#allocation17_spill] sm:$0xff] }
 0x1d1   : > { %5201 = vmatpush1.bf16.msra.mxu1 %v10771_v29  ;;  %v5877_v49 = vpop.eup %5876  ;;  %v5276_v33 = vpack.c.bf16 %v3821_v27, %v3811_v22  ;;  %v2959_v40 = vadd.f32 1.0, %v5875_v32  ;;  %5896 = vpow2.f32 %v4942_v13  ;;  %v10775_v8 = vpack.c.bf16 %v10773_v44, %v10774_v52  ;;  %v8725_v29 = vpop.f32.mrb[90].mxu0 }
 0x1d2   : > { %5203 = vmatprep.subr.bf16.mxu1 %v10772_v35  ;;  %v8716_v24 = vpop.eup %5878  ;;  %v3822_v58 = vmul.f32 %v5877_v49, %v8532_v46  ;;  %5898 = vpow2.f32 %v4943_v5  ;;  %v4953_v13 = vmul.f32 -1.442695, %v8693_v57  ;;  %v10777_v27 = vpack.c.bf16 %v8364_v56, %v10776_v3  ;;  %v8731_v55 = vpop.f32.mrb[91].mxu0  ;;  %v10778_v49 = vld [vmem:[#allocation5_spill] sm:$0xff]  ;;  %v10779_v56 = vld [vmem:[#allocation62_spill] sm:$0xff] }
 0x1d3   : > { %v5881_v22 = vpop.eup %5880  ;;  %5900 = vrcp.f32 %v2959_v40  ;;  %v4875_v32 = vmul.f32 -1.442695, %v8713_v31  ;;  %v8738_v40 = vadd.f32 %v10778_v49, %v8450_v18 }
 0x1d4   : > { %v8733_v46 = vpop.eup %5882  ;;  %v2881_v53 = vadd.f32 1.0, %v5881_v22  ;;  %5902 = vpow2.f32 %v4952_v36  ;;  %v5274_v5 = vpack.c.bf16 %v3822_v58, %v3812_v16  ;;  %v10782_v36 = vpack.c.bf16 %v8393_v11, %v8390_v61  ;;  %v8748_v16 = vpop.f32.mrb[76].mxu1 }
 0x1d5   : > { %5205 = vmatpush1.bf16.msra.mxu1 %v10775_v8  ;;  %v5885_v35 = vpop.eup %5884  ;;  %5904 = vpow2.f32 %v4874_v25  ;;  %v10780_v8 = vld [vmem:[#allocation58_spill] sm:$0xff]  ;;  %v8746_v25 = vpop.f32.mrb[92].mxu0 }
 0x1d6   : > { %5207 = vmatprep.subr.bf16.mxu1 %v10777_v27  ;;  %v5887_v44 = vpop.eup %5886  ;;  %5906 = vrcp.f32 %v2881_v53  ;;  %v2960_v52 = vadd.f32 1.0, %v5885_v35  ;;  %5275 = vmatprep.subr.bf16.mxu0 %v5274_v5  ;;  %v10781_v3 = vpack.c.bf16 %v10779_v56, %v10780_v8  ;;  %v10783_v53 = vld [vmem:[#allocation6_spill] sm:$0xff]  ;;  %v8754_v35 = vpop.f32.mrb[93].mxu0  ;;  %v10784_v56 = vld [vmem:[#allocation24_spill] sm:$0xff]  ;;  %v10785_v8 = vld [vmem:[#allocation21_spill] sm:$0xff] }
 0x1d7   : > { %v5889_v27 = vpop.eup %5888  ;;  %5908 = vpow2.f32 %v4953_v13  ;;  %5277 = vmatpush1.bf16.msra.mxu0 %v5276_v33  ;;  %v8752_v5 = vadd.f32 %v10783_v53, %v8464_v62  ;;  %v4884_v33 = vmul.f32 -1.442695, %v8738_v40 }
 0x1d8   : > { %v5891_v58 = vpop.eup %5890  ;;  %5910 = vrcp.f32 %v2960_v52  ;;  %v2882_v22 = vadd.f32 1.0, %v5889_v27  ;;  %v10786_v52 = vpack.c.bf16 %v10784_v56, %v10785_v8  ;;  %v10787_v27 = vld [vmem:[#allocation45_spill] sm:$0xff] }
 0x1d9   : > { %5209 = vmatpush1.bf16.msra.mxu1 %v10781_v3  ;;  %v5893_v49 = vpop.eup %5892  ;;  %v2891_v13 = vadd.f32 1.0, %v5891_v58  ;;  %5912 = vpow2.f32 %v4875_v32  ;;  %v10788_v32 = vld [vmem:[#allocation8_spill] sm:$0xff] }
 0x1da   : > { %5211 = vmatprep.subr.bf16.mxu1 %v10782_v36  ;;  %v5895_v61 = vpop.eup %5894  ;;  %5914 = vrcp.f32 %v2882_v22  ;;  %v2892_v11 = vadd.f32 1.0, %v5893_v49  ;;  %v8764_v36 = vadd.f32 %v10787_v27, %v7947_v37  ;;  %v8768_v58 = vadd.f32 %v10788_v32, %v8021_v43  ;;  %v8777_v27 = vpop.f32.mrb[77].mxu1 }
 0x1db   : > { %v5897_v3 = vpop.eup %5896  ;;  %5916 = vrcp.f32 %v2891_v13  ;;  %v8774_v49 = vmul.f32 %v5887_v44, %v8569_v28  ;;  %v4885_v13 = vmul.f32 -1.442695, %v8752_v5  ;;  %v10792_v28 = vld [vmem:[#allocation49_spill] sm:$0xff] }
 0x1dc   : > { %4207 = vmatmul.mubr.f32.vlgmr.msra.gmra.mrb[144].mxu1 %v8430_v7  ;;  %v10789_v7 = vld [vmem:[#allocation70_spill] sm:$0xff]  ;;  %v5899_v53 = vpop.eup %5898  ;;  %5918 = vrcp.f32 %v2892_v11  ;;  %v2969_v56 = vadd.f32 1.0, %v5897_v3  ;;  %v8788_v44 = vadd.f32 %v10792_v28, %v8021_v43  ;;  %v4962_v23 = vmul.f32 -1.442695, %v8764_v36 }
 0x1dd   : > { %5213 = vmatpush1.bf16.msra.mxu1 %v10786_v52  ;;  %4277 = vmatprep.mubr.f32.mxu1 %v8454_v6  ;;  %v10790_v22 = vpack.c.bf16 %v8445_v48, %v10789_v7  ;;  %v5901_v8 = vpop.eup %5900  ;;  %v2970_v52 = vadd.f32 1.0, %v5899_v53  ;;  %5920 = vpow2.f32 %v4884_v33  ;;  %v10791_v48 = vld [vmem:[#allocation48_spill] sm:$0xff]  ;;  %v10793_v11 = vld [vmem:[#allocation66_spill] sm:$0xff] }
 0x1de   : > { %v5903_v42 = vpop.eup %5902  ;;  %v8780_v32 = vmul.f32 %v5901_v8, %v8598_v41  ;;  %5922 = vrcp.f32 %v2969_v56  ;;  %v8784_v7 = vadd.f32 %v10791_v48, %v7947_v37  ;;  %v10794_v3 = vld [vmem:[#allocation18_spill] sm:$0xff]  ;;  %v4963_v41 = vmul.f32 -1.442695, %v8768_v58  ;;  %v8798_v8 = vpop.f32.mrb[78].mxu1 }
 0x1df   : > { %5215 = vmatprep.subr.bf16.mxu1 %v10790_v22  ;;  %v10795_v22 = vpack.c.bf16 %v10793_v11, %v10794_v3  ;;  %v5905_v33 = vpop.eup %5904  ;;  %5924 = vrcp.f32 %v2970_v52  ;;  %v2979_v53 = vadd.f32 1.0, %v5903_v42  ;;  %v10796_v56 = vpack.c.bf16 %v8549_v38, %v8537_v10  ;;  %10797 = vst [vmem:[#allocation16_spill] sm:$0xff] %v8798_v8  ;;  %v10798_v11 = vld [vmem:[#allocation7_spill] sm:$0xff]  ;;  %v8810_v38 = vpop.f32.mrb[79].mxu1 }
 0x1e0   : > { %v5907_v48 = vpop.eup %5906  ;;  %v2901_v6 = vadd.f32 1.0, %v5905_v33  ;;  %5926 = vpow2.f32 %v4885_v13  ;;  %v8804_v52 = vadd.f32 %v10798_v11, %v8450_v18  ;;  %v3831_v3 = vmul.f32 %v8716_v24, %v8553_v63 }
 0x1e1   : > { %5217 = vmatpush1.bf16.msra.mxu1 %v10795_v22  ;;  %v5909_v42 = vpop.eup %5908  ;;  %v3910_v22 = vmul.f32 %v5895_v61, %v8582_v2  ;;  %v3841_v10 = vmul.f32 %v5907_v48, %v8609_v17  ;;  %5928 = vrcp.f32 %v2979_v53  ;;  %v4972_v13 = vmul.f32 -1.442695, %v8784_v7  ;;  %v10800_v17 = vld [vmem:[#allocation64_spill] sm:$0xff] }
 0x1e2   : > { %5219 = vmatprep.subr.bf16.mxu1 %v10796_v56  ;;  %v5911_v56 = vpop.eup %5910  ;;  %5930 = vrcp.f32 %v2901_v6  ;;  %v2980_v28 = vadd.f32 1.0, %v5909_v42  ;;  %v4973_v33 = vmul.f32 -1.442695, %v8788_v44  ;;  %v10799_v11 = vpack.c.bf16 %v8540_v0, %v8522_v54  ;;  %v10802_v54 = vld [vmem:[#allocation12_spill] sm:$0xff] }
 0x1e3   : > { %v5913_v8 = vpop.eup %5912  ;;  %v5280_v63 = vpack.c.bf16 %v3841_v10, %v3831_v3  ;;  %v3920_v2 = vmul.f32 %v5911_v56, %v8617_v9  ;;  %5932 = vpow2.f32 %v4962_v23  ;;  %v8820_v24 = vadd.f32 %v10800_v17, %v8464_v62  ;;  %v8833_v10 = vpop.f32.mrb[94].mxu0 }
 0x1e4   : > { %v10801_v6 = vpack.c.bf16 %v8620_v20, %v8612_v51  ;;  %v5915_v61 = vpop.eup %5914  ;;  %5934 = vrcp.f32 %v2980_v28  ;;  %v2902_v53 = vadd.f32 1.0, %v5913_v8  ;;  %v4894_v48 = vmul.f32 -1.442695, %v8804_v52  ;;  %v10803_v20 = vld [vmem:[#allocation65_spill] sm:$0xff]  ;;  %v8842_v56 = vpop.f32.mrb[95].mxu0 }
 0x1e5   : > { %5221 = vmatpush1.bf16.msra.mxu1 %v10799_v11  ;;  %v8828_v0 = vadd.f32 %v10802_v54, %v8450_v18  ;;  %v5917_v42 = vpop.eup %5916  ;;  %v3832_v9 = vmul.f32 %v8733_v46, %v8560_v39  ;;  %v3842_v23 = vmul.f32 %v5915_v61, %v8627_v30  ;;  %5936 = vpow2.f32 %v4963_v41  ;;  %v10805_v30 = vld [vmem:[#allocation51_spill] sm:$0xff]  ;;  %v8857_v61 = vpop.f32.mrb[96].mxu0 }
 0x1e6   : > { %5223 = vmatprep.subr.bf16.mxu1 %v10801_v6  ;;  %v5230_v3 = vpack.c.bf16 %v3920_v2, %v3910_v22  ;;  %v5919_v51 = vpop.eup %5918  ;;  %5938 = vrcp.f32 %v2902_v53  ;;  %v8837_v8 = vadd.f32 %v10803_v20, %v8464_v62  ;;  %v10804_v28 = vpack.c.bf16 %v8594_v59, %v8588_v4  ;;  %v10807_v59 = vld [vmem:[#allocation52_spill] sm:$0xff]  ;;  %v8859_v53 = vpop.f32.mrb[80].mxu1 }
 0x1e7   : > { %v5921_v11 = vpop.eup %5920  ;;  %5940 = vpow2.f32 %v4972_v13  ;;  %v4895_v39 = vmul.f32 -1.442695, %v8820_v24  ;;  %v8847_v46 = vadd.f32 %v10805_v30, %v7947_v37  ;;  %v5278_v41 = vpack.c.bf16 %v3842_v23, %v3832_v9  ;;  %v8872_v20 = vpop.f32.mrb[81].mxu1 }
 0x1e8   : > { %v10806_v22 = vpack.c.bf16 %v8708_v15, %v8689_v19  ;;  %v5923_v2 = vpop.eup %5922  ;;  %v2911_v17 = vadd.f32 1.0, %v5921_v11  ;;  %5942 = vpow2.f32 %v4894_v48  ;;  %v4904_v4 = vmul.f32 -1.442695, %v8828_v0  ;;  %v10808_v48 = vld [vmem:[#allocation53_spill] sm:$0xff]  ;;  %v8875_v30 = vpop.f32.mrb[82].mxu1 }
 0x1e9   : > { %5225 = vmatpush1.bf16.msra.mxu1 %v10804_v28  ;;  %v8855_v6 = vadd.f32 %v10807_v59, %v8021_v43  ;;  %v5925_v13 = vpop.eup %5924  ;;  %5944 = vpow2.f32 %v4973_v33  ;;  %5279 = vmatprep.subr.bf16.mxu0 %v5278_v41  ;;  %v3929_v19 = vmul.f32 %v5923_v2, %v8647_v34  ;;  %v4905_v15 = vmul.f32 -1.442695, %v8837_v8  ;;  %v8870_v33 = vpop.f32.mrb[97].mxu0 }
 0x1ea   : > { %5227 = vmatprep.subr.bf16.mxu1 %v10806_v22  ;;  %v5927_v54 = vpop.eup %5926  ;;  %5946 = vrcp.f32 %v2911_v17  ;;  %v8865_v9 = vadd.f32 %v10808_v48, %v7947_v37  ;;  %5281 = vmatpush1.bf16.msra.mxu0 %v5280_v63  ;;  %v10809_v23 = vpack.c.bf16 %v8679_v14, %v8659_v45  ;;  %v4982_v34 = vmul.f32 -1.442695, %v8847_v46 }
 0x1eb   : > { %v5929_v28 = vpop.eup %5928  ;;  %v2912_v11 = vadd.f32 1.0, %v5927_v54  ;;  %5948 = vpow2.f32 %v4895_v39  ;;  %v4983_v63 = vmul.f32 -1.442695, %v8855_v6  ;;  %v3851_v14 = vmul.f32 %v5917_v42, %v8631_v50  ;;  %v8893_v42 = vpop.f32.mrb[83].mxu1 }
 0x1ec   : > { %v5931_v41 = vpop.eup %5930  ;;  %v3939_v22 = vmul.f32 %v5929_v28, %v8672_v21  ;;  %5950 = vpow2.f32 %v4904_v4  ;;  %v3930_v2 = vmul.f32 %v5925_v13, %v8652_v60  ;;  %v10810_v21 = vpack.c.bf16 %v8780_v32, %v8774_v49  ;;  %v8886_v4 = vpop.f32.mrb[98].mxu0  ;;  %v10812_v60 = vld [vmem:[#allocation19_spill] sm:$0xff]  ;;  %10813 = vst [vmem:[#allocation41_spill] sm:$0xff] %v8893_v42 }
 0x1ed   : > { %5229 = vmatpush1.bf16.msra.mxu1 %v10809_v23  ;;  %v5933_v45 = vpop.eup %5932  ;;  %v3861_v17 = vmul.f32 %v5931_v41, %v8684_v47  ;;  %5952 = vrcp.f32 %v2912_v11  ;;  %10811 = vst [vmem:[#allocation15_spill] sm:$0xff] %v8886_v4  ;;  %v8891_v47 = vadd.f32 %v10812_v60, %v8450_v18  ;;  %v3852_v49 = vmul.f32 %v5919_v51, %v8638_v12  ;;  %v10815_v51 = vld [vmem:[#allocation26_spill] sm:$0xff] }
 0x1ee   : > { %5231 = vmatprep.subr.bf16.mxu1 %v5230_v3  ;;  %v5935_v39 = vpop.eup %5934  ;;  %v5236_v59 = vpack.c.bf16 %v3939_v22, %v3929_v19  ;;  %v2989_v54 = vadd.f32 1.0, %v5933_v45  ;;  %5954 = vpow2.f32 %v4905_v15  ;;  %v4992_v3 = vmul.f32 -1.442695, %v8865_v9 }
 0x1ef   : > { %v5937_v48 = vpop.eup %5936  ;;  %v5284_v23 = vpack.c.bf16 %v3861_v17, %v3851_v14  ;;  %v3940_v50 = vmul.f32 %v5935_v39, %v8693_v57  ;;  %5956 = vpow2.f32 %v4982_v34  ;;  %v10814_v34 = vld [vmem:[#allocation54_spill] sm:$0xff]  ;;  %v4914_v14 = vmul.f32 -1.442695, %v8891_v47 }
 0x1f0   : > { %v5939_v13 = vpop.eup %5938  ;;  %5958 = vrcp.f32 %v2989_v54  ;;  %v2990_v19 = vadd.f32 1.0, %v5937_v48  ;;  %v8899_v41 = vadd.f32 %v10814_v34, %v8021_v43 }
 0x1f1   : > { %5233 = vmatpush1.bf16.msra.mxu1 %v10810_v21  ;;  %v5941_v15 = vpop.eup %5940  ;;  %v3862_v32 = vmul.f32 %v5939_v13, %v8713_v31  ;;  %5960 = vpow2.f32 %v4983_v63  ;;  %v5234_v28 = vpack.c.bf16 %v3940_v50, %v3930_v2  ;;  %v8904_v63 = vadd.f32 %v10815_v51, %v8464_v62  ;;  %v8907_v21 = vpop.f32.mrb[99].mxu0 }
 0x1f2   : > { %v5943_v11 = vpop.eup %5942  ;;  %5962 = vrcp.f32 %v2990_v19  ;;  %v2999_v57 = vadd.f32 1.0, %v5941_v15  ;;  %10816 = vst [vmem:[#allocation43_spill] sm:$0xff] %v8907_v21  ;;  %v10818_v19 = vld [vmem:[#allocation57_spill] sm:$0xff]  ;;  %v10829_v21 = vld [vmem:[#allocation38_spill] sm:$0xff] }
 0x1f3   : > { %v5945_v22 = vpop.eup %5944  ;;  %v2921_v45 = vadd.f32 1.0, %v5943_v11  ;;  %5964 = vpow2.f32 %v4992_v3  ;;  %v5282_v17 = vpack.c.bf16 %v3862_v32, %v3852_v49  ;;  %5235 = vmatprep.subr.bf16.mxu1 %v5234_v28  ;;  %v4993_v3 = vmul.f32 -1.442695, %v8899_v41  ;;  %v10819_v28 = vld [vmem:[#allocation44_spill] sm:$0xff] }
 0x1f4   : > { %v5947_v39 = vpop.eup %5946  ;;  %5966 = vrcp.f32 %v2999_v57  ;;  %v3000_v12 = vadd.f32 1.0, %v5945_v22  ;;  %v8915_v15 = vadd.f32 %v10818_v19, %v7947_v37  ;;  %v8920_v11 = vadd.f32 %v10819_v28, %v8464_v62  ;;  %v10820_v22 = vld [vmem:[#allocation59_spill] sm:$0xff] }
 0x1f5   : > { %5237 = vmatpush1.bf16.msra.mxu1 %v5236_v59  ;;  %v5949_v31 = vpop.eup %5948  ;;  %5968 = vrcp.f32 %v2921_v45  ;;  %5283 = vmatprep.subr.bf16.mxu0 %v5282_v17  ;;  %v10817_v59 = vld [vmem:[#allocation28_spill] sm:$0xff]  ;;  %v8924_v45 = vadd.f32 %v10820_v22, %v8021_v43  ;;  %v8960_v42 = vadd.f32 %v10829_v21, %v8464_v62 }
 0x1f6   : > { %v5951_v2 = vpop.eup %5950  ;;  %5970 = vrcp.f32 %v3000_v12  ;;  %v2922_v54 = vadd.f32 1.0, %v5949_v31  ;;  %5285 = vmatpush1.bf16.msra.mxu0 %v5284_v23  ;;  %v8911_v60 = vadd.f32 %v10817_v59, %v8450_v18  ;;  %v4915_v23 = vmul.f32 -1.442695, %v8904_v63  ;;  %v8930_v12 = vpop.f32.mrb[100].mxu0 }
 0x1f7   : > { %v5953_v48 = vpop.eup %5952  ;;  %v2931_v50 = vadd.f32 1.0, %v5951_v2  ;;  %5972 = vpow2.f32 %v4914_v14  ;;  %v10821_v14 = vld [vmem:[#allocation61_spill] sm:$0xff]  ;;  %10822 = vst [vmem:[#allocation40_spill] sm:$0xff] %v8930_v12  ;;  %v8933_v2 = vpop.f32.mrb[101].mxu0  ;;  %v5002_v59 = vmul.f32 -1.442695, %v8915_v15 }
 0x1f8   : > { %v5955_v13 = vpop.eup %5954  ;;  %5974 = vrcp.f32 %v2922_v54  ;;  %v8928_v17 = vadd.f32 %v10821_v14, %v7947_v37  ;;  %v4924_v51 = vmul.f32 -1.442695, %v8911_v60  ;;  %10823 = vst [vmem:[#allocation36_spill] sm:$0xff] %v8933_v2  ;;  %v8935_v54 = vpop.f32.mrb[84].mxu1  ;;  %v4925_v28 = vmul.f32 -1.442695, %v8920_v11 }
 0x1f9   : > { %v5957_v49 = vpop.eup %5956  ;;  %5976 = vrcp.f32 %v2931_v50  ;;  %v2932_v32 = vadd.f32 1.0, %v5955_v13  ;;  %10824 = vst [vmem:[#allocation50_spill] sm:$0xff] %v8935_v54  ;;  %v8938_v13 = vpop.f32.mrb[85].mxu1 }
 0x1fa   : > { %v5959_v57 = vpop.eup %5958  ;;  %v3009_v34 = vadd.f32 1.0, %v5957_v49  ;;  %5978 = vpow2.f32 %v4993_v3  ;;  %10825 = vst [vmem:[#allocation47_spill] sm:$0xff] %v8938_v13  ;;  %v8948_v2 = vpop.f32.mrb[86].mxu1 }
 0x1fb   : > { %v5961_v31 = vpop.eup %5960  ;;  %5980 = vrcp.f32 %v2932_v32  ;;  %v3949_v49 = vmul.f32 %v5959_v57, %v8764_v36  ;;  %v10826_v32 = vld [vmem:[#allocation34_spill] sm:$0xff]  ;;  %10827 = vst [vmem:[#allocation17_spill] sm:$0xff] %v8948_v2  ;;  %v8962_v2 = vpop.f32.mrb[102].mxu0 }
 0x1fc   : > { %v5963_v50 = vpop.eup %5962  ;;  %5982 = vrcp.f32 %v3009_v34  ;;  %v3010_v3 = vadd.f32 1.0, %v5961_v31  ;;  %v8944_v22 = vadd.f32 %v10826_v32, %v8450_v18  ;;  %v5003_v34 = vmul.f32 -1.442695, %v8924_v45  ;;  %10830 = vst [vmem:[#allocation5_spill] sm:$0xff] %v8962_v2 }
 0x1fd   : > { %v5965_v19 = vpop.eup %5964  ;;  %5984 = vpow2.f32 %v4915_v23  ;;  %v5012_v31 = vmul.f32 -1.442695, %v8928_v17  ;;  %v3950_v12 = vmul.f32 %v5963_v50, %v8768_v58  ;;  %v10828_v23 = vld [vmem:[#allocation11_spill] sm:$0xff] }
 0x1fe   : > { %v5967_v14 = vpop.eup %5966  ;;  %5986 = vrcp.f32 %v3010_v3  ;;  %v3019_v54 = vadd.f32 1.0, %v5965_v19  ;;  %v8954_v57 = vadd.f32 %v10828_v23, %v8021_v43  ;;  %v3871_v3 = vmul.f32 %v5947_v39, %v8738_v40 }
 0x1ff   : > { %v5969_v13 = vpop.eup %5968  ;;  %v3959_v36 = vmul.f32 %v5967_v14, %v8784_v7  ;;  %5988 = vpow2.f32 %v4924_v51  ;;  %v4934_v51 = vmul.f32 -1.442695, %v8944_v22  ;;  %v8966_v14 = vpop.f32.mrb[87].mxu1 }
 0x200   : > { %v5971_v32 = vpop.eup %5970  ;;  %v3881_v19 = vmul.f32 %v5969_v13, %v8804_v52  ;;  %5990 = vrcp.f32 %v3019_v54  ;;  %10831 = vst [vmem:[#allocation62_spill] sm:$0xff] %v8966_v14  ;;  %v10832_v52 = vld [vmem:[#allocation67_spill] sm:$0xff]  ;;  %v3872_v13 = vmul.f32 %v5953_v48, %v8752_v5  ;;  %v8982_v5 = vpop.f32.mrb[103].mxu0 }
 0x201   : > { %v5973_v58 = vpop.eup %5972  ;;  %v5240_v50 = vpack.c.bf16 %v3959_v36, %v3949_v49  ;;  %v3960_v7 = vmul.f32 %v5971_v32, %v8788_v44  ;;  %5992 = vpow2.f32 %v4925_v28  ;;  %v8970_v54 = vadd.f32 %v10832_v52, %v8450_v18  ;;  %10834 = vst [vmem:[#allocation58_spill] sm:$0xff] %v8982_v5 }
 0x202   : > { %v5975_v23 = vpop.eup %5974  ;;  %v5288_v40 = vpack.c.bf16 %v3881_v19, %v3871_v3  ;;  %v2941_v39 = vadd.f32 1.0, %v5973_v58  ;;  %5994 = vpow2.f32 %v5002_v59  ;;  %v5013_v36 = vmul.f32 -1.442695, %v8954_v57  ;;  %v10833_v19 = vld [vmem:[#allocation68_spill] sm:$0xff] }
 0x203   : > { %v5977_v21 = vpop.eup %5976  ;;  %v3882_v49 = vmul.f32 %v5975_v23, %v8820_v24  ;;  %5996 = vpow2.f32 %v5003_v34  ;;  %v5238_v44 = vpack.c.bf16 %v3960_v7, %v3950_v12  ;;  %v4935_v32 = vmul.f32 -1.442695, %v8960_v42  ;;  %v8987_v23 = vpop.f32.mrb[88].mxu1 }
 0x204   : > { %v5979_v28 = vpop.eup %5978  ;;  %5998 = vrcp.f32 %v2941_v39  ;;  %v8980_v58 = vadd.f32 %v10833_v19, %v8464_v62  ;;  %v4944_v12 = vmul.f32 -1.442695, %v8970_v54  ;;  %10836 = vst [vmem:[#allocation24_spill] sm:$0xff] %v8987_v23 }
 0x205   : > { %v8976_v3 = vpop.eup %5980  ;;  %v3020_v59 = vadd.f32 1.0, %v5979_v28  ;;  %6000 = vpow2.f32 %v5012_v31  ;;  %v5286_v52 = vpack.c.bf16 %v3882_v49, %v3872_v13  ;;  %5239 = vmatprep.subr.bf16.mxu1 %v5238_v44  ;;  %v8985_v31 = vpop.f32.mrb[104].mxu0 }
 0x206   : > { %v5983_v24 = vpop.eup %5982  ;;  %6002 = vpow2.f32 %v4934_v51  ;;  %5241 = vmatpush1.bf16.msra.mxu1 %v5240_v50  ;;  %10835 = vst [vmem:[#allocation6_spill] sm:$0xff] %v8985_v31  ;;  %v4945_v50 = vmul.f32 -1.442695, %v8980_v58  ;;  %v10837_v51 = vld [vmem:[#allocation9_spill] sm:$0xff]  ;;  %v8997_v44 = vpop.f32.mrb[105].mxu0 }
 0x207   : > { %v5985_v48 = vpop.eup %5984  ;;  %6004 = vrcp.f32 %v3020_v59  ;;  %5287 = vmatprep.subr.bf16.mxu0 %v5286_v52  ;;  %v8990_v13 = vmul.f32 %v5983_v24, %v8847_v46  ;;  %v8995_v49 = vadd.f32 %v10837_v51, %v7947_v37  ;;  %10838 = vst [vmem:[#allocation21_spill] sm:$0xff] %v8997_v44  ;;  %v8999_v28 = vpop.f32.mrb[89].mxu1  ;;  %v10840_v52 = vld [vmem:[#allocation10_spill] sm:$0xff] }
 0x208   : > { %v5987_v34 = vpop.eup %5986  ;;  %v2942_v7 = vadd.f32 1.0, %v5985_v48  ;;  %6006 = vpow2.f32 %v5013_v36  ;;  %5289 = vmatpush1.bf16.msra.mxu0 %v5288_v40  ;;  %10839 = vst [vmem:[#allocation45_spill] sm:$0xff] %v8999_v28  ;;  %v9004_v24 = vadd.f32 %v10840_v52, %v8021_v43  ;;  %v9022_v31 = vpop.f32.mrb[106].mxu0 }
 0x209   : > { %v5989_v39 = vpop.eup %5988  ;;  %6008 = vpow2.f32 %v4935_v32  ;;  %v5022_v28 = vmul.f32 -1.442695, %v8995_v49  ;;  %10844 = vst [vmem:[#allocation70_spill] sm:$0xff] %v9022_v31 }
 0x20a   : > { %v5991_v40 = vpop.eup %5990  ;;  %6010 = vrcp.f32 %v2942_v7  ;;  %v2951_v36 = vadd.f32 1.0, %v5989_v39  ;;  %v9008_v7 = vpop.f32.mrb[90].mxu1 }
 0x20b   : > { %v5993_v59 = vpop.eup %5992  ;;  %v3979_v19 = vmul.f32 %v5991_v40, %v8865_v9  ;;  %6012 = vpow2.f32 %v4944_v12  ;;  %10841 = vst [vmem:[#allocation8_spill] sm:$0xff] %v9008_v7  ;;  %v10842_v12 = vld [vmem:[#allocation13_spill] sm:$0xff] }
 0x20c   : > { %v5995_v46 = vpop.eup %5994  ;;  %6014 = vrcp.f32 %v2951_v36  ;;  %v2952_v32 = vadd.f32 1.0, %v5993_v59  ;;  %v9012_v40 = vadd.f32 %v10842_v12, %v7947_v37  ;;  %v3891_v59 = vmul.f32 %v5977_v21, %v8828_v0  ;;  %v10845_v21 = vld [vmem:[#allocation14_spill] sm:$0xff] }
 0x20d   : > { %v5997_v48 = vpop.eup %5996  ;;  %v5244_v51 = vpack.c.bf16 %v3979_v19, %v8990_v13  ;;  %v3029_v23 = vadd.f32 1.0, %v5995_v46  ;;  %6016 = vpow2.f32 %v4945_v50  ;;  %v10843_v13 = vld [vmem:[#allocation71_spill] sm:$0xff]  ;;  %v3970_v46 = vmul.f32 %v5987_v34, %v8855_v6 }
 0x20e   : > { %v5999_v39 = vpop.eup %5998  ;;  %6018 = vrcp.f32 %v2952_v32  ;;  %v3030_v9 = vadd.f32 1.0, %v5997_v48  ;;  %v9018_v50 = vadd.f32 %v10843_v13, %v8450_v18  ;;  %v5023_v48 = vmul.f32 -1.442695, %v9004_v24 }
 0x20f   : > { %v6001_v36 = vpop.eup %6000  ;;  %v3901_v52 = vmul.f32 %v5999_v39, %v8891_v47  ;;  %6020 = vrcp.f32 %v3029_v23  ;;  %v9027_v23 = vadd.f32 %v10845_v21, %v8021_v43  ;;  %v5032_v34 = vmul.f32 -1.442695, %v9012_v40 }
 0x210   : > { %v6003_v19 = vpop.eup %6002  ;;  %6022 = vrcp.f32 %v3030_v9  ;;  %v3039_v32 = vadd.f32 1.0, %v6001_v36  ;;  %v4954_v9 = vmul.f32 -1.442695, %v9018_v50  ;;  %v9031_v36 = vpop.f32.mrb[91].mxu1 }
 0x211   : > { %v6005_v7 = vpop.eup %6004  ;;  %v5292_v12 = vpack.c.bf16 %v3901_v52, %v3891_v59  ;;  %v2961_v44 = vadd.f32 1.0, %v6003_v19  ;;  %6024 = vpow2.f32 %v5022_v28  ;;  %10846 = vst [vmem:[#allocation48_spill] sm:$0xff] %v9031_v36  ;;  %v10847_v52 = vld [vmem:[#allocation72_spill] sm:$0xff]  ;;  %v3892_v19 = vmul.f32 %v8976_v3, %v8837_v8  ;;  %v10850_v8 = vld [vmem:[#allocation31_spill] sm:$0xff] }
 0x212   : > { %v6007_v0 = vpop.eup %6006  ;;  %v3980_v47 = vmul.f32 %v6005_v7, %v8899_v41  ;;  %6026 = vrcp.f32 %v3039_v32  ;;  %v9035_v41 = vadd.f32 %v10847_v52, %v8464_v62  ;;  %v10848_v32 = vld [vmem:[#allocation22_spill] sm:$0xff] }
 0x213   : > { %v6009_v39 = vpop.eup %6008  ;;  %6028 = vrcp.f32 %v2961_v44  ;;  %v3040_v6 = vadd.f32 1.0, %v6007_v0  ;;  %v9042_v0 = vadd.f32 %v10848_v32, %v8450_v18 }
 0x214   : > { %v6011_v28 = vpop.eup %6010  ;;  %v2962_v59 = vadd.f32 1.0, %v6009_v39  ;;  %6030 = vpow2.f32 %v5023_v48  ;;  %v5242_v7 = vpack.c.bf16 %v3980_v47, %v3970_v46  ;;  %v5033_v48 = vmul.f32 -1.442695, %v9027_v23  ;;  %v10849_v46 = vld [vmem:[#allocation73_spill] sm:$0xff] }
 0x215   : > { %v6013_v13 = vpop.eup %6012  ;;  %v3902_v44 = vmul.f32 %v6011_v28, %v8904_v63  ;;  %6032 = vrcp.f32 %v3040_v6  ;;  %v9047_v47 = vadd.f32 %v10849_v46, %v8464_v62  ;;  %v9051_v63 = vadd.f32 %v10850_v8, %v7947_v37  ;;  %v10853_v8 = vld [vmem:[#allocation46_spill] sm:$0xff] }
 0x216   : > { %v6015_v21 = vpop.eup %6014  ;;  %6034 = vrcp.f32 %v2962_v59  ;;  %v2971_v39 = vadd.f32 1.0, %v6013_v13  ;;  %5243 = vmatprep.subr.bf16.mxu1 %v5242_v7  ;;  %v4955_v59 = vmul.f32 -1.442695, %v9035_v41  ;;  %v10851_v13 = vld [vmem:[#allocation20_spill] sm:$0xff]  ;;  %v4964_v46 = vmul.f32 -1.442695, %v9042_v0 }
 0x217   : > { %v6017_v52 = vpop.eup %6016  ;;  %6036 = vpow2.f32 %v5032_v34  ;;  %v5290_v3 = vpack.c.bf16 %v3902_v44, %v3892_v19  ;;  %5245 = vmatpush1.bf16.msra.mxu1 %v5244_v51  ;;  %v9056_v7 = vadd.f32 %v10851_v13, %v8021_v43  ;;  %v9058_v34 = vpop.f32.mrb[107].mxu0  ;;  %v9063_v36 = vadd.f32 %v10853_v8, %v7947_v37 }
 0x218   : > { %v6019_v6 = vpop.eup %6018  ;;  %6038 = vrcp.f32 %v2971_v39  ;;  %v2972_v28 = vadd.f32 1.0, %v6017_v52  ;;  %10852 = vst [vmem:[#allocation49_spill] sm:$0xff] %v9058_v34  ;;  %v4965_v39 = vmul.f32 -1.442695, %v9047_v47  ;;  %v5042_v52 = vmul.f32 -1.442695, %v9051_v63 }
 0x219   : > { %v6021_v32 = vpop.eup %6020  ;;  %6040 = vpow2.f32 %v4954_v9  ;;  %5291 = vmatprep.subr.bf16.mxu0 %v5290_v3  ;;  %v9068_v13 = vpop.f32.mrb[108].mxu0  ;;  %v5043_v3 = vmul.f32 -1.442695, %v9056_v7 }
 0x21a   : > { %v6023_v51 = vpop.eup %6022  ;;  %6042 = vrcp.f32 %v2972_v28  ;;  %5293 = vmatpush1.bf16.msra.mxu0 %v5292_v12  ;;  %v3989_v44 = vmul.f32 %v6021_v32, %v8915_v15  ;;  %10854 = vst [vmem:[#allocation66_spill] sm:$0xff] %v9068_v13  ;;  %v9070_v9 = vpop.f32.mrb[92].mxu1  ;;  %v10858_v32 = vld [vmem:[#allocation25_spill] sm:$0xff] }
 0x21b   : > { %v6025_v19 = vpop.eup %6024  ;;  %6044 = vpow2.f32 %v5033_v48  ;;  %10855 = vst [vmem:[#allocation18_spill] sm:$0xff] %v9070_v9  ;;  %v9073_v8 = vpop.f32.mrb[109].mxu0  ;;  %v5052_v48 = vmul.f32 -1.442695, %v9063_v36  ;;  %v9081_v13 = vadd.f32 %v10858_v32, %v8450_v18  ;;  %v3990_v5 = vmul.f32 %v6023_v51, %v8924_v45 }
 0x21c   : > { %v6027_v34 = vpop.eup %6026  ;;  %v3049_v31 = vadd.f32 1.0, %v6025_v19  ;;  %6046 = vpow2.f32 %v4955_v59  ;;  %10856 = vst [vmem:[#allocation7_spill] sm:$0xff] %v9073_v8  ;;  %v9075_v12 = vpop.f32.mrb[93].mxu1  ;;  %v3911_v59 = vmul.f32 %v6015_v21, %v8911_v60 }
 0x21d   : > { %10857 = vst [vmem:[#allocation64_spill] sm:$0xff] %v9075_v12  ;;  %v6029_v28 = vpop.eup %6028  ;;  %v3999_v15 = vmul.f32 %v6027_v34, %v8928_v17  ;;  %6048 = vpow2.f32 %v4964_v46  ;;  %v9083_v9 = vpop.f32.mrb[94].mxu1  ;;  %v10860_v34 = vld [vmem:[#allocation69_spill] sm:$0xff]  ;;  %v4974_v21 = vmul.f32 -1.442695, %v9081_v13 }
 0x21e   : > { %10859 = vst [vmem:[#allocation12_spill] sm:$0xff] %v9083_v9  ;;  %v6031_v19 = vpop.eup %6030  ;;  %v3921_v8 = vmul.f32 %v6029_v28, %v8944_v22  ;;  %6050 = vrcp.f32 %v3049_v31  ;;  %v9090_v46 = vadd.f32 %v10860_v34, %v8021_v43  ;;  %v9092_v32 = vpop.f32.mrb[110].mxu0  ;;  %v3912_v22 = vmul.f32 %v6019_v6, %v8920_v11 }
 0x21f   : > { %v6033_v12 = vpop.eup %6032  ;;  %v5248_v14 = vpack.c.bf16 %v3999_v15, %v3989_v44  ;;  %v3050_v17 = vadd.f32 1.0, %v6031_v19  ;;  %6052 = vpow2.f32 %v4965_v39  ;;  %v9094_v2 = vpop.f32.mrb[95].mxu1  ;;  %v10862_v15 = vld [vmem:[#allocation27_spill] sm:$0xff] }
 0x220   : > { %v6035_v9 = vpop.eup %6034  ;;  %v5296_v4 = vpack.c.bf16 %v3921_v8, %v3911_v59  ;;  %v4000_v60 = vmul.f32 %v6033_v12, %v8954_v57  ;;  %6054 = vpow2.f32 %v5042_v52  ;;  %v5053_v8 = vmul.f32 -1.442695, %v9090_v46  ;;  %v10861_v57 = vld [vmem:[#allocation74_spill] sm:$0xff]  ;;  %v9109_v6 = vpop.f32.mrb[111].mxu0 }
 0x221   : > { %v6037_v45 = vpop.eup %6036  ;;  %v3922_v31 = vmul.f32 %v6035_v9, %v8960_v42  ;;  %6056 = vrcp.f32 %v3050_v17  ;;  %v9105_v52 = vadd.f32 %v10861_v57, %v8464_v62  ;;  %v9116_v34 = vpop.f32.mrb[112].mxu0 }
 0x222   : > { %v9100_v51 = vpop.eup %6038  ;;  %v3059_v44 = vadd.f32 1.0, %v6037_v45  ;;  %6058 = vpow2.f32 %v5043_v3  ;;  %v5246_v39 = vpack.c.bf16 %v4000_v60, %v3990_v5  ;;  %10863 = vst [vmem:[#allocation65_spill] sm:$0xff] %v9116_v34 }
 0x223   : > { %v6041_v28 = vpop.eup %6040  ;;  %6060 = vpow2.f32 %v5052_v48  ;;  %v5294_v12 = vpack.c.bf16 %v3922_v31, %v3912_v22  ;;  %v9113_v48 = vadd.f32 %v10862_v15, %v8450_v18  ;;  %v4975_v17 = vmul.f32 -1.442695, %v9105_v52  ;;  %v9118_v22 = vpop.f32.mrb[96].mxu1  ;;  %v10865_v31 = vld [vmem:[#allocation23_spill] sm:$0xff] }
 0x224   : > { %v9107_v11 = vpop.eup %6042  ;;  %6062 = vrcp.f32 %v3059_v44  ;;  %v2981_v42 = vadd.f32 1.0, %v6041_v28  ;;  %5247 = vmatprep.subr.bf16.mxu1 %v5246_v39  ;;  %10864 = vst [vmem:[#allocation51_spill] sm:$0xff] %v9118_v22  ;;  %v9124_v44 = vpop.f32.mrb[113].mxu0 }
 0x225   : > { %v6045_v9 = vpop.eup %6044  ;;  %6064 = vpow2.f32 %v4974_v21  ;;  %5295 = vmatprep.subr.bf16.mxu0 %v5294_v12  ;;  %5249 = vmatpush1.bf16.msra.mxu1 %v5248_v14  ;;  %v9122_v21 = vadd.f32 %v10865_v31, %v7947_v37  ;;  %10866 = vst [vmem:[#allocation52_spill] sm:$0xff] %v9124_v44  ;;  %v4984_v28 = vmul.f32 -1.442695, %v9113_v48  ;;  %v9129_v12 = vadd.f32 %v8525_v1, %v8464_v62  ;;  %v10868_v1 = vld [vmem:[#allocation75_spill] sm:$0xff]  ;;  %v10869_v31 = vld [vmem:[#allocation76_spill] sm:$0xff] }
 0x226   : > { %v6047_v5 = vpop.eup %6046  ;;  %6066 = vrcp.f32 %v2981_v42  ;;  %v3060_v3 = vadd.f32 1.0, %v6045_v9  ;;  %5297 = vmatpush1.bf16.msra.mxu0 %v5296_v4  ;;  %v10867_v42 = vld [vmem:[#allocation29_spill] sm:$0xff] }
 0x227   : > { %v6049_v19 = vpop.eup %6048  ;;  %v2982_v59 = vadd.f32 1.0, %v6047_v5  ;;  %6068 = vpow2.f32 %v5053_v8  ;;  %v9133_v9 = vadd.f32 %v10867_v42, %v8021_v43 }
 0x228   : > { %v6051_v60 = vpop.eup %6050  ;;  %6070 = vrcp.f32 %v3060_v3  ;;  %v2991_v45 = vadd.f32 1.0, %v6049_v19 }
 0x229   : > { %v6053_v14 = vpop.eup %6052  ;;  %6072 = vrcp.f32 %v2982_v59  ;;  %v9136_v15 = vmul.f32 %v6051_v60, %v8995_v49  ;;  %v5062_v59 = vmul.f32 -1.442695, %v9122_v21  ;;  %v4985_v60 = vmul.f32 -1.442695, %v9129_v12 }
 0x22a   : > { %v6055_v4 = vpop.eup %6054  ;;  %6074 = vrcp.f32 %v2991_v45  ;;  %v2992_v39 = vadd.f32 1.0, %v6053_v14  ;;  %v9141_v14 = vadd.f32 %v10868_v1, %v7947_v37 }
 0x22b   : > { %v6057_v8 = vpop.eup %6056  ;;  %v3069_v57 = vadd.f32 1.0, %v6055_v4  ;;  %6076 = vpow2.f32 %v4975_v17  ;;  %v9145_v4 = vadd.f32 %v10869_v31, %v8021_v43  ;;  %v10872_v31 = vld [vmem:[#allocation77_spill] sm:$0xff] }
 0x22c   : > { %v6059_v5 = vpop.eup %6058  ;;  %6078 = vrcp.f32 %v2992_v39  ;;  %v9147_v39 = vpop.f32.mrb[97].mxu1  ;;  %v9158_v44 = vadd.f32 %v10872_v31, %v8450_v18 }
 0x22d   : > { %v6061_v3 = vpop.eup %6060  ;;  %6080 = vrcp.f32 %v3069_v57  ;;  %v3070_v19 = vadd.f32 1.0, %v6059_v5  ;;  %10870 = vst [vmem:[#allocation53_spill] sm:$0xff] %v9147_v39  ;;  %v5063_v57 = vmul.f32 -1.442695, %v9133_v9  ;;  %v9152_v5 = vpop.f32.mrb[98].mxu1 }
 0x22e   : > { %v6063_v45 = vpop.eup %6062  ;;  %v3079_v17 = vadd.f32 1.0, %v6061_v3  ;;  %6082 = vpow2.f32 %v4984_v28  ;;  %10871 = vst [vmem:[#allocation19_spill] sm:$0xff] %v9152_v5  ;;  %v3931_v3 = vmul.f32 %v9100_v51, %v8970_v54  ;;  %v9163_v22 = vpop.f32.mrb[99].mxu1  ;;  %v5072_v54 = vmul.f32 -1.442695, %v9141_v14  ;;  %v10873_v51 = vld [vmem:[#allocation78_spill] sm:$0xff] }
 0x22f   : > { %v6065_v42 = vpop.eup %6064  ;;  %v4019_v49 = vmul.f32 %v6063_v45, %v9012_v40  ;;  %6084 = vrcp.f32 %v3070_v19  ;;  %v4010_v40 = vmul.f32 %v6057_v8, %v9004_v24  ;;  %v5073_v8 = vmul.f32 -1.442695, %v9145_v4 }
 0x230   : > { %v6067_v28 = vpop.eup %6066  ;;  %6086 = vrcp.f32 %v3079_v17  ;;  %v3001_v1 = vadd.f32 1.0, %v6065_v42  ;;  %v9168_v17 = vadd.f32 %v10873_v51, %v8464_v62 }
 0x231   : > { %v6069_v39 = vpop.eup %6068  ;;  %v5252_v19 = vpack.c.bf16 %v4019_v49, %v9136_v15  ;;  %v3941_v45 = vmul.f32 %v6067_v28, %v9018_v50  ;;  %6088 = vpow2.f32 %v5062_v59  ;;  %v3932_v15 = vmul.f32 %v9107_v11, %v8980_v58  ;;  %v9179_v28 = vpop.f32.mrb[114].mxu0 }
 0x232   : > { %v6071_v5 = vpop.eup %6070  ;;  %6090 = vrcp.f32 %v3001_v1  ;;  %v3080_v34 = vadd.f32 1.0, %v6069_v39  ;;  %v10874_v39 = vld [vmem:[#allocation30_spill] sm:$0xff]  ;;  %10875 = vst [vmem:[#allocation54_spill] sm:$0xff] %v9179_v28  ;;  %v4995_v11 = vmul.f32 -1.442695, %v9168_v17 }
 0x233   : > { %v6073_v42 = vpop.eup %6072  ;;  %v5300_v31 = vpack.c.bf16 %v3941_v45, %v3931_v3  ;;  %v4020_v24 = vmul.f32 %v6071_v5, %v9027_v23  ;;  %6092 = vpow2.f32 %v4985_v60  ;;  %v9177_v49 = vadd.f32 %v10874_v39, %v8450_v18  ;;  %v10876_v60 = vld [vmem:[#allocation79_spill] sm:$0xff]  ;;  %v9186_v45 = vpop.f32.mrb[115].mxu0 }
 0x234   : > { %v6075_v50 = vpop.eup %6074  ;;  %v3942_v59 = vmul.f32 %v6073_v42, %v9035_v41  ;;  %6094 = vrcp.f32 %v3080_v34  ;;  %v4994_v23 = vmul.f32 -1.442695, %v9158_v44  ;;  %v9184_v5 = vadd.f32 %v10876_v60, %v7947_v37  ;;  %10877 = vst [vmem:[#allocation26_spill] sm:$0xff] %v9186_v45 }
 0x235   : > { %v6077_v1 = vpop.eup %6076  ;;  %6096 = vpow2.f32 %v5063_v57  ;;  %v5250_v3 = vpack.c.bf16 %v4020_v24, %v4010_v40  ;;  %v10878_v57 = vld [vmem:[#allocation80_spill] sm:$0xff]  ;;  %v5004_v40 = vmul.f32 -1.442695, %v9177_v49 }
 0x236   : > { %v9188_v58 = vpop.eup %6078  ;;  %v3002_v41 = vadd.f32 1.0, %v6077_v1  ;;  %6098 = vpow2.f32 %v5072_v54  ;;  %v5298_v34 = vpack.c.bf16 %v3942_v59, %v3932_v15  ;;  %v9193_v42 = vadd.f32 %v10878_v57, %v8464_v62  ;;  %v10879_v24 = vld [vmem:[#allocation32_spill] sm:$0xff]  ;;  %v9202_v1 = vpop.f32.mrb[116].mxu0 }
 0x237   : > { %v6081_v51 = vpop.eup %6080  ;;  %6100 = vpow2.f32 %v5073_v8  ;;  %5251 = vmatprep.subr.bf16.mxu1 %v5250_v3  ;;  %v9198_v60 = vadd.f32 %v10879_v24, %v8021_v43  ;;  %v5082_v8 = vmul.f32 -1.442695, %v9184_v5  ;;  %10880 = vst [vmem:[#allocation28_spill] sm:$0xff] %v9202_v1  ;;  %v9204_v3 = vpop.f32.mrb[100].mxu1 }
 0x238   : > { %v6083_v39 = vpop.eup %6082  ;;  %6102 = vrcp.f32 %v3002_v41  ;;  %5299 = vmatprep.subr.bf16.mxu0 %v5298_v34  ;;  %5253 = vmatpush1.bf16.msra.mxu1 %v5252_v19  ;;  %v4029_v15 = vmul.f32 %v6081_v51, %v9051_v63  ;;  %10881 = vst [vmem:[#allocation57_spill] sm:$0xff] %v9204_v3  ;;  %v9206_v57 = vpop.f32.mrb[117].mxu0  ;;  %v5005_v63 = vmul.f32 -1.442695, %v9193_v42  ;;  %v3951_v3 = vmul.f32 %v6075_v50, %v9042_v0 }
 0x239   : > { %v6085_v54 = vpop.eup %6084  ;;  %v3011_v59 = vadd.f32 1.0, %v6083_v39  ;;  %6104 = vpow2.f32 %v4994_v23  ;;  %5301 = vmatpush1.bf16.msra.mxu0 %v5300_v31  ;;  %10882 = vst [vmem:[#allocation44_spill] sm:$0xff] %v9206_v57  ;;  %v9208_v24 = vpop.f32.mrb[101].mxu1  ;;  %v10884_v23 = vld [vmem:[#allocation81_spill] sm:$0xff]  ;;  %v5083_v57 = vmul.f32 -1.442695, %v9198_v60 }
 0x23a   : > { %v6087_v41 = vpop.eup %6086  ;;  %6106 = vpow2.f32 %v4995_v11  ;;  %10883 = vst [vmem:[#allocation59_spill] sm:$0xff] %v9208_v24  ;;  %v9214_v51 = vadd.f32 %v10884_v23, %v7947_v37  ;;  %v9216_v31 = vpop.f32.mrb[102].mxu1  ;;  %v4030_v1 = vmul.f32 %v6085_v54, %v9056_v7 }
 0x23b   : > { %v6089_v34 = vpop.eup %6088  ;;  %v4039_v19 = vmul.f32 %v6087_v41, %v9063_v36  ;;  %6108 = vrcp.f32 %v3011_v59  ;;  %10885 = vst [vmem:[#allocation61_spill] sm:$0xff] %v9216_v31  ;;  %v9222_v41 = vpop.f32.mrb[103].mxu1 }
 0x23c   : > { %v6091_v39 = vpop.eup %6090  ;;  %v3089_v11 = vadd.f32 1.0, %v6089_v34  ;;  %6110 = vpow2.f32 %v5004_v40  ;;  %v10886_v34 = vld [vmem:[#allocation33_spill] sm:$0xff] }
 0x23d   : > { %v6093_v24 = vpop.eup %6092  ;;  %v5256_v36 = vpack.c.bf16 %v4039_v19, %v4029_v15  ;;  %v3961_v59 = vmul.f32 %v6091_v39, %v9081_v13  ;;  %6112 = vpow2.f32 %v5082_v8  ;;  %v9227_v7 = vadd.f32 %v10886_v34, %v8021_v43  ;;  %v9237_v39 = vpop.f32.mrb[118].mxu0 }
 0x23e   : > { %v6095_v23 = vpop.eup %6094  ;;  %6114 = vrcp.f32 %v3089_v11  ;;  %v3012_v45 = vadd.f32 1.0, %v6093_v24  ;;  %v5092_v15 = vmul.f32 -1.442695, %v9214_v51  ;;  %10888 = vst [vmem:[#allocation34_spill] sm:$0xff] %v9237_v39 }
 0x23f   : > { %v6097_v31 = vpop.eup %6096  ;;  %v5304_v28 = vpack.c.bf16 %v3961_v59, %v3951_v3  ;;  %v4040_v0 = vmul.f32 %v6095_v23, %v9090_v46  ;;  %6116 = vpow2.f32 %v5005_v63  ;;  %v10887_v3 = vld [vmem:[#allocation55_spill] sm:$0xff]  ;;  %v5093_v11 = vmul.f32 -1.442695, %v9227_v7 }
 0x240   : > { %v6099_v50 = vpop.eup %6098  ;;  %6118 = vrcp.f32 %v3012_v45  ;;  %v3090_v40 = vadd.f32 1.0, %v6097_v31  ;;  %v9232_v46 = vadd.f32 %v10887_v3, %v8450_v18  ;;  %v3952_v45 = vmul.f32 %v9188_v58, %v9047_v47 }
 0x241   : > { %v6101_v54 = vpop.eup %6100  ;;  %v3099_v13 = vadd.f32 1.0, %v6099_v50  ;;  %6120 = vpow2.f32 %v5083_v57  ;;  %v5254_v8 = vpack.c.bf16 %v4040_v0, %v4030_v1  ;;  %v10889_v0 = vld [vmem:[#allocation35_spill] sm:$0xff] }
 0x242   : > { %v6103_v19 = vpop.eup %6102  ;;  %6122 = vrcp.f32 %v3090_v40  ;;  %v3100_v24 = vadd.f32 1.0, %v6101_v54  ;;  %v9244_v50 = vadd.f32 %v10889_v0, %v8464_v62  ;;  %v5014_v58 = vmul.f32 -1.442695, %v9232_v46  ;;  %v9247_v40 = vpop.f32.mrb[119].mxu0 }
 0x243   : > { %v6105_v63 = vpop.eup %6104  ;;  %v3962_v31 = vmul.f32 %v6103_v19, %v9105_v52  ;;  %6124 = vrcp.f32 %v3099_v13  ;;  %5255 = vmatprep.subr.bf16.mxu1 %v5254_v8  ;;  %10890 = vst [vmem:[#allocation11_spill] sm:$0xff] %v9247_v40 }
 0x244   : > { %v6107_v57 = vpop.eup %6106  ;;  %6126 = vrcp.f32 %v3100_v24  ;;  %v3021_v1 = vadd.f32 1.0, %v6105_v63  ;;  %5257 = vmatpush1.bf16.msra.mxu1 %v5256_v36  ;;  %v10891_v36 = vld [vmem:[#allocation56_spill] sm:$0xff]  ;;  %v5015_v63 = vmul.f32 -1.442695, %v9244_v50 }
 0x245   : > { %v9240_v59 = vpop.eup %6108  ;;  %v3022_v23 = vadd.f32 1.0, %v6107_v57  ;;  %6128 = vpow2.f32 %v5092_v15  ;;  %v5302_v47 = vpack.c.bf16 %v3962_v31, %v3952_v45  ;;  %v9251_v13 = vadd.f32 %v10891_v36, %v8450_v18  ;;  %v10892_v15 = vld [vmem:[#allocation60_spill] sm:$0xff]  ;;  %v10893_v45 = vld [vmem:[#allocation63_spill] sm:$0xff]  ;;  %v9274_v36 = vpop.f32.mrb[104].mxu1 }
 0x246   : > { %v6111_v52 = vpop.eup %6110  ;;  %6130 = vrcp.f32 %v3021_v1  ;;  %v9255_v8 = vadd.f32 %v10892_v15, %v7947_v37  ;;  %v9260_v31 = vadd.f32 %v10893_v45, %v8464_v62  ;;  %10897 = vst [vmem:[#allocation67_spill] sm:$0xff] %v9274_v36 }
 0x247   : > { %v6113_v34 = vpop.eup %6112  ;;  %6132 = vrcp.f32 %v3022_v23  ;;  %v3031_v54 = vadd.f32 1.0, %v6111_v52  ;;  %5303 = vmatprep.subr.bf16.mxu0 %v5302_v47  ;;  %v10894_v23 = vld [vmem:[#allocation37_spill] sm:$0xff]  ;;  %v10895_v52 = vld [vmem:[#allocation39_spill] sm:$0xff] }
 0x248   : > { %v6115_v19 = vpop.eup %6114  ;;  %v3109_v24 = vadd.f32 1.0, %v6113_v34  ;;  %6134 = vpow2.f32 %v5093_v11  ;;  %5305 = vmatpush1.bf16.msra.mxu0 %v5304_v28  ;;  %v9264_v0 = vadd.f32 %v10894_v23, %v8021_v43  ;;  %v5024_v11 = vmul.f32 -1.442695, %v9251_v13 }
 0x249   : > { %v6117_v3 = vpop.eup %6116  ;;  %6136 = vrcp.f32 %v3031_v54  ;;  %v5102_v28 = vmul.f32 -1.442695, %v9255_v8  ;;  %v9270_v34 = vadd.f32 %v10895_v52, %v7947_v37  ;;  %v9272_v54 = vpop.f32.mrb[120].mxu0  ;;  %v5025_v52 = vmul.f32 -1.442695, %v9260_v31 }
 0x24a   : > { %v6119_v57 = vpop.eup %6118  ;;  %6138 = vrcp.f32 %v3109_v24  ;;  %v3032_v1 = vadd.f32 1.0, %v6117_v3  ;;  %10896 = vst [vmem:[#allocation38_spill] sm:$0xff] %v9272_v54  ;;  %v4049_v24 = vmul.f32 %v6115_v19, %v9122_v21  ;;  %v9281_v45 = vpop.f32.mrb[121].mxu0  ;;  %v5103_v21 = vmul.f32 -1.442695, %v9264_v0 }
 0x24b   : > { %v6121_v47 = vpop.eup %6120  ;;  %6140 = vpow2.f32 %v5014_v58  ;;  %v9279_v58 = vadd.f32 %v8698_v26, %v8021_v43  ;;  %10898 = vst [vmem:[#allocation68_spill] sm:$0xff] %v9281_v45  ;;  %v9285_v54 = vpop.f32.mrb[105].mxu1  ;;  %v9291_v26 = vadd.f32 %v8725_v29, %v8450_v18 }
 0x24c   : > { %v6123_v15 = vpop.eup %6122  ;;  %6142 = vrcp.f32 %v3032_v1  ;;  %v3110_v3 = vadd.f32 1.0, %v6121_v47  ;;  %10899 = vst [vmem:[#allocation9_spill] sm:$0xff] %v9285_v54  ;;  %v9293_v19 = vpop.f32.mrb[106].mxu1  ;;  %v9299_v47 = vadd.f32 %v8731_v55, %v8464_v62  ;;  %v3972_v55 = vmul.f32 %v6119_v57, %v9129_v12 }
 0x24d   : > { %v6125_v23 = vpop.eup %6124  ;;  %v4050_v40 = vmul.f32 %v6123_v15, %v9133_v9  ;;  %6144 = vpow2.f32 %v5015_v63  ;;  %10900 = vst [vmem:[#allocation10_spill] sm:$0xff] %v9293_v19  ;;  %v5112_v63 = vmul.f32 -1.442695, %v9270_v34  ;;  %v5113_v29 = vmul.f32 -1.442695, %v9279_v58 }
 0x24e   : > { %v6127_v36 = vpop.eup %6126  ;;  %v4059_v39 = vmul.f32 %v6125_v23, %v9141_v14  ;;  %6146 = vrcp.f32 %v3110_v3  ;;  %v9301_v14 = vpop.f32.mrb[107].mxu1  ;;  %v3971_v19 = vmul.f32 %v9240_v59, %v9113_v48  ;;  %v9316_v48 = vadd.f32 %v8746_v25, %v8450_v18 }
 0x24f   : > { %v6129_v1 = vpop.eup %6128  ;;  %v4060_v9 = vmul.f32 %v6127_v36, %v9145_v4  ;;  %6148 = vpow2.f32 %v5024_v11  ;;  %10901 = vst [vmem:[#allocation13_spill] sm:$0xff] %v9301_v14 }
 0x250   : > { %v6131_v15 = vpop.eup %6130  ;;  %v5260_v3 = vpack.c.bf16 %v4059_v39, %v4049_v24  ;;  %v3119_v23 = vadd.f32 1.0, %v6129_v1  ;;  %6150 = vpow2.f32 %v5102_v28  ;;  %v5034_v39 = vmul.f32 -1.442695, %v9291_v26  ;;  %v9310_v24 = vpop.f32.mrb[122].mxu0 }
 0x251   : > { %v6133_v54 = vpop.eup %6132  ;;  %v3981_v4 = vmul.f32 %v6131_v15, %v9158_v44  ;;  %6152 = vpow2.f32 %v5025_v52  ;;  %v5258_v11 = vpack.c.bf16 %v4060_v9, %v4050_v40  ;;  %v5035_v40 = vmul.f32 -1.442695, %v9299_v47 }
 0x252   : > { %v6135_v36 = vpop.eup %6134  ;;  %v3982_v45 = vmul.f32 %v6133_v54, %v9168_v17  ;;  %6154 = vrcp.f32 %v3119_v23  ;;  %v9318_v17 = vpop.f32.mrb[123].mxu0  ;;  %v5044_v25 = vmul.f32 -1.442695, %v9316_v48 }
 0x253   : > { %v9312_v28 = vpop.eup %6136  ;;  %v5308_v1 = vpack.c.bf16 %v3981_v4, %v3971_v19  ;;  %v3120_v14 = vadd.f32 1.0, %v6135_v36  ;;  %6156 = vpow2.f32 %v5103_v21  ;;  %5259 = vmatprep.subr.bf16.mxu1 %v5258_v11  ;;  %v9326_v21 = vadd.f32 %v8748_v16, %v7947_v37  ;;  %v9330_v19 = vpop.f32.mrb[108].mxu1  ;;  %v10902_v4 = vld [vmem:[#allocation16_spill] sm:$0xff] }
 0x254   : > { %v6139_v44 = vpop.eup %6138  ;;  %6158 = vpow2.f32 %v5112_v63  ;;  %5261 = vmatpush1.bf16.msra.mxu1 %v5260_v3  ;;  %v5306_v12 = vpack.c.bf16 %v3982_v45, %v3972_v55  ;;  %v9328_v45 = vpop.f32.mrb[124].mxu0  ;;  %v9336_v3 = vadd.f32 %v8754_v35, %v8464_v62  ;;  %v9340_v16 = vadd.f32 %v8777_v27, %v8021_v43 }
 0x255   : > { %v6141_v59 = vpop.eup %6140  ;;  %6160 = vrcp.f32 %v3120_v14  ;;  %v9332_v14 = vpop.f32.mrb[125].mxu0  ;;  %v9344_v11 = vadd.f32 %v10902_v4, %v7947_v37  ;;  %v4069_v55 = vmul.f32 %v6139_v44, %v9184_v5  ;;  %v9350_v27 = vadd.f32 %v8810_v38, %v8021_v43 }
 0x256   : > { %v9321_v57 = vpop.eup %6142  ;;  %v3041_v54 = vadd.f32 1.0, %v6141_v59  ;;  %6162 = vpow2.f32 %v5113_v29  ;;  %5307 = vmatprep.subr.bf16.mxu0 %v5306_v12  ;;  %v9352_v59 = vpop.f32.mrb[109].mxu1  ;;  %v5123_v5 = vmul.f32 -1.442695, %v9340_v16 }
 0x257   : > { %v6145_v52 = vpop.eup %6144  ;;  %6164 = vpow2.f32 %v5034_v39  ;;  %5309 = vmatpush1.bf16.msra.mxu0 %v5308_v1  ;;  %v5122_v1 = vmul.f32 -1.442695, %v9326_v21 }
 0x258   : > { %v6147_v9 = vpop.eup %6146  ;;  %6166 = vrcp.f32 %v3041_v54  ;;  %v3042_v63 = vadd.f32 1.0, %v6145_v52  ;;  %v5045_v54 = vmul.f32 -1.442695, %v9336_v3 }
 0x259   : > { %v6149_v15 = vpop.eup %6148  ;;  %6168 = vpow2.f32 %v5035_v40  ;;  %v4070_v52 = vmul.f32 %v6147_v9, %v9198_v60 }
 0x25a   : > { %v6151_v23 = vpop.eup %6150  ;;  %6170 = vrcp.f32 %v3042_v63  ;;  %v3051_v29 = vadd.f32 1.0, %v6149_v15  ;;  %v5132_v63 = vmul.f32 -1.442695, %v9344_v11  ;;  %v9359_v15 = vpop.f32.mrb[110].mxu1 }
 0x25b   : > { %v6153_v36 = vpop.eup %6152  ;;  %v3129_v39 = vadd.f32 1.0, %v6151_v23  ;;  %6172 = vpow2.f32 %v5044_v25 }
 0x25c   : > { %v6155_v35 = vpop.eup %6154  ;;  %6174 = vrcp.f32 %v3051_v29  ;;  %v3052_v12 = vadd.f32 1.0, %v6153_v36  ;;  %v10903_v29 = vld [vmem:[#allocation4_spill] sm:$0xff] }
 0x25d   : > { %v6157_v40 = vpop.eup %6156  ;;  %v4079_v37 = vmul.f32 %v6155_v35, %v9214_v51  ;;  %6176 = vrcp.f32 %v3129_v39  ;;  %v450_v51 = vsub.s32 6, %v10903_v29  ;;  %v5133_v39 = vmul.f32 -1.442695, %v9350_v27 }
 0x25e   : > { %v6159_v44 = vpop.eup %6158  ;;  %6178 = vrcp.f32 %v3052_v12  ;;  %v3130_v25 = vadd.f32 1.0, %v6157_v40  ;;  %v454_v60 = vsub.s32 7, %v10903_v29  ;;  %v9367_v12 = vadd.f32 %v8833_v10, %v8450_v18 }
 0x25f   : > { %v6161_v43 = vpop.eup %6160  ;;  %v5264_v38 = vpack.c.bf16 %v4079_v37, %v4069_v55  ;;  %v3139_v23 = vadd.f32 1.0, %v6159_v44  ;;  %6180 = vpow2.f32 %v5122_v1  ;;  %v9371_v55 = vadd.f32 %v8842_v56, %v8464_v62  ;;  %v9373_v1 = vpop.f32.mrb[111].mxu1  ;;  %v6818_v56 = vld [vmem:[%s10562_s2] sm:$0xff] }
 0x260   : > { %v6163_v4 = vpop.eup %6162  ;;  %v4080_v36 = vmul.f32 %v6161_v43, %v9227_v7  ;;  %6182 = vrcp.f32 %v3130_v25  ;;  %v9377_v37 = vadd.f32 %v8857_v61, %v8450_v18  ;;  %v3991_v43 = vmul.f32 %v9312_v28, %v9177_v49 }
 0x261   : > { %v6165_v9 = vpop.eup %6164  ;;  %6184 = vrcp.f32 %v3139_v23  ;;  %v3140_v35 = vadd.f32 1.0, %v6163_v4  ;;  %v9385_v23 = vrot.slane %v6818_v56, %v450_v51  ;;  %v9389_v61 = vadd.f32 %v8870_v33, %v8464_v62  ;;  %v9396_v51 = vpop.f32.mrb[126].mxu0 }
 0x262   : > { %v6167_v40 = vpop.eup %6166  ;;  %v3061_v7 = vadd.f32 1.0, %v6165_v9  ;;  %6186 = vpow2.f32 %v5045_v54  ;;  %v5262_v44 = vpack.c.bf16 %v4080_v36, %v4070_v52  ;;  %v9391_v52 = vrot.slane %v6818_v56, %v454_v60 }
 0x263   : > { %v6169_v25 = vpop.eup %6168  ;;  %v4001_v10 = vmul.f32 %v6167_v40, %v9232_v46  ;;  %6188 = vrcp.f32 %v3140_v35  ;;  %v3992_v46 = vmul.f32 %v9321_v57, %v9193_v42  ;;  %v5054_v33 = vmul.f32 -1.442695, %v9367_v12  ;;  %v9404_v57 = vpop.f32.mrb[127].mxu0 }
 0x264   : > { %v6171_v4 = vpop.eup %6170  ;;  %6190 = vrcp.f32 %v3061_v7  ;;  %v3062_v54 = vadd.f32 1.0, %v6169_v25  ;;  %5263 = vmatprep.subr.bf16.mxu1 %v5262_v44  ;;  %v5055_v60 = vmul.f32 -1.442695, %v9371_v55  ;;  %v9402_v7 = vadd.f32 %v8859_v53, %v9385_v23 }
 0x265   : > { %v6173_v49 = vpop.eup %6172  ;;  %v5312_v28 = vpack.c.bf16 %v4001_v10, %v3991_v43  ;;  %v4002_v36 = vmul.f32 %v6171_v4, %v9244_v50  ;;  %6192 = vpow2.f32 %v5123_v5  ;;  %5265 = vmatpush1.bf16.msra.mxu1 %v5264_v38  ;;  %v9406_v5 = vpop.f32.mrb[112].mxu1  ;;  %v5064_v44 = vmul.f32 -1.442695, %v9377_v37 }
 0x266   : > { %v6175_v9 = vpop.eup %6174  ;;  %6194 = vrcp.f32 %v3062_v54  ;;  %v3071_v35 = vadd.f32 1.0, %v6173_v49  ;;  %v5065_v25 = vmul.f32 -1.442695, %v9389_v61  ;;  %v9414_v53 = vpop.f32.mrb[113].mxu1  ;;  %v9419_v4 = vadd.f32 %v8875_v30, %v9385_v23 }
 0x267   : > { %v6177_v40 = vpop.eup %6176  ;;  %6196 = vpow2.f32 %v5132_v63  ;;  %v5310_v42 = vpack.c.bf16 %v4002_v36, %v3992_v46  ;;  %v9412_v63 = vadd.f32 %v8872_v20, %v9391_v52  ;;  %10904 = vst [vmem:[#allocation71_spill] sm:$0xff] %v9414_v53  ;;  %v4826_v20 = vmul.f32 -1.442695, %v9402_v7  ;;  %v9424_v49 = vpop.f32.mrb[114].mxu1 }
 0x268   : > { %v6179_v50 = vpop.eup %6178  ;;  %6198 = vrcp.f32 %v3071_v35  ;;  %v4089_v10 = vmul.f32 %v6177_v40, %v9255_v8  ;;  %10906 = vst [vmem:[#allocation72_spill] sm:$0xff] %v9424_v49  ;;  %v10907_v35 = vld [vmem:[#allocation15_spill] sm:$0xff] }
 0x269   : > { %v6181_v38 = vpop.eup %6180  ;;  %6200 = vpow2.f32 %v5133_v39  ;;  %5311 = vmatprep.subr.bf16.mxu0 %v5310_v42  ;;  %v9421_v39 = vpop.f32.mrb[128].mxu0 }
 0x26a   : > { %v6183_v43 = vpop.eup %6182  ;;  %v3149_v56 = vadd.f32 1.0, %v6181_v38  ;;  %6202 = vpow2.f32 %v5054_v33  ;;  %5313 = vmatpush1.bf16.msra.mxu0 %v5312_v28  ;;  %10905 = vst [vmem:[#allocation14_spill] sm:$0xff] %v9421_v39  ;;  %v9430_v33 = vadd.f32 %v10907_v35, %v8450_v18  ;;  %v9432_v30 = vpop.f32.mrb[129].mxu0 }
 0x26b   : > { %v6185_v54 = vpop.eup %6184  ;;  %6204 = vpow2.f32 %v5055_v60  ;;  %v4090_v36 = vmul.f32 %v6183_v43, %v9264_v0  ;;  %10908 = vst [vmem:[#allocation22_spill] sm:$0xff] %v9432_v30  ;;  %v4827_v60 = vmul.f32 -1.442695, %v9412_v63  ;;  %v4836_v0 = vmul.f32 -1.442695, %v9419_v4 }
 0x26c   : > { %v6187_v46 = vpop.eup %6186  ;;  %v4099_v8 = vmul.f32 %v6185_v54, %v9270_v34  ;;  %6206 = vrcp.f32 %v3149_v56  ;;  %v9437_v34 = vpop.f32.mrb[115].mxu1  ;;  %v4011_v56 = vmul.f32 %v6175_v9, %v9251_v13 }
 0x26d   : > { %v6189_v28 = vpop.eup %6188  ;;  %v3072_v40 = vadd.f32 1.0, %v6187_v46  ;;  %6208 = vpow2.f32 %v5064_v44  ;;  %10909 = vst [vmem:[#allocation73_spill] sm:$0xff] %v9437_v34  ;;  %v10910_v46 = vld [vmem:[#allocation41_spill] sm:$0xff]  ;;  %v9448_v13 = vpop.f32.mrb[116].mxu1 }
 0x26e   : > { %v6191_v42 = vpop.eup %6190  ;;  %v5268_v38 = vpack.c.bf16 %v4099_v8, %v4089_v10  ;;  %v4100_v49 = vmul.f32 %v6189_v28, %v9279_v58  ;;  %6210 = vpow2.f32 %v5065_v25  ;;  %v9443_v44 = vadd.f32 %v10910_v46, %v9391_v52  ;;  %10911 = vst [vmem:[#allocation31_spill] sm:$0xff] %v9448_v13 }
 0x26f   : > { %v6193_v43 = vpop.eup %6192  ;;  %v4021_v54 = vmul.f32 %v6191_v42, %v9291_v26  ;;  %6212 = vrcp.f32 %v3072_v40  ;;  %v5074_v58 = vmul.f32 -1.442695, %v9430_v33  ;;  %v4012_v8 = vmul.f32 %v6179_v50, %v9260_v31  ;;  %v9452_v40 = vpop.f32.mrb[117].mxu1  ;;  %v10913_v50 = vld [vmem:[#allocation43_spill] sm:$0xff] }
 0x270   : > { %v6195_v35 = vpop.eup %6194  ;;  %v3150_v30 = vadd.f32 1.0, %v6193_v43  ;;  %6214 = vpow2.f32 %v4826_v20  ;;  %v5266_v25 = vpack.c.bf16 %v4100_v49, %v4090_v36  ;;  %10912 = vst [vmem:[#allocation20_spill] sm:$0xff] %v9452_v40  ;;  %v9459_v43 = vpop.f32.mrb[130].mxu0 }
 0x271   : > { %v6197_v10 = vpop.eup %6196  ;;  %v5316_v28 = vpack.c.bf16 %v4021_v54, %v4011_v56  ;;  %v4022_v34 = vmul.f32 %v6195_v35, %v9299_v47  ;;  %6216 = vpow2.f32 %v4827_v60  ;;  %v9456_v47 = vadd.f32 %v10913_v50, %v8464_v62  ;;  %10914 = vst [vmem:[#allocation46_spill] sm:$0xff] %v9459_v43 }
 0x272   : > { %v9450_v26 = vpop.eup %6198  ;;  %6218 = vrcp.f32 %v3150_v30  ;;  %v3159_v9 = vadd.f32 1.0, %v6197_v10  ;;  %5267 = vmatprep.subr.bf16.mxu1 %v5266_v25  ;;  %v4837_v30 = vmul.f32 -1.442695, %v9443_v44 }
 0x273   : > { %v6201_v20 = vpop.eup %6200  ;;  %6220 = vpow2.f32 %v4836_v0  ;;  %5269 = vmatpush1.bf16.msra.mxu1 %v5268_v38  ;;  %v5314_v49 = vpack.c.bf16 %v4022_v34, %v4012_v8  ;;  %v10915_v34 = vld [vmem:[#allocation40_spill] sm:$0xff] }
 0x274   : > { %v6203_v36 = vpop.eup %6202  ;;  %6222 = vrcp.f32 %v3159_v9  ;;  %v3160_v31 = vadd.f32 1.0, %v6201_v20  ;;  %v9463_v54 = vadd.f32 %v10915_v34, %v8450_v18  ;;  %v10916_v8 = vld [vmem:[#allocation36_spill] sm:$0xff]  ;;  %v9470_v20 = vpop.f32.mrb[118].mxu1 }
 0x275   : > { %v6205_v60 = vpop.eup %6204  ;;  %v3081_v42 = vadd.f32 1.0, %v6203_v36  ;;  %6224 = vpow2.f32 %v5074_v58  ;;  %5315 = vmatprep.subr.bf16.mxu0 %v5314_v49  ;;  %v5075_v58 = vmul.f32 -1.442695, %v9456_v47  ;;  %v9468_v9 = vadd.f32 %v10916_v8, %v8464_v62  ;;  %10917 = vst [vmem:[#allocation25_spill] sm:$0xff] %v9470_v20  ;;  %v10918_v49 = vld [vmem:[#allocation50_spill] sm:$0xff]  ;;  %v10922_v8 = vld [vmem:[#allocation5_spill] sm:$0xff] }
 0x276   : > { %v6207_v56 = vpop.eup %6206  ;;  %6226 = vrcp.f32 %v3160_v31  ;;  %v3082_v0 = vadd.f32 1.0, %v6205_v60  ;;  %5317 = vmatpush1.bf16.msra.mxu0 %v5316_v28  ;;  %v9474_v36 = vadd.f32 %v10918_v49, %v9385_v23  ;;  %v10919_v31 = vld [vmem:[#allocation47_spill] sm:$0xff]  ;;  %v9489_v49 = vadd.f32 %v10922_v8, %v8450_v18  ;;  %v9495_v43 = vpop.f32.mrb[119].mxu1 }
 0x277   : > { %v6209_v38 = vpop.eup %6208  ;;  %6228 = vrcp.f32 %v3081_v42  ;;  %v9478_v50 = vadd.f32 %v10919_v31, %v9391_v52  ;;  %v4109_v20 = vmul.f32 %v6207_v56, %v9326_v21  ;;  %10923 = vst [vmem:[#allocation74_spill] sm:$0xff] %v9495_v43  ;;  %v10924_v21 = vld [vmem:[#allocation62_spill] sm:$0xff] }
 0x278   : > { %v6211_v46 = vpop.eup %6210  ;;  %6230 = vrcp.f32 %v3082_v0  ;;  %v3091_v35 = vadd.f32 1.0, %v6209_v38  ;;  %v9481_v0 = vpop.f32.mrb[131].mxu0  ;;  %v9501_v56 = vadd.f32 %v10924_v21, %v9391_v52  ;;  %v5094_v13 = vmul.f32 -1.442695, %v9489_v49 }
 0x279   : > { %v6213_v25 = vpop.eup %6212  ;;  %v3092_v10 = vadd.f32 1.0, %v6211_v46  ;;  %6232 = vpow2.f32 %v4837_v30  ;;  %v5084_v30 = vmul.f32 -1.442695, %v9463_v54  ;;  %10920 = vst [vmem:[#allocation69_spill] sm:$0xff] %v9481_v0  ;;  %v10921_v46 = vld [vmem:[#allocation17_spill] sm:$0xff] }
 0x27a   : > { %v6215_v28 = vpop.eup %6214  ;;  %6234 = vrcp.f32 %v3091_v35  ;;  %v9485_v35 = vadd.f32 %v10921_v46, %v9385_v23 }
 0x27b   : > { %v6217_v60 = vpop.eup %6216  ;;  %6236 = vrcp.f32 %v3092_v10  ;;  %v2853_v42 = vadd.f32 1.0, %v6215_v28  ;;  %v5085_v10 = vmul.f32 -1.442695, %v9468_v9 }
 0x27c   : > { %v6219_v38 = vpop.eup %6218  ;;  %v2854_v34 = vadd.f32 1.0, %v6217_v60  ;;  %6238 = vpow2.f32 %v5075_v58  ;;  %v4846_v60 = vmul.f32 -1.442695, %v9474_v36  ;;  %v4847_v58 = vmul.f32 -1.442695, %v9478_v50 }
 0x27d   : > { %v6221_v31 = vpop.eup %6220  ;;  %6240 = vrcp.f32 %v2853_v42  ;;  %v4110_v40 = vmul.f32 %v6219_v38, %v9340_v16  ;;  %v10925_v16 = vld [vmem:[#allocation58_spill] sm:$0xff] }
 0x27e   : > { %v6223_v28 = vpop.eup %6222  ;;  %6242 = vrcp.f32 %v2854_v34  ;;  %v2863_v0 = vadd.f32 1.0, %v6221_v31  ;;  %v4856_v31 = vmul.f32 -1.442695, %v9485_v35 }
 0x27f   : > { %v6225_v46 = vpop.eup %6224  ;;  %v4119_v8 = vmul.f32 %v6223_v28, %v9344_v11  ;;  %6244 = vpow2.f32 %v5084_v30  ;;  %v9508_v11 = vadd.f32 %v10925_v16, %v8464_v62  ;;  %v9510_v30 = vpop.f32.mrb[120].mxu1 }
 0x280   : > { %v6227_v42 = vpop.eup %6226  ;;  %6246 = vrcp.f32 %v2863_v0  ;;  %v3101_v34 = vadd.f32 1.0, %v6225_v46  ;;  %10926 = vst [vmem:[#allocation27_spill] sm:$0xff] %v9510_v30  ;;  %v4031_v0 = vmul.f32 %v9450_v26, %v9316_v48  ;;  %v10927_v46 = vld [vmem:[#allocation6_spill] sm:$0xff]  ;;  %v9523_v16 = vpop.f32.mrb[132].mxu0 }
 0x281   : > { %v6229_v39 = vpop.eup %6228  ;;  %v5272_v53 = vpack.c.bf16 %v4119_v8, %v4109_v20  ;;  %v4120_v43 = vmul.f32 %v6227_v42, %v9350_v27  ;;  %6248 = vpow2.f32 %v5085_v10  ;;  %v9517_v21 = vadd.f32 %v10927_v46, %v8450_v18  ;;  %v9519_v20 = vpop.f32.mrb[121].mxu1  ;;  %10929 = vst [vmem:[#allocation29_spill] sm:$0xff] %v9523_v16  ;;  %v10931_v46 = vld [vmem:[#allocation21_spill] sm:$0xff] }
 0x282   : > { %v6231_v38 = vpop.eup %6230  ;;  %v4041_v28 = vmul.f32 %v6229_v39, %v9367_v12  ;;  %6250 = vrcp.f32 %v3101_v34  ;;  %10928 = vst [vmem:[#allocation23_spill] sm:$0xff] %v9519_v20  ;;  %v4032_v10 = vmul.f32 %v6213_v25, %v9336_v3  ;;  %v4857_v12 = vmul.f32 -1.442695, %v9501_v56  ;;  %v9526_v39 = vpop.f32.mrb[122].mxu1 }
 0x283   : > { %v6233_v27 = vpop.eup %6232  ;;  %v4042_v8 = vmul.f32 %v6231_v38, %v9371_v55  ;;  %6252 = vpow2.f32 %v4846_v60  ;;  %v5270_v42 = vpack.c.bf16 %v4120_v43, %v4110_v40  ;;  %10930 = vst [vmem:[#allocation75_spill] sm:$0xff] %v9526_v39  ;;  %v9532_v3 = vadd.f32 %v10931_v46, %v8464_v62  ;;  %v9534_v40 = vpop.f32.mrb[133].mxu0 }
 0x284   : > { %v6235_v30 = vpop.eup %6234  ;;  %v5320_v48 = vpack.c.bf16 %v4041_v28, %v4031_v0  ;;  %v2864_v26 = vadd.f32 1.0, %v6233_v27  ;;  %6254 = vpow2.f32 %v4847_v58  ;;  %10932 = vst [vmem:[#allocation76_spill] sm:$0xff] %v9534_v40  ;;  %v5095_v25 = vmul.f32 -1.442695, %v9508_v11  ;;  %v9542_v28 = vpop.f32.mrb[123].mxu1 }
 0x285   : > { %v9528_v34 = vpop.eup %6236  ;;  %6256 = vpow2.f32 %v4856_v31  ;;  %5271 = vmatprep.subr.bf16.mxu1 %v5270_v42  ;;  %v5318_v55 = vpack.c.bf16 %v4042_v8, %v4032_v10  ;;  %v5104_v38 = vmul.f32 -1.442695, %v9517_v21  ;;  %v10933_v31 = vld [vmem:[#allocation24_spill] sm:$0xff]  ;;  %10934 = vst [vmem:[#allocation77_spill] sm:$0xff] %v9542_v28  ;;  %v9554_v42 = vpop.f32.mrb[124].mxu1  ;;  %v9568_v28 = vmul.f32 %v6235_v30, %v9377_v37 }
 0x286   : > { %v6239_v43 = vpop.eup %6238  ;;  %6258 = vrcp.f32 %v2864_v26  ;;  %5273 = vmatpush1.bf16.msra.mxu1 %v5272_v53  ;;  %v9540_v0 = vadd.f32 %v10933_v31, %v9385_v23  ;;  %v5105_v53 = vmul.f32 -1.442695, %v9532_v3  ;;  %10935 = vst [vmem:[#allocation78_spill] sm:$0xff] %v9554_v42  ;;  %v9565_v31 = vpop.f32.mrb[134].mxu0 }
 0x287   : > { %v6241_v60 = vpop.eup %6240  ;;  %v3102_v58 = vadd.f32 1.0, %v6239_v43  ;;  %6260 = vpow2.f32 %v5094_v13  ;;  %5319 = vmatprep.subr.bf16.mxu0 %v5318_v55  ;;  %v9551_v13 = vld.sshfl [vmem:[%s10563_s3] sm:$0x33 pattern:$0x76325410]  ;;  %v10938_v55 = vld [vmem:[#allocation42_spill] sm:$0xff] }
 0x288   : > { %v6243_v27 = vpop.eup %6242  ;;  %6262 = vpow2.f32 %v4857_v12  ;;  %5321 = vmatpush1.bf16.msra.mxu0 %v5320_v48  ;;  %v9545_v8 = vmul.f32 %v6241_v60, %v9402_v7  ;;  %v10936_v48 = vld [vmem:[#allocation45_spill] sm:$0xff]  ;;  %v9560_v7 = vpop.f32.mrb[125].mxu1  ;;  %10939 = vst [vmem:[#allocation79_spill] sm:$0xff] %v9565_v31 }
 0x289   : > { %v6245_v10 = vpop.eup %6244  ;;  %6264 = vrcp.f32 %v3102_v58  ;;  %4278 = vmatmul.mubr.f32.vlgmr.msra.gmra.mrb[146].mxu1 %v9551_v13  ;;  %v9558_v12 = vadd.f32 %v10936_v48, %v9391_v52  ;;  %10937 = vst [vmem:[#allocation30_spill] sm:$0xff] %v9560_v7  ;;  %v4866_v58 = vmul.f32 -1.442695, %v9540_v0 }
 0x28a   : > { %v6247_v26 = vpop.eup %6246  ;;  %v3111_v46 = vadd.f32 1.0, %v6245_v10  ;;  %6266 = vpow2.f32 %v5095_v25  ;;  %4419 = vmatprep.mubr.f32.mxu1 %v10938_v55 }
 0x28b   : > { %v6249_v43 = vpop.eup %6248  ;;  %v3823_v60 = vmul.f32 %v6247_v26, %v9419_v4  ;;  %6268 = vpow2.f32 %v5104_v38  ;;  %v4867_v38 = vmul.f32 -1.442695, %v9558_v12  ;;  %v10940_v26 = vld [vmem:[#allocation8_spill] sm:$0xff] }
 0x28c   : > { %v6251_v42 = vpop.eup %6250  ;;  %6270 = vrcp.f32 %v3111_v46  ;;  %v3112_v10 = vadd.f32 1.0, %v6249_v43  ;;  %v9575_v31 = vadd.f32 %v10940_v26, %v9385_v23  ;;  %v3814_v43 = vmul.f32 %v6243_v27, %v9412_v63 }
 0x28d   : > { %v6253_v25 = vpop.eup %6252  ;;  %v5340_v48 = vpack.c.bf16 %v3823_v60, %v9545_v8  ;;  %v4061_v7 = vmul.f32 %v6251_v42, %v9430_v33  ;;  %6272 = vpow2.f32 %v5105_v53  ;;  %v9579_v53 = vpop.f32.mrb[126].mxu1 }
 0x28e   : > { %v6255_v40 = vpop.eup %6254  ;;  %6274 = vrcp.f32 %v3112_v10  ;;  %v2873_v4 = vadd.f32 1.0, %v6253_v25  ;;  %10941 = vst [vmem:[#allocation80_spill] sm:$0xff] %v9579_v53  ;;  %v10942_v10 = vld [vmem:[#allocation70_spill] sm:$0xff] }
 0x28f   : > { %v6257_v46 = vpop.eup %6256  ;;  %v5324_v37 = vpack.c.bf16 %v4061_v7, %v9568_v28  ;;  %v2874_v30 = vadd.f32 1.0, %v6255_v40  ;;  %6276 = vpow2.f32 %v4866_v58  ;;  %v9584_v25 = vadd.f32 %v10942_v10, %v8450_v18  ;;  %v9587_v40 = vpop.f32.mrb[135].mxu0  ;;  %v10944_v58 = vld [vmem:[#allocation48_spill] sm:$0xff] }
 0x290   : > { %v6259_v8 = vpop.eup %6258  ;;  %6278 = vrcp.f32 %v2873_v4  ;;  %v2883_v33 = vadd.f32 1.0, %v6257_v46  ;;  %v4876_v28 = vmul.f32 -1.442695, %v9575_v31  ;;  %10943 = vst [vmem:[#allocation32_spill] sm:$0xff] %v9587_v40  ;;  %v9591_v4 = vadd.f32 %v10944_v58, %v9391_v52  ;;  %v9632_v53 = vpop.f32.mrb[136].mxu0 }
 0x291   : > { %v6261_v42 = vpop.eup %6260  ;;  %v3824_v60 = vmul.f32 %v6259_v8, %v9443_v44  ;;  %6280 = vrcp.f32 %v2874_v30  ;;  %v4052_v30 = vmul.f32 %v9528_v34, %v9389_v61  ;;  %v5114_v10 = vmul.f32 -1.442695, %v9584_v25  ;;  %10954 = vst [vmem:[#allocation35_spill] sm:$0xff] %v9632_v53 }
 0x292   : > { %v6263_v26 = vpop.eup %6262  ;;  %6282 = vrcp.f32 %v2883_v33  ;;  %v3121_v63 = vadd.f32 1.0, %v6261_v42 }
 0x293   : > { %v6265_v27 = vpop.eup %6264  ;;  %v2884_v7 = vadd.f32 1.0, %v6263_v26  ;;  %6284 = vpow2.f32 %v4867_v38  ;;  %v5338_v44 = vpack.c.bf16 %v3824_v60, %v3814_v43  ;;  %v10945_v26 = vld [vmem:[#allocation49_spill] sm:$0xff]  ;;  %v10946_v43 = vld [vmem:[#allocation66_spill] sm:$0xff] }
 0x294   : > { %v6267_v46 = vpop.eup %6266  ;;  %v4062_v8 = vmul.f32 %v6265_v27, %v9456_v47  ;;  %6286 = vrcp.f32 %v3121_v63  ;;  %v9599_v38 = vadd.f32 %v10945_v26, %v8464_v62  ;;  %v9603_v60 = vadd.f32 %v10946_v43, %v8450_v18  ;;  %v9605_v47 = vpop.f32.mrb[127].mxu1  ;;  %v10948_v27 = vld [vmem:[#allocation7_spill] sm:$0xff]  ;;  %v10951_v26 = vld [vmem:[#allocation12_spill] sm:$0xff] }
 0x295   : > { %v6269_v33 = vpop.eup %6268  ;;  %6288 = vrcp.f32 %v2884_v7  ;;  %v3122_v42 = vadd.f32 1.0, %v6267_v46  ;;  %5339 = vmatprep.subr.bf16.mxu1 %v5338_v44  ;;  %10947 = vst [vmem:[#allocation81_spill] sm:$0xff] %v9605_v47  ;;  %v4877_v63 = vmul.f32 -1.442695, %v9591_v4  ;;  %v9610_v7 = vadd.f32 %v10948_v27, %v8464_v62 }
 0x296   : > { %v6271_v58 = vpop.eup %6270  ;;  %v3131_v40 = vadd.f32 1.0, %v6269_v33  ;;  %6290 = vpow2.f32 %v4876_v28  ;;  %v5322_v61 = vpack.c.bf16 %v4062_v8, %v4052_v30  ;;  %5341 = vmatpush1.bf16.msra.mxu1 %v5340_v48  ;;  %v10949_v28 = vld [vmem:[#allocation18_spill] sm:$0xff]  ;;  %v5115_v48 = vmul.f32 -1.442695, %v9599_v38  ;;  %v10950_v8 = vld [vmem:[#allocation64_spill] sm:$0xff] }
 0x297   : > { %v6273_v34 = vpop.eup %6272  ;;  %6292 = vrcp.f32 %v3122_v42  ;;  %v9614_v33 = vadd.f32 %v10949_v28, %v9385_v23  ;;  %v9619_v42 = vadd.f32 %v10950_v8, %v9391_v52  ;;  %v9623_v43 = vadd.f32 %v10951_v26, %v9385_v23 }
 0x298   : > { %v6275_v44 = vpop.eup %6274  ;;  %6294 = vrcp.f32 %v3131_v40  ;;  %v3132_v46 = vadd.f32 1.0, %v6273_v34  ;;  %5323 = vmatprep.subr.bf16.mxu0 %v5322_v61  ;;  %v9625_v40 = vpop.f32.mrb[128].mxu1  ;;  %v5124_v61 = vmul.f32 -1.442695, %v9603_v60  ;;  %v5125_v8 = vmul.f32 -1.442695, %v9610_v7 }
 0x299   : > { %v6277_v30 = vpop.eup %6276  ;;  %6296 = vpow2.f32 %v5114_v10  ;;  %5325 = vmatpush1.bf16.msra.mxu0 %v5324_v37  ;;  %10952 = vst [vmem:[#allocation33_spill] sm:$0xff] %v9625_v40  ;;  %v9628_v28 = vpop.f32.mrb[129].mxu1  ;;  %v4886_v37 = vmul.f32 -1.442695, %v9614_v33 }
 0x29a   : > { %v6279_v34 = vpop.eup %6278  ;;  %6298 = vrcp.f32 %v3132_v46  ;;  %v2893_v27 = vadd.f32 1.0, %v6277_v30  ;;  %10953 = vst [vmem:[#allocation55_spill] sm:$0xff] %v9628_v28  ;;  %v9637_v46 = vadd.f32 %v9092_v32, %v8450_v18  ;;  %v9639_v30 = vpop.f32.mrb[130].mxu1  ;;  %v9649_v18 = vadd.f32 %v9094_v2, %v9391_v52  ;;  %v421_v32 = vld [vmem:[%s10562_s2 + $0x8] sm:$0x3] }
 0x29b   : > { %v6281_v10 = vpop.eup %6280  ;;  %v3833_v47 = vmul.f32 %v6279_v34, %v9474_v36  ;;  %6300 = vpow2.f32 %v4877_v63  ;;  %10955 = vst [vmem:[#allocation56_spill] sm:$0xff] %v9639_v30  ;;  %v4887_v36 = vmul.f32 -1.442695, %v9619_v42  ;;  %v4896_v63 = vmul.f32 -1.442695, %v9623_v43  ;;  %v9644_v34 = vpop.f32.mrb[137].mxu0 }
 0x29c   : > { %v6283_v26 = vpop.eup %6282  ;;  %6302 = vrcp.f32 %v2893_v27  ;;  %10956 = vst [vmem:[#allocation60_spill] sm:$0xff] %v9644_v34  ;;  %v3834_v27 = vmul.f32 %v6281_v10, %v9478_v50  ;;  %v9656_v34 = vpop.f32.mrb[131].mxu1  ;;  %v5134_v2 = vmul.f32 -1.442695, %v9637_v46 }
 0x29d   : > { %v6285_v40 = vpop.eup %6284  ;;  %v3843_v28 = vmul.f32 %v6283_v26, %v9485_v35  ;;  %6304 = vpow2.f32 %v5115_v48  ;;  %v4071_v48 = vmul.f32 %v6271_v58, %v9463_v54  ;;  %v10957_v54 = vsub.s32 0, %v10903_v29 }
 0x29e   : > { %v6287_v53 = vpop.eup %6286  ;;  %v2894_v39 = vadd.f32 1.0, %v6285_v40  ;;  %6306 = vpow2.f32 %v5124_v61  ;;  %v9662_v61 = vadd.f32 %v9109_v6, %v8464_v62  ;;  %v4072_v58 = vmul.f32 %v6275_v44, %v9468_v9  ;;  %v10958_v44 = vld [vmem:[#allocation65_spill] sm:$0xff] }
 0x29f   : > { %v6289_v35 = vpop.eup %6288  ;;  %v5344_v26 = vpack.c.bf16 %v3843_v28, %v3833_v47  ;;  %v4081_v30 = vmul.f32 %v6287_v53, %v9489_v49  ;;  %6308 = vpow2.f32 %v5125_v8  ;;  %v9666_v49 = vrot.slane %v421_v32, %v10957_v54  ;;  %v9672_v47 = vpop.f32.mrb[132].mxu1  ;;  %v10961_v54 = vld [vmem:[#allocation51_spill] sm:$0xff] }
 0x2a0   : > { %v6291_v50 = vpop.eup %6290  ;;  %v3844_v40 = vmul.f32 %v6289_v35, %v9501_v56  ;;  %6310 = vrcp.f32 %v2894_v39  ;;  %v4897_v6 = vmul.f32 -1.442695, %v9649_v18  ;;  %v9675_v28 = vpop.f32.mrb[133].mxu1 }
 0x2a1   : > { %v6293_v10 = vpop.eup %6292  ;;  %v5328_v16 = vpack.c.bf16 %v4081_v30, %v4071_v48  ;;  %v2903_v20 = vadd.f32 1.0, %v6291_v50  ;;  %6312 = vpow2.f32 %v4886_v37  ;;  %v9679_v35 = vpop.f32.mrb[138].mxu0  ;;  %v10960_v50 = vsub.s32 1, %v10903_v29 }
 0x2a2   : > { %v9668_v53 = vpop.eup %6294  ;;  %v4082_v56 = vmul.f32 %v6293_v10, %v9508_v11  ;;  %6314 = vpow2.f32 %v4887_v36  ;;  %v5342_v39 = vpack.c.bf16 %v3844_v40, %v3834_v27  ;;  %v5135_v11 = vmul.f32 -1.442695, %v9662_v61  ;;  %v9686_v48 = vpop.f32.mrb[134].mxu1 }
 0x2a3   : > { %v6297_v62 = vpop.eup %6296  ;;  %6316 = vrcp.f32 %v2903_v20  ;;  %v9684_v36 = vadd.f32 %v10958_v44, %v9666_v49  ;;  %10959 = vst [vmem:[#allocation63_spill] sm:$0xff] %v9686_v48  ;;  %v9690_v40 = vrot.slane %v421_v32, %v10960_v50 }
 0x2a4   : > { %v9677_v8 = vpop.eup %6298  ;;  %v3141_v37 = vadd.f32 1.0, %v6297_v62  ;;  %6318 = vpow2.f32 %v4896_v63  ;;  %5343 = vmatprep.subr.bf16.mxu1 %v5342_v39  ;;  %v5326_v30 = vpack.c.bf16 %v4082_v56, %v4072_v58  ;;  %v9694_v58 = vadd.f32 %v10961_v54, %v9385_v23  ;;  %v9697_v62 = vpop.f32.mrb[139].mxu0 }
 0x2a5   : > { %v6301_v9 = vpop.eup %6300  ;;  %6320 = vpow2.f32 %v5134_v2  ;;  %5345 = vmatpush1.bf16.msra.mxu1 %v5344_v26  ;;  %v4828_v39 = vmul.f32 -1.442695, %v9684_v36  ;;  %10962 = vst [vmem:[#allocation37_spill] sm:$0xff] %v9697_v62  ;;  %v9711_v54 = vpop.f32.mrb[135].mxu1 }
 0x2a6   : > { %v6303_v20 = vpop.eup %6302  ;;  %6322 = vrcp.f32 %v3141_v37  ;;  %v2904_v27 = vadd.f32 1.0, %v6301_v9  ;;  %5327 = vmatprep.subr.bf16.mxu0 %v5326_v30  ;;  %v10964_v9 = vld [vmem:[#allocation53_spill] sm:$0xff]  ;;  %v4906_v50 = vmul.f32 -1.442695, %v9694_v58  ;;  %10965 = vst [vmem:[#allocation39_spill] sm:$0xff] %v9711_v54  ;;  %v9733_v54 = vpop.f32.mrb[136].mxu1 }
 0x2a7   : > { %v6305_v63 = vpop.eup %6304  ;;  %6324 = vpow2.f32 %v4897_v6  ;;  %5329 = vmatpush1.bf16.msra.mxu0 %v5328_v16  ;;  %v10963_v16 = vld [vmem:[#allocation52_spill] sm:$0xff]  ;;  %v9705_v44 = vadd.f32 %v10964_v9, %v9391_v52 }
 0x2a8   : > { %v6307_v2 = vpop.eup %6306  ;;  %6326 = vrcp.f32 %v2904_v27  ;;  %v3142_v10 = vadd.f32 1.0, %v6305_v63  ;;  %v9701_v30 = vadd.f32 %v10963_v16, %v9690_v40  ;;  %v10966_v16 = vld [vmem:[#allocation19_spill] sm:$0xff] }
 0x2a9   : > { %v6309_v26 = vpop.eup %6308  ;;  %v3151_v56 = vadd.f32 1.0, %v6307_v2  ;;  %6328 = vpow2.f32 %v5135_v11  ;;  %v9708_v11 = vmul.f32 %v6303_v20, %v9540_v0  ;;  %v9716_v9 = vadd.f32 %v10966_v16, %v9385_v23 }
 0x2aa   : > { %v6311_v6 = vpop.eup %6310  ;;  %6330 = vrcp.f32 %v3142_v10  ;;  %v3152_v37 = vadd.f32 1.0, %v6309_v26  ;;  %v9720_v0 = vadd.f32 %v9163_v22, %v9391_v52  ;;  %v4091_v22 = vmul.f32 %v9668_v53, %v9517_v21  ;;  %v9744_v53 = vpop.f32.mrb[140].mxu0 }
 0x2ab   : > { %v6313_v32 = vpop.eup %6312  ;;  %6332 = vrcp.f32 %v3151_v56  ;;  %10970 = vst [vmem:[#allocation15_spill] sm:$0xff] %v9744_v53 }
 0x2ac   : > { %v6315_v27 = vpop.eup %6314  ;;  %6334 = vrcp.f32 %v3152_v37  ;;  %v2913_v63 = vadd.f32 1.0, %v6313_v32  ;;  %v4829_v32 = vmul.f32 -1.442695, %v9701_v30 }
 0x2ad   : > { %v6317_v2 = vpop.eup %6316  ;;  %v2914_v10 = vadd.f32 1.0, %v6315_v27  ;;  %6336 = vpow2.f32 %v4828_v39  ;;  %v4907_v39 = vmul.f32 -1.442695, %v9705_v44 }
 0x2ae   : > { %v6319_v26 = vpop.eup %6318  ;;  %v3863_v56 = vmul.f32 %v6317_v2, %v9575_v31  ;;  %6338 = vrcp.f32 %v2913_v63  ;;  %v10967_v63 = vld [vmem:[#allocation54_spill] sm:$0xff] }
 0x2af   : > { %v6321_v20 = vpop.eup %6320  ;;  %6340 = vrcp.f32 %v2914_v10  ;;  %v2923_v37 = vadd.f32 1.0, %v6319_v26  ;;  %v9727_v2 = vadd.f32 %v10967_v63, %v9666_v49  ;;  %v3854_v10 = vmul.f32 %v6311_v6, %v9558_v12  ;;  %v10969_v12 = vld [vmem:[#allocation26_spill] sm:$0xff] }
 0x2b0   : > { %v6323_v27 = vpop.eup %6322  ;;  %v5348_v29 = vpack.c.bf16 %v3863_v56, %v9708_v11  ;;  %v3161_v31 = vadd.f32 1.0, %v6321_v20  ;;  %6342 = vpow2.f32 %v4906_v50  ;;  %v4916_v50 = vmul.f32 -1.442695, %v9716_v9  ;;  %v9737_v20 = vpop.f32.mrb[137].mxu1 }
 0x2b1   : > { %v6325_v16 = vpop.eup %6324  ;;  %v4101_v26 = vmul.f32 %v6323_v27, %v9584_v25  ;;  %6344 = vrcp.f32 %v2923_v37  ;;  %v4917_v56 = vmul.f32 -1.442695, %v9720_v0  ;;  %10968 = vst [vmem:[#allocation16_spill] sm:$0xff] %v9737_v20  ;;  %v9742_v25 = vadd.f32 %v10969_v12, %v9690_v40  ;;  %v9760_v12 = vpop.f32.mrb[141].mxu0 }
 0x2b2   : > { %v6327_v62 = vpop.eup %6326  ;;  %6346 = vrcp.f32 %v3161_v31  ;;  %v2924_v11 = vadd.f32 1.0, %v6325_v16  ;;  %v4838_v27 = vmul.f32 -1.442695, %v9727_v2  ;;  %v10971_v31 = vld [vmem:[#allocation28_spill] sm:$0xff]  ;;  %10974 = vst [vmem:[#allocation43_spill] sm:$0xff] %v9760_v12 }
 0x2b3   : > { %v6329_v63 = vpop.eup %6328  ;;  %v5332_v48 = vpack.c.bf16 %v4101_v26, %v4091_v22  ;;  %v3864_v21 = vmul.f32 %v6327_v62, %v9591_v4  ;;  %6348 = vpow2.f32 %v4829_v32  ;;  %v9749_v16 = vadd.f32 %v10971_v31, %v9666_v49  ;;  %v9754_v22 = vpop.f32.mrb[138].mxu1 }
 0x2b4   : > { %v6331_v6 = vpop.eup %6330  ;;  %6350 = vrcp.f32 %v2924_v11  ;;  %v3162_v37 = vadd.f32 1.0, %v6329_v63  ;;  %v4092_v4 = vmul.f32 %v9677_v8, %v9532_v3  ;;  %10972 = vst [vmem:[#allocation41_spill] sm:$0xff] %v9754_v22  ;;  %v10973_v11 = vld [vmem:[#allocation57_spill] sm:$0xff]  ;;  %v4839_v53 = vmul.f32 -1.442695, %v9742_v25  ;;  %v10975_v3 = vld [vmem:[#allocation44_spill] sm:$0xff] }
 0x2b5   : > { %v6333_v20 = vpop.eup %6332  ;;  %v4102_v62 = vmul.f32 %v6331_v6, %v9599_v38  ;;  %6352 = vpow2.f32 %v4907_v39  ;;  %v5346_v32 = vpack.c.bf16 %v3864_v21, %v3854_v10  ;;  %v9758_v63 = vadd.f32 %v10973_v11, %v9385_v23  ;;  %v10976_v6 = vld [vmem:[#allocation59_spill] sm:$0xff]  ;;  %v9772_v11 = vpop.f32.mrb[139].mxu1 }
 0x2b6   : > { %v6335_v26 = vpop.eup %6334  ;;  %6354 = vrcp.f32 %v3162_v37  ;;  %v9765_v8 = vadd.f32 %v10975_v3, %v9690_v40  ;;  %v4848_v21 = vmul.f32 -1.442695, %v9749_v16  ;;  %v9770_v37 = vadd.f32 %v10976_v6, %v9391_v52  ;;  %10977 = vst [vmem:[#allocation40_spill] sm:$0xff] %v9772_v11 }
 0x2b7   : > { %v6337_v31 = vpop.eup %6336  ;;  %6356 = vpow2.f32 %v4916_v50  ;;  %5347 = vmatprep.subr.bf16.mxu1 %v5346_v32  ;;  %v5330_v38 = vpack.c.bf16 %v4102_v62, %v4092_v4  ;;  %v4926_v4 = vmul.f32 -1.442695, %v9758_v63  ;;  %v9780_v32 = vpop.f32.mrb[140].mxu1 }
 0x2b8   : > { %v6339_v39 = vpop.eup %6338  ;;  %v2855_v10 = vadd.f32 1.0, %v6337_v31  ;;  %6358 = vpow2.f32 %v4917_v56  ;;  %5349 = vmatpush1.bf16.msra.mxu1 %v5348_v29  ;;  %v10978_v56 = vld [vmem:[#allocation61_spill] sm:$0xff]  ;;  %10979 = vst [vmem:[#allocation36_spill] sm:$0xff] %v9780_v32  ;;  %v4849_v6 = vmul.f32 -1.442695, %v9765_v8 }
 0x2b9   : > { %v6341_v50 = vpop.eup %6340  ;;  %6360 = vpow2.f32 %v4838_v27  ;;  %5331 = vmatprep.subr.bf16.mxu0 %v5330_v38  ;;  %v3873_v3 = vmul.f32 %v6339_v39, %v9614_v33  ;;  %v9778_v62 = vadd.f32 %v10978_v56, %v9385_v23  ;;  %v9783_v27 = vpop.f32.mrb[141].mxu1  ;;  %v4927_v39 = vmul.f32 -1.442695, %v9770_v37 }
 0x2ba   : > { %v6343_v12 = vpop.eup %6342  ;;  %6362 = vrcp.f32 %v2855_v10  ;;  %5333 = vmatpush1.bf16.msra.mxu0 %v5332_v48  ;;  %10980 = vst [vmem:[#allocation50_spill] sm:$0xff] %v9783_v27  ;;  %v9787_v10 = vpop.f32.mrb[142].mxu0  ;;  %v4111_v48 = vmul.f32 %v6333_v20, %v9603_v60  ;;  %v3874_v32 = vmul.f32 %v6341_v50, %v9619_v42  ;;  %v9798_v60 = vadd.f32 %v9222_v41, %v9391_v52 }
 0x2bb   : > { %v6345_v31 = vpop.eup %6344  ;;  %v2933_v29 = vadd.f32 1.0, %v6343_v12  ;;  %6364 = vpow2.f32 %v4839_v53  ;;  %10981 = vst [vmem:[#allocation47_spill] sm:$0xff] %v9787_v10  ;;  %v4936_v27 = vmul.f32 -1.442695, %v9778_v62  ;;  %v9800_v42 = vpop.f32.mrb[143].mxu0 }
 0x2bc   : > { %v6347_v38 = vpop.eup %6346  ;;  %v3883_v33 = vmul.f32 %v6345_v31, %v9623_v43  ;;  %6366 = vpow2.f32 %v4848_v21  ;;  %v9793_v43 = vpop.f32.mrb[142].mxu1 }
 0x2bd   : > { %v6349_v56 = vpop.eup %6348  ;;  %v4121_v12 = vmul.f32 %v6347_v38, %v9637_v46  ;;  %6368 = vrcp.f32 %v2933_v29 }
 0x2be   : > { %v6351_v53 = vpop.eup %6350  ;;  %v5352_v11 = vpack.c.bf16 %v3883_v33, %v3873_v3  ;;  %v2856_v22 = vadd.f32 1.0, %v6349_v56  ;;  %6370 = vpow2.f32 %v4926_v4  ;;  %v4112_v3 = vmul.f32 %v6335_v26, %v9610_v7 }
 0x2bf   : > { %v6353_v21 = vpop.eup %6352  ;;  %v5336_v31 = vpack.c.bf16 %v4121_v12, %v4111_v48  ;;  %v3884_v10 = vmul.f32 %v6351_v53, %v9649_v18  ;;  %6372 = vpow2.f32 %v4849_v6  ;;  %v10982_v6 = vld [vmem:[#allocation34_spill] sm:$0xff] }
 0x2c0   : > { %v6355_v46 = vpop.eup %6354  ;;  %6374 = vrcp.f32 %v2856_v22  ;;  %v2934_v20 = vadd.f32 1.0, %v6353_v21  ;;  %v9806_v33 = vadd.f32 %v10982_v6, %v9666_v49  ;;  %v4937_v22 = vmul.f32 -1.442695, %v9798_v60 }
 0x2c1   : > { %v6357_v50 = vpop.eup %6356  ;;  %v4122_v4 = vmul.f32 %v6355_v46, %v9662_v61  ;;  %6376 = vpow2.f32 %v4927_v39  ;;  %v5350_v29 = vpack.c.bf16 %v3884_v10, %v3874_v32  ;;  %v10983_v61 = vld [vmem:[#allocation11_spill] sm:$0xff]  ;;  %v9815_v32 = vpop.f32.mrb[143].mxu1 }
 0x2c2   : > { %v6359_v38 = vpop.eup %6358  ;;  %6378 = vrcp.f32 %v2934_v20  ;;  %v2943_v18 = vadd.f32 1.0, %v6357_v50  ;;  %v9813_v26 = vadd.f32 %v10983_v61, %v9690_v40  ;;  %10984 = vst [vmem:[#allocation17_spill] sm:$0xff] %v9815_v32  ;;  %v4858_v53 = vmul.f32 -1.442695, %v9806_v33  ;;  %v10985_v20 = vld [vmem:[#allocation38_spill] sm:$0xff] }
 0x2c3   : > { %v6361_v41 = vpop.eup %6360  ;;  %v2944_v56 = vadd.f32 1.0, %v6359_v38  ;;  %6380 = vpow2.f32 %v4936_v27  ;;  %5351 = vmatprep.subr.bf16.mxu1 %v5350_v29  ;;  %v5334_v48 = vpack.c.bf16 %v4122_v4, %v4112_v3  ;;  %v9820_v50 = vadd.f32 %v10985_v20, %v9666_v49  ;;  %v10986_v38 = vld [vmem:[#allocation67_spill] sm:$0xff]  ;;  %v10992_v20 = vld [vmem:[#allocation13_spill] sm:$0xff] }
 0x2c4   : > { %v9809_v12 = vpop.eup %6362  ;;  %6382 = vrcp.f32 %v2943_v18  ;;  %v2865_v7 = vadd.f32 1.0, %v6361_v41  ;;  %5353 = vmatpush1.bf16.msra.mxu1 %v5352_v11  ;;  %v4859_v11 = vmul.f32 -1.442695, %v9813_v26  ;;  %v9825_v18 = vadd.f32 %v10986_v38, %v9385_v23 }
 0x2c5   : > { %v6365_v39 = vpop.eup %6364  ;;  %6384 = vrcp.f32 %v2944_v56  ;;  %5335 = vmatprep.subr.bf16.mxu0 %v5334_v48 }
 0x2c6   : > { %v6367_v10 = vpop.eup %6366  ;;  %6386 = vrcp.f32 %v2865_v7  ;;  %v2866_v27 = vadd.f32 1.0, %v6365_v39  ;;  %5337 = vmatpush1.bf16.msra.mxu0 %v5336_v31  ;;  %v10987_v31 = vld [vmem:[#allocation68_spill] sm:$0xff]  ;;  %v9836_v7 = vpop.f32.mrb[144].mxu0  ;;  %v4868_v39 = vmul.f32 -1.442695, %v9820_v50 }
 0x2c7   : > { %v6369_v21 = vpop.eup %6368  ;;  %v2875_v46 = vadd.f32 1.0, %v6367_v10  ;;  %6388 = vpow2.f32 %v4937_v22  ;;  %v9829_v6 = vadd.f32 %v10987_v31, %v9690_v40  ;;  %v10988_v22 = vld [vmem:[#allocation9_spill] sm:$0xff]  ;;  %10989 = vst [vmem:[#allocation5_spill] sm:$0xff] %v9836_v7  ;;  %v10990_v10 = vld [vmem:[#allocation10_spill] sm:$0xff] }
 0x2c8   : > { %v6371_v3 = vpop.eup %6370  ;;  %6390 = vrcp.f32 %v2866_v27  ;;  %v9834_v48 = vadd.f32 %v10988_v22, %v9391_v52  ;;  %v9842_v27 = vadd.f32 %v10990_v10, %v9385_v23 }
 0x2c9   : > { %v6373_v4 = vpop.eup %6372  ;;  %6392 = vrcp.f32 %v2875_v46  ;;  %v2953_v29 = vadd.f32 1.0, %v6371_v3  ;;  %4349 = vmatmul.mubr.f32.vlgmr.msra.gmra.mrb[176].mxu0 %v9551_v13  ;;  %v9844_v13 = vpop.f32.mrb[145].mxu0  ;;  %v9848_v3 = vadd.f32 %v10992_v20, %v9391_v52  ;;  %v4869_v38 = vmul.f32 -1.442695, %v9829_v6 }
 0x2ca   : > { %v6375_v41 = vpop.eup %6374  ;;  %v2876_v56 = vadd.f32 1.0, %v6373_v4  ;;  %6394 = vpow2.f32 %v4858_v53  ;;  %4490 = vmatprep.mubr.f32.mxu0 %v10938_v55  ;;  %10991 = vst [vmem:[#allocation62_spill] sm:$0xff] %v9844_v13  ;;  %v3893_v55 = vmul.f32 %v6369_v21, %v9694_v58  ;;  %v4956_v20 = vmul.f32 -1.442695, %v9842_v27  ;;  %v9861_v21 = vpop.f32.mrb[146].mxu0 }
 0x2cb   : > { %v6377_v61 = vpop.eup %6376  ;;  %6396 = vrcp.f32 %v2953_v29  ;;  %v4946_v29 = vmul.f32 -1.442695, %v9825_v18  ;;  %v9859_v58 = vadd.f32 %v9310_v24, %v9666_v49  ;;  %10993 = vst [vmem:[#allocation58_spill] sm:$0xff] %v9861_v21 }
 0x2cc   : > { %v6379_v46 = vpop.eup %6378  ;;  %6398 = vrcp.f32 %v2876_v56  ;;  %v2954_v53 = vadd.f32 1.0, %v6377_v61  ;;  %v4947_v56 = vmul.f32 -1.442695, %v9834_v48 }
 0x2cd   : > { %v6381_v4 = vpop.eup %6380  ;;  %6400 = vpow2.f32 %v4859_v11  ;;  %v3894_v22 = vmul.f32 %v6379_v46, %v9705_v44  ;;  %v4957_v44 = vmul.f32 -1.442695, %v9848_v3  ;;  %v9867_v46 = vadd.f32 %v9318_v17, %v9690_v40 }
 0x2ce   : > { %v6383_v31 = vpop.eup %6382  ;;  %6402 = vrcp.f32 %v2954_v53  ;;  %v2963_v10 = vadd.f32 1.0, %v6381_v4  ;;  %v3815_v53 = vmul.f32 %v9809_v12, %v9684_v36  ;;  %v4878_v12 = vmul.f32 -1.442695, %v9859_v58 }
 0x2cf   : > { %v6385_v61 = vpop.eup %6384  ;;  %v3903_v13 = vmul.f32 %v6383_v31, %v9716_v9  ;;  %6404 = vpow2.f32 %v4868_v39  ;;  %v9869_v9 = vpop.f32.mrb[147].mxu0 }
 0x2d0   : > { %v6387_v11 = vpop.eup %6386  ;;  %v3904_v7 = vmul.f32 %v6385_v61, %v9720_v0  ;;  %6406 = vrcp.f32 %v2963_v10  ;;  %10994 = vst [vmem:[#allocation6_spill] sm:$0xff] %v9869_v9  ;;  %v9876_v0 = vadd.f32 %v9328_v45, %v9666_v49  ;;  %v3816_v61 = vmul.f32 %v6375_v41, %v9701_v30  ;;  %v9882_v36 = vpop.f32.mrb[148].mxu0 }
 0x2d1   : > { %v6389_v39 = vpop.eup %6388  ;;  %v5356_v24 = vpack.c.bf16 %v3903_v13, %v3893_v55  ;;  %v3825_v4 = vmul.f32 %v6387_v11, %v9727_v2  ;;  %6408 = vpow2.f32 %v4946_v29  ;;  %v4879_v13 = vmul.f32 -1.442695, %v9867_v46  ;;  %v9886_v45 = vpop.f32.mrb[149].mxu0 }
 0x2d2   : > { %v6391_v31 = vpop.eup %6390  ;;  %v2964_v21 = vadd.f32 1.0, %v6389_v39  ;;  %6410 = vpow2.f32 %v4869_v38  ;;  %v5354_v10 = vpack.c.bf16 %v3904_v7, %v3894_v22  ;;  %v9890_v30 = vadd.f32 %v9330_v19, %v9385_v23  ;;  %v9895_v22 = vpop.f32.mrb[150].mxu0 }
 0x2d3   : > { %v9878_v17 = vpop.eup %6392  ;;  %v5404_v9 = vpack.c.bf16 %v3825_v4, %v3815_v53  ;;  %v3826_v32 = vmul.f32 %v6391_v31, %v9742_v25  ;;  %6412 = vpow2.f32 %v4947_v56  ;;  %v4888_v38 = vmul.f32 -1.442695, %v9876_v0  ;;  %v9901_v19 = vpop.f32.mrb[151].mxu0 }
 0x2d4   : > { %v6395_v2 = vpop.eup %6394  ;;  %6414 = vrcp.f32 %v2964_v21  ;;  %5355 = vmatprep.subr.bf16.mxu1 %v5354_v10  ;;  %v9906_v31 = vpop.f32.mrb[152].mxu0 }
 0x2d5   : > { %v6397_v7 = vpop.eup %6396  ;;  %v2885_v55 = vadd.f32 1.0, %v6395_v2  ;;  %6416 = vpow2.f32 %v4956_v20  ;;  %5357 = vmatpush1.bf16.msra.mxu1 %v5356_v24  ;;  %v5402_v25 = vpack.c.bf16 %v3826_v32, %v3816_v61  ;;  %v9899_v20 = vadd.f32 %v9332_v14, %v9690_v40  ;;  %v9913_v61 = vpop.f32.mrb[153].mxu0 }
 0x2d6   : > { %v9892_v41 = vpop.eup %6398  ;;  %6418 = vpow2.f32 %v4957_v44  ;;  %v3913_v11 = vmul.f32 %v6397_v7, %v9758_v63  ;;  %v4966_v44 = vmul.f32 -1.442695, %v9890_v30  ;;  %v9911_v63 = vadd.f32 %v9352_v59, %v9391_v52 }
 0x2d7   : > { %v6401_v29 = vpop.eup %6400  ;;  %6420 = vrcp.f32 %v2885_v55  ;;  %5403 = vmatprep.subr.bf16.mxu0 %v5402_v25  ;;  %v4889_v10 = vmul.f32 -1.442695, %v9899_v20  ;;  %v9918_v25 = vadd.f32 %v9359_v15, %v9385_v23  ;;  %v9923_v59 = vadd.f32 %v9373_v1, %v9391_v52 }
 0x2d8   : > { %v6403_v56 = vpop.eup %6402  ;;  %v2886_v21 = vadd.f32 1.0, %v6401_v29  ;;  %6422 = vpow2.f32 %v4878_v12  ;;  %5405 = vmatpush1.bf16.msra.mxu0 %v5404_v9 }
 0x2d9   : > { %v6405_v32 = vpop.eup %6404  ;;  %6424 = vpow2.f32 %v4879_v13  ;;  %v3914_v12 = vmul.f32 %v6403_v56, %v9770_v37 }
 0x2da   : > { %v6407_v39 = vpop.eup %6406  ;;  %6426 = vrcp.f32 %v2886_v21  ;;  %v2895_v53 = vadd.f32 1.0, %v6405_v32  ;;  %v9925_v21 = vpop.f32.mrb[154].mxu0  ;;  %v4967_v32 = vmul.f32 -1.442695, %v9911_v63 }
 0x2db   : > { %v6409_v24 = vpop.eup %6408  ;;  %v3923_v4 = vmul.f32 %v6407_v39, %v9778_v62  ;;  %6428 = vpow2.f32 %v4888_v38 }
 0x2dc   : > { %v6411_v14 = vpop.eup %6410  ;;  %6430 = vrcp.f32 %v2895_v53  ;;  %v2973_v9 = vadd.f32 1.0, %v6409_v24  ;;  %v4976_v24 = vmul.f32 -1.442695, %v9918_v25 }
 0x2dd   : > { %v6413_v2 = vpop.eup %6412  ;;  %v5360_v13 = vpack.c.bf16 %v3923_v4, %v3913_v11  ;;  %v2896_v7 = vadd.f32 1.0, %v6411_v14  ;;  %6432 = vpow2.f32 %v4966_v44  ;;  %v9928_v11 = vpop.f32.mrb[155].mxu0 }
 0x2de   : > { %v6415_v62 = vpop.eup %6414  ;;  %6434 = vrcp.f32 %v2973_v9  ;;  %v2974_v55 = vadd.f32 1.0, %v6413_v2  ;;  %v4977_v9 = vmul.f32 -1.442695, %v9923_v59  ;;  %v9937_v2 = vadd.f32 %v9396_v51, %v9666_v49 }
 0x2df   : > { %v6417_v29 = vpop.eup %6416  ;;  %v3924_v38 = vmul.f32 %v6415_v62, %v9798_v60  ;;  %6436 = vrcp.f32 %v2896_v7  ;;  %v3835_v60 = vmul.f32 %v9878_v17, %v9749_v16 }
 0x2e0   : > { %v6419_v37 = vpop.eup %6418  ;;  %6438 = vrcp.f32 %v2974_v55  ;;  %v2983_v56 = vadd.f32 1.0, %v6417_v29  ;;  %v3836_v55 = vmul.f32 %v9892_v41, %v9765_v8  ;;  %v9952_v29 = vadd.f32 %v9406_v5, %v9385_v23 }
 0x2e1   : > { %v6421_v44 = vpop.eup %6420  ;;  %v2984_v15 = vadd.f32 1.0, %v6419_v37  ;;  %6440 = vpow2.f32 %v4889_v10  ;;  %v5358_v39 = vpack.c.bf16 %v3924_v38, %v3914_v12  ;;  %v9939_v10 = vpop.f32.mrb[156].mxu0 }
 0x2e2   : > { %v6423_v53 = vpop.eup %6422  ;;  %v3845_v1 = vmul.f32 %v6421_v44, %v9806_v33  ;;  %6442 = vrcp.f32 %v2983_v56  ;;  %v9943_v33 = vadd.f32 %v9404_v57, %v9690_v40  ;;  %v9945_v17 = vpop.f32.mrb[157].mxu0  ;;  %v4898_v57 = vmul.f32 -1.442695, %v9937_v2 }
 0x2e3   : > { %v6425_v4 = vpop.eup %6424  ;;  %6444 = vrcp.f32 %v2984_v15  ;;  %v2905_v14 = vadd.f32 1.0, %v6423_v53  ;;  %5359 = vmatprep.subr.bf16.mxu1 %v5358_v39  ;;  %v9959_v8 = vpop.f32.mrb[158].mxu0  ;;  %v10997_v15 = vld [vmem:[#allocation14_spill] sm:$0xff] }
 0x2e4   : > { %v6427_v12 = vpop.eup %6426  ;;  %v5408_v7 = vpack.c.bf16 %v3845_v1, %v3835_v60  ;;  %v2906_v16 = vadd.f32 1.0, %v6425_v4  ;;  %6446 = vpow2.f32 %v4967_v32  ;;  %5361 = vmatpush1.bf16.msra.mxu1 %v5360_v13  ;;  %v10995_v13 = vld [vmem:[#allocation71_spill] sm:$0xff]  ;;  %10996 = vst [vmem:[#allocation21_spill] sm:$0xff] %v9959_v8  ;;  %v4899_v5 = vmul.f32 -1.442695, %v9943_v33  ;;  %v9966_v53 = vpop.f32.mrb[159].mxu0 }
 0x2e5   : > { %v6429_v62 = vpop.eup %6428  ;;  %v3846_v51 = vmul.f32 %v6427_v12, %v9813_v26  ;;  %6448 = vrcp.f32 %v2905_v14  ;;  %v9957_v32 = vadd.f32 %v10995_v13, %v9391_v52  ;;  %v9964_v39 = vadd.f32 %v10997_v15, %v9666_v49  ;;  %10998 = vst [vmem:[#allocation24_spill] sm:$0xff] %v9966_v53  ;;  %v10999_v4 = vld [vmem:[#allocation72_spill] sm:$0xff]  ;;  %v11000_v12 = vld [vmem:[#allocation22_spill] sm:$0xff] }
 0x2e6   : > { %v6431_v38 = vpop.eup %6430  ;;  %6450 = vrcp.f32 %v2906_v16  ;;  %v2915_v37 = vadd.f32 1.0, %v6429_v62  ;;  %v4986_v1 = vmul.f32 -1.442695, %v9952_v29  ;;  %v9971_v14 = vadd.f32 %v10999_v4, %v9385_v23 }
 0x2e7   : > { %v6433_v56 = vpop.eup %6432  ;;  %6452 = vpow2.f32 %v4976_v24  ;;  %v5406_v44 = vpack.c.bf16 %v3846_v51, %v3836_v55  ;;  %v9975_v16 = vadd.f32 %v11000_v12, %v9690_v40  ;;  %v9979_v51 = vpop.f32.mrb[160].mxu0 }
 0x2e8   : > { %v6435_v26 = vpop.eup %6434  ;;  %6454 = vrcp.f32 %v2915_v37  ;;  %v2993_v41 = vadd.f32 1.0, %v6433_v56  ;;  %11001 = vst [vmem:[#allocation45_spill] sm:$0xff] %v9979_v51 }
 0x2e9   : > { %v6437_v60 = vpop.eup %6436  ;;  %6456 = vpow2.f32 %v4977_v9  ;;  %5407 = vmatprep.subr.bf16.mxu0 %v5406_v44  ;;  %v3933_v55 = vmul.f32 %v6435_v26, %v9825_v18  ;;  %v4987_v9 = vmul.f32 -1.442695, %v9957_v32  ;;  %v4908_v44 = vmul.f32 -1.442695, %v9964_v39  ;;  %v11003_v18 = vld [vmem:[#allocation73_spill] sm:$0xff] }
 0x2ea   : > { %v6439_v24 = vpop.eup %6438  ;;  %6458 = vrcp.f32 %v2993_v41  ;;  %5409 = vmatpush1.bf16.msra.mxu0 %v5408_v7  ;;  %v9983_v41 = vpop.f32.mrb[161].mxu0 }
 0x2eb   : > { %v6441_v62 = vpop.eup %6440  ;;  %6460 = vpow2.f32 %v4898_v57  ;;  %v3934_v56 = vmul.f32 %v6439_v24, %v9834_v48  ;;  %11002 = vst [vmem:[#allocation42_spill] sm:$0xff] %v9983_v41  ;;  %v9988_v57 = vadd.f32 %v11003_v18, %v9391_v52  ;;  %v4996_v48 = vmul.f32 -1.442695, %v9971_v14  ;;  %v11004_v41 = vld [vmem:[#allocation31_spill] sm:$0xff] }
 0x2ec   : > { %v6443_v37 = vpop.eup %6442  ;;  %v2916_v13 = vadd.f32 1.0, %v6441_v62  ;;  %6462 = vpow2.f32 %v4899_v5  ;;  %v4909_v5 = vmul.f32 -1.442695, %v9975_v16  ;;  %v3855_v18 = vmul.f32 %v6431_v38, %v9820_v50  ;;  %v11007_v38 = vld [vmem:[#allocation20_spill] sm:$0xff] }
 0x2ed   : > { %v6445_v15 = vpop.eup %6444  ;;  %v3943_v7 = vmul.f32 %v6443_v37, %v9842_v27  ;;  %6464 = vpow2.f32 %v4986_v1  ;;  %v9995_v27 = vadd.f32 %v11004_v41, %v9385_v23  ;;  %v9997_v1 = vpop.f32.mrb[162].mxu0  ;;  %v4997_v41 = vmul.f32 -1.442695, %v9988_v57 }
 0x2ee   : > { %v6447_v26 = vpop.eup %6446  ;;  %v3944_v4 = vmul.f32 %v6445_v15, %v9848_v3  ;;  %6466 = vrcp.f32 %v2916_v13  ;;  %11005 = vst [vmem:[#allocation8_spill] sm:$0xff] %v9997_v1  ;;  %v10001_v15 = vpop.f32.mrb[163].mxu0 }
 0x2ef   : > { %v6449_v24 = vpop.eup %6448  ;;  %v5364_v12 = vpack.c.bf16 %v3943_v7, %v3933_v55  ;;  %v2994_v62 = vadd.f32 1.0, %v6447_v26  ;;  %6468 = vpow2.f32 %v4987_v9  ;;  %11006 = vst [vmem:[#allocation70_spill] sm:$0xff] %v10001_v15  ;;  %v3856_v55 = vmul.f32 %v6437_v60, %v9829_v6 }
 0x2f0   : > { %v6451_v37 = vpop.eup %6450  ;;  %v3865_v3 = vmul.f32 %v6449_v24, %v9859_v58  ;;  %6470 = vpow2.f32 %v4908_v44  ;;  %v5362_v13 = vpack.c.bf16 %v3944_v4, %v3934_v56  ;;  %v5006_v58 = vmul.f32 -1.442695, %v9995_v27  ;;  %v11010_v24 = vld [vmem:[#allocation46_spill] sm:$0xff] }
 0x2f1   : > { %v6453_v51 = vpop.eup %6452  ;;  %v3866_v9 = vmul.f32 %v6451_v37, %v9867_v46  ;;  %6472 = vrcp.f32 %v2994_v62  ;;  %v10011_v56 = vadd.f32 %v11007_v38, %v9391_v52  ;;  %v10013_v46 = vpop.f32.mrb[164].mxu0  ;;  %v10019_v62 = vadd.f32 %v11010_v24, %v9666_v49 }
 0x2f2   : > { %v10006_v7 = vpop.eup %6454  ;;  %v5412_v26 = vpack.c.bf16 %v3865_v3, %v3855_v18  ;;  %v3003_v1 = vadd.f32 1.0, %v6453_v51  ;;  %6474 = vpow2.f32 %v4996_v48  ;;  %5363 = vmatprep.subr.bf16.mxu1 %v5362_v13  ;;  %11008 = vst [vmem:[#allocation48_spill] sm:$0xff] %v10013_v46  ;;  %v10015_v4 = vpop.f32.mrb[165].mxu0 }
 0x2f3   : > { %v6457_v50 = vpop.eup %6456  ;;  %6476 = vpow2.f32 %v4909_v5  ;;  %5365 = vmatpush1.bf16.msra.mxu1 %v5364_v12  ;;  %v5410_v6 = vpack.c.bf16 %v3866_v9, %v3856_v55  ;;  %11009 = vst [vmem:[#allocation49_spill] sm:$0xff] %v10015_v4  ;;  %v5007_v18 = vmul.f32 -1.442695, %v10011_v56  ;;  %v11012_v55 = vld [vmem:[#allocation25_spill] sm:$0xff] }
 0x2f4   : > { %v6459_v60 = vpop.eup %6458  ;;  %6478 = vrcp.f32 %v3003_v1  ;;  %v3004_v44 = vadd.f32 1.0, %v6457_v50  ;;  %v10022_v1 = vpop.f32.mrb[166].mxu0  ;;  %v10026_v9 = vadd.f32 %v11012_v55, %v9385_v23 }
 0x2f5   : > { %v6461_v51 = vpop.eup %6460  ;;  %6480 = vpow2.f32 %v4997_v41  ;;  %5411 = vmatprep.subr.bf16.mxu0 %v5410_v6  ;;  %11011 = vst [vmem:[#allocation66_spill] sm:$0xff] %v10022_v1  ;;  %v10028_v41 = vpop.f32.mrb[167].mxu0 }
 0x2f6   : > { %v6463_v48 = vpop.eup %6462  ;;  %6482 = vrcp.f32 %v3004_v44  ;;  %v2925_v5 = vadd.f32 1.0, %v6461_v51  ;;  %5413 = vmatpush1.bf16.msra.mxu0 %v5412_v26  ;;  %11013 = vst [vmem:[#allocation7_spill] sm:$0xff] %v10028_v41  ;;  %v11014_v51 = vld [vmem:[#allocation69_spill] sm:$0xff] }
 0x2f7   : > { %v6465_v12 = vpop.eup %6464  ;;  %v2926_v37 = vadd.f32 1.0, %v6463_v48  ;;  %6484 = vpow2.f32 %v5006_v58  ;;  %v4918_v58 = vmul.f32 -1.442695, %v10019_v62  ;;  %v10033_v48 = vadd.f32 %v11014_v51, %v9690_v40  ;;  %v11018_v51 = vld [vmem:[#allocation23_spill] sm:$0xff] }
 0x2f8   : > { %v6467_v3 = vpop.eup %6466  ;;  %6486 = vrcp.f32 %v2925_v5  ;;  %v3013_v13 = vadd.f32 1.0, %v6465_v12  ;;  %v10035_v5 = vpop.f32.mrb[168].mxu0  ;;  %v5016_v12 = vmul.f32 -1.442695, %v10026_v9  ;;  %v10047_v41 = vadd.f32 %v11018_v51, %v9391_v52 }
 0x2f9   : > { %v6469_v50 = vpop.eup %6468  ;;  %6488 = vrcp.f32 %v2926_v37  ;;  %11015 = vst [vmem:[#allocation18_spill] sm:$0xff] %v10035_v5  ;;  %v11016_v37 = vld [vmem:[#allocation74_spill] sm:$0xff] }
 0x2fa   : > { %v6471_v38 = vpop.eup %6470  ;;  %6490 = vrcp.f32 %v3013_v13  ;;  %v3014_v26 = vadd.f32 1.0, %v6469_v50  ;;  %v10040_v55 = vadd.f32 %v11016_v37, %v9391_v52  ;;  %v10042_v13 = vpop.f32.mrb[169].mxu0 }
 0x2fb   : > { %v6473_v6 = vpop.eup %6472  ;;  %v2935_v44 = vadd.f32 1.0, %v6471_v38  ;;  %6492 = vpow2.f32 %v5007_v18  ;;  %11017 = vst [vmem:[#allocation64_spill] sm:$0xff] %v10042_v13  ;;  %v3953_v38 = vmul.f32 %v6459_v60, %v9890_v30  ;;  %v4919_v30 = vmul.f32 -1.442695, %v10033_v48  ;;  %v10056_v60 = vpop.f32.mrb[170].mxu0 }
 0x2fc   : > { %v6475_v24 = vpop.eup %6474  ;;  %6494 = vrcp.f32 %v3014_v26  ;;  %v11019_v26 = vld [vmem:[#allocation27_spill] sm:$0xff]  ;;  %v3954_v46 = vmul.f32 %v6473_v6, %v9911_v63  ;;  %11020 = vst [vmem:[#allocation12_spill] sm:$0xff] %v10056_v60  ;;  %v5027_v6 = vmul.f32 -1.442695, %v10047_v41 }
 0x2fd   : > { %v6477_v50 = vpop.eup %6476  ;;  %6496 = vrcp.f32 %v2935_v44  ;;  %v3023_v18 = vadd.f32 1.0, %v6475_v24  ;;  %v10051_v4 = vadd.f32 %v11019_v26, %v9385_v23  ;;  %v10063_v26 = vpop.f32.mrb[171].mxu0 }
 0x2fe   : > { %v6479_v5 = vpop.eup %6478  ;;  %v2936_v1 = vadd.f32 1.0, %v6477_v50  ;;  %6498 = vpow2.f32 %v4918_v58  ;;  %v5017_v50 = vmul.f32 -1.442695, %v10040_v55  ;;  %v11021_v58 = vld [vmem:[#allocation29_spill] sm:$0xff]  ;;  %11022 = vst [vmem:[#allocation65_spill] sm:$0xff] %v10063_v26  ;;  %v3875_v26 = vmul.f32 %v10006_v7, %v9876_v0 }
 0x2ff   : > { %v6481_v37 = vpop.eup %6480  ;;  %v3963_v13 = vmul.f32 %v6479_v5, %v9918_v25  ;;  %6500 = vrcp.f32 %v3023_v18  ;;  %v10061_v51 = vadd.f32 %v11021_v58, %v9666_v49  ;;  %v11026_v7 = vld [vmem:[#allocation77_spill] sm:$0xff] }
 0x300   : > { %v6483_v44 = vpop.eup %6482  ;;  %6502 = vrcp.f32 %v2936_v1  ;;  %v3024_v24 = vadd.f32 1.0, %v6481_v37  ;;  %v5026_v1 = vmul.f32 -1.442695, %v10051_v4  ;;  %v11023_v37 = vld [vmem:[#allocation75_spill] sm:$0xff] }
 0x301   : > { %v6485_v15 = vpop.eup %6484  ;;  %v5368_v63 = vpack.c.bf16 %v3963_v13, %v3953_v38  ;;  %v3964_v25 = vmul.f32 %v6483_v44, %v9923_v59  ;;  %6504 = vpow2.f32 %v5016_v12  ;;  %v10070_v60 = vadd.f32 %v11023_v37, %v9385_v23  ;;  %v10075_v12 = vpop.f32.mrb[172].mxu0 }
 0x302   : > { %v6487_v5 = vpop.eup %6486  ;;  %6506 = vrcp.f32 %v3024_v24  ;;  %v3033_v18 = vadd.f32 1.0, %v6485_v15  ;;  %v3876_v44 = vmul.f32 %v6467_v3, %v9899_v20  ;;  %v11024_v24 = vld [vmem:[#allocation76_spill] sm:$0xff]  ;;  %v10083_v53 = vpop.f32.mrb[173].mxu0 }
 0x303   : > { %v6489_v58 = vpop.eup %6488  ;;  %v3885_v13 = vmul.f32 %v6487_v5, %v9937_v2  ;;  %6508 = vpow2.f32 %v4919_v30  ;;  %v5366_v59 = vpack.c.bf16 %v3964_v25, %v3954_v46  ;;  %v10081_v37 = vadd.f32 %v11024_v24, %v9690_v40  ;;  %11025 = vst [vmem:[#allocation51_spill] sm:$0xff] %v10083_v53  ;;  %v10097_v5 = vpop.f32.mrb[174].mxu0 }
 0x304   : > { %v6491_v38 = vpop.eup %6490  ;;  %v3886_v15 = vmul.f32 %v6489_v58, %v9943_v33  ;;  %6510 = vrcp.f32 %v3033_v18  ;;  %v4928_v2 = vmul.f32 -1.442695, %v10061_v51  ;;  %v10088_v46 = vadd.f32 %v11026_v7, %v9391_v52  ;;  %11028 = vst [vmem:[#allocation52_spill] sm:$0xff] %v10097_v5  ;;  %v11036_v5 = vld [vmem:[#allocation55_spill] sm:$0xff] }
 0x305   : > { %v6493_v8 = vpop.eup %6492  ;;  %v5416_v0 = vpack.c.bf16 %v3885_v13, %v3875_v26  ;;  %6512 = vpow2.f32 %v5017_v50  ;;  %5367 = vmatprep.subr.bf16.mxu1 %v5366_v59  ;;  %v5036_v33 = vmul.f32 -1.442695, %v10070_v60  ;;  %v11027_v26 = vld [vmem:[#allocation78_spill] sm:$0xff]  ;;  %v3973_v58 = vmul.f32 %v6491_v38, %v9952_v29 }
 0x306   : > { %v6495_v20 = vpop.eup %6494  ;;  %v3034_v3 = vadd.f32 1.0, %v6493_v8  ;;  %6514 = vpow2.f32 %v5026_v1  ;;  %5369 = vmatpush1.bf16.msra.mxu1 %v5368_v63  ;;  %v5414_v30 = vpack.c.bf16 %v3886_v15, %v3876_v44  ;;  %v10095_v50 = vadd.f32 %v11027_v26, %v9385_v23  ;;  %v10101_v1 = vpop.f32.mrb[175].mxu0  ;;  %v11030_v59 = vld [vmem:[#allocation30_spill] sm:$0xff] }
 0x307   : > { %v10091_v25 = vpop.eup %6496  ;;  %6516 = vpow2.f32 %v5027_v6  ;;  %v4929_v8 = vmul.f32 -1.442695, %v10081_v37  ;;  %11029 = vst [vmem:[#allocation53_spill] sm:$0xff] %v10101_v1  ;;  %v5037_v6 = vmul.f32 -1.442695, %v10088_v46  ;;  %v10106_v44 = vadd.f32 %v11030_v59, %v9391_v52  ;;  %v11031_v59 = vld [vmem:[#allocation79_spill] sm:$0xff] }
 0x308   : > { %v6499_v18 = vpop.eup %6498  ;;  %6518 = vrcp.f32 %v3034_v3  ;;  %5415 = vmatprep.subr.bf16.mxu0 %v5414_v30  ;;  %v3974_v24 = vmul.f32 %v6495_v20, %v9957_v32  ;;  %v5046_v7 = vmul.f32 -1.442695, %v10095_v50  ;;  %v10145_v53 = vadd.f32 %v11036_v5, %v9391_v52 }
 0x309   : > { %v6501_v63 = vpop.eup %6500  ;;  %v2945_v13 = vadd.f32 1.0, %v6499_v18  ;;  %6520 = vpow2.f32 %v4928_v2  ;;  %5417 = vmatpush1.bf16.msra.mxu0 %v5416_v0  ;;  %v5047_v0 = vmul.f32 -1.442695, %v10106_v44 }
 0x30a   : > { %v10108_v15 = vpop.eup %6502  ;;  %v3983_v29 = vmul.f32 %v6501_v63, %v9971_v14  ;;  %6522 = vpow2.f32 %v5036_v33  ;;  %v10117_v14 = vadd.f32 %v11031_v59, %v9666_v49 }
 0x30b   : > { %v6505_v38 = vpop.eup %6504  ;;  %6524 = vrcp.f32 %v2945_v13 }
 0x30c   : > { %v6507_v3 = vpop.eup %6506  ;;  %v5372_v2 = vpack.c.bf16 %v3983_v29, %v3973_v58  ;;  %v3043_v30 = vadd.f32 1.0, %v6505_v38  ;;  %6526 = vpow2.f32 %v4929_v8  ;;  %v11032_v8 = vld [vmem:[#allocation80_spill] sm:$0xff]  ;;  %v4938_v38 = vmul.f32 -1.442695, %v10117_v14 }
 0x30d   : > { %v6509_v26 = vpop.eup %6508  ;;  %v3984_v18 = vmul.f32 %v6507_v3, %v9988_v57  ;;  %6528 = vpow2.f32 %v5037_v6  ;;  %v10121_v29 = vadd.f32 %v11032_v8, %v9385_v23 }
 0x30e   : > { %v6511_v33 = vpop.eup %6510  ;;  %6530 = vrcp.f32 %v3043_v30  ;;  %v2946_v32 = vadd.f32 1.0, %v6509_v26  ;;  %v11033_v26 = vld [vmem:[#allocation32_spill] sm:$0xff] }
 0x30f   : > { %v6513_v20 = vpop.eup %6512  ;;  %6532 = vpow2.f32 %v5046_v7  ;;  %v5370_v63 = vpack.c.bf16 %v3984_v18, %v3974_v24  ;;  %v10126_v7 = vadd.f32 %v11033_v26, %v9690_v40  ;;  %v11034_v18 = vld [vmem:[#allocation81_spill] sm:$0xff] }
 0x310   : > { %v6515_v13 = vpop.eup %6514  ;;  %6534 = vrcp.f32 %v2946_v32  ;;  %v3044_v58 = vadd.f32 1.0, %v6513_v20  ;;  %v10130_v59 = vadd.f32 %v11034_v18, %v9391_v52  ;;  %v5056_v20 = vmul.f32 -1.442695, %v10121_v29 }
 0x311   : > { %v6517_v57 = vpop.eup %6516  ;;  %v3053_v6 = vadd.f32 1.0, %v6515_v13  ;;  %6536 = vpow2.f32 %v5047_v0  ;;  %5371 = vmatprep.subr.bf16.mxu1 %v5370_v63  ;;  %v4939_v26 = vmul.f32 -1.442695, %v10126_v7 }
 0x312   : > { %v6519_v3 = vpop.eup %6518  ;;  %6538 = vrcp.f32 %v3044_v58  ;;  %v3054_v30 = vadd.f32 1.0, %v6517_v57  ;;  %5373 = vmatpush1.bf16.msra.mxu1 %v5372_v2  ;;  %v11035_v58 = vld [vmem:[#allocation33_spill] sm:$0xff]  ;;  %v3895_v2 = vmul.f32 %v10091_v25, %v9964_v39 }
 0x313   : > { %v6521_v24 = vpop.eup %6520  ;;  %6540 = vrcp.f32 %v3053_v6  ;;  %v10135_v8 = vadd.f32 %v11035_v58, %v9385_v23 }
 0x314   : > { %v6523_v32 = vpop.eup %6522  ;;  %6542 = vrcp.f32 %v3054_v30  ;;  %v2955_v0 = vadd.f32 1.0, %v6521_v24  ;;  %v3993_v24 = vmul.f32 %v6511_v33, %v9995_v27  ;;  %v11037_v27 = vld [vmem:[#allocation35_spill] sm:$0xff] }
 0x315   : > { %v6525_v63 = vpop.eup %6524  ;;  %v3063_v13 = vadd.f32 1.0, %v6523_v32  ;;  %6544 = vpow2.f32 %v4938_v38  ;;  %v5057_v38 = vmul.f32 -1.442695, %v10130_v59  ;;  %v5066_v25 = vmul.f32 -1.442695, %v10135_v8 }
 0x316   : > { %v6527_v57 = vpop.eup %6526  ;;  %v3905_v6 = vmul.f32 %v6525_v63, %v10019_v62  ;;  %6546 = vrcp.f32 %v2955_v0  ;;  %v10151_v33 = vadd.f32 %v11037_v27, %v9666_v49  ;;  %v3896_v63 = vmul.f32 %v10108_v15, %v9975_v16  ;;  %v11039_v16 = vld [vmem:[#allocation60_spill] sm:$0xff] }
 0x317   : > { %v6529_v30 = vpop.eup %6528  ;;  %6548 = vrcp.f32 %v3063_v13  ;;  %v2956_v18 = vadd.f32 1.0, %v6527_v57  ;;  %v11038_v13 = vld [vmem:[#allocation56_spill] sm:$0xff]  ;;  %v10164_v15 = vadd.f32 %v11039_v16, %v9690_v40 }
 0x318   : > { %v6531_v32 = vpop.eup %6530  ;;  %v5420_v1 = vpack.c.bf16 %v3905_v6, %v3895_v2  ;;  %v3064_v58 = vadd.f32 1.0, %v6529_v30  ;;  %6550 = vpow2.f32 %v5056_v20  ;;  %v10157_v5 = vadd.f32 %v11038_v13, %v9385_v23 }
 0x319   : > { %v6533_v39 = vpop.eup %6532  ;;  %v4003_v62 = vmul.f32 %v6531_v32, %v10026_v9  ;;  %6552 = vrcp.f32 %v2956_v18  ;;  %v3994_v9 = vmul.f32 %v6519_v3, %v10011_v56  ;;  %v5067_v32 = vmul.f32 -1.442695, %v10145_v53 }
 0x31a   : > { %v6535_v0 = vpop.eup %6534  ;;  %6554 = vrcp.f32 %v3064_v58  ;;  %v3073_v20 = vadd.f32 1.0, %v6533_v39  ;;  %v4948_v27 = vmul.f32 -1.442695, %v10151_v33 }
 0x31b   : > { %v6537_v57 = vpop.eup %6536  ;;  %v5376_v2 = vpack.c.bf16 %v4003_v62, %v3993_v24  ;;  %v3906_v6 = vmul.f32 %v6535_v0, %v10033_v48  ;;  %6556 = vpow2.f32 %v4939_v26  ;;  %v10170_v48 = vadd.f32 %v9656_v34, %v9391_v52 }
 0x31c   : > { %v6539_v30 = vpop.eup %6538  ;;  %6558 = vrcp.f32 %v3073_v20  ;;  %v3074_v18 = vadd.f32 1.0, %v6537_v57  ;;  %v5076_v24 = vmul.f32 -1.442695, %v10157_v5  ;;  %v10175_v62 = vadd.f32 %v9672_v47, %v9385_v23 }
 0x31d   : > { %v6541_v58 = vpop.eup %6540  ;;  %v4004_v39 = vmul.f32 %v6539_v30, %v10040_v55  ;;  %6560 = vpow2.f32 %v5057_v38  ;;  %v5418_v56 = vpack.c.bf16 %v3906_v6, %v3896_v63  ;;  %v4949_v20 = vmul.f32 -1.442695, %v10164_v15 }
 0x31e   : > { %v6543_v3 = vpop.eup %6542  ;;  %6562 = vrcp.f32 %v3074_v18  ;;  %v4013_v0 = vmul.f32 %v6541_v58, %v10051_v4  ;;  %v5077_v57 = vmul.f32 -1.442695, %v10170_v48  ;;  %v10187_v4 = vadd.f32 %v9679_v35, %v9666_v49 }
 0x31f   : > { %v6545_v26 = vpop.eup %6544  ;;  %6564 = vpow2.f32 %v5066_v25  ;;  %5419 = vmatprep.subr.bf16.mxu0 %v5418_v56  ;;  %v5374_v55 = vpack.c.bf16 %v4004_v39, %v3994_v9  ;;  %v10181_v25 = vadd.f32 %v9675_v28, %v9391_v52  ;;  %v5086_v28 = vmul.f32 -1.442695, %v10175_v62  ;;  %v11040_v39 = vld [vmem:[#allocation63_spill] sm:$0xff] }
 0x320   : > { %v6547_v38 = vpop.eup %6546  ;;  %v2965_v63 = vadd.f32 1.0, %v6545_v26  ;;  %6566 = vpow2.f32 %v5067_v32  ;;  %5421 = vmatpush1.bf16.msra.mxu0 %v5420_v1  ;;  %v4014_v1 = vmul.f32 %v6543_v3, %v10047_v41  ;;  %v4958_v41 = vmul.f32 -1.442695, %v10187_v4 }
 0x321   : > { %v6549_v34 = vpop.eup %6548  ;;  %6568 = vpow2.f32 %v4948_v27  ;;  %5375 = vmatprep.subr.bf16.mxu1 %v5374_v55  ;;  %v5087_v16 = vmul.f32 -1.442695, %v10181_v25  ;;  %v10198_v27 = vadd.f32 %v11040_v39, %v9385_v23 }
 0x322   : > { %v6551_v13 = vpop.eup %6550  ;;  %v4023_v47 = vmul.f32 %v6549_v34, %v10070_v60  ;;  %6570 = vrcp.f32 %v2965_v63  ;;  %5377 = vmatpush1.bf16.msra.mxu1 %v5376_v2 }
 0x323   : > { %v10189_v9 = vpop.eup %6552  ;;  %v3083_v6 = vadd.f32 1.0, %v6551_v13  ;;  %6572 = vpow2.f32 %v5076_v24  ;;  %v5096_v13 = vmul.f32 -1.442695, %v10198_v27 }
 0x324   : > { %v6555_v30 = vpop.eup %6554  ;;  %v5380_v18 = vpack.c.bf16 %v4023_v47, %v4013_v0  ;;  %6574 = vpow2.f32 %v4949_v20  ;;  %v11041_v0 = vld [vmem:[#allocation37_spill] sm:$0xff]  ;;  %v10205_v47 = vpop.f32.mrb[144].mxu1 }
 0x325   : > { %v6557_v60 = vpop.eup %6556  ;;  %v4024_v32 = vmul.f32 %v6555_v30, %v10088_v46  ;;  %6576 = vrcp.f32 %v3083_v6  ;;  %v10202_v63 = vadd.f32 %v11041_v0, %v9690_v40  ;;  %v11042_v6 = vld [vmem:[#allocation39_spill] sm:$0xff]  ;;  %v10213_v30 = vadd.f32 %v9733_v54, %v9385_v23 }
 0x326   : > { %v6559_v35 = vpop.eup %6558  ;;  %v2966_v58 = vadd.f32 1.0, %v6557_v60  ;;  %6578 = vpow2.f32 %v5077_v57  ;;  %v10215_v60 = vpop.f32.mrb[145].mxu1 }
 0x327   : > { %v6561_v2 = vpop.eup %6560  ;;  %6580 = vpow2.f32 %v5086_v28  ;;  %v5378_v56 = vpack.c.bf16 %v4024_v32, %v4014_v1  ;;  %v10209_v28 = vadd.f32 %v11042_v6, %v9391_v52  ;;  %v3915_v32 = vmul.f32 %v6547_v38, %v10061_v51  ;;  %v11043_v38 = vld [vmem:[#allocation16_spill] sm:$0xff] }
 0x328   : > { %v6563_v3 = vpop.eup %6562  ;;  %6582 = vrcp.f32 %v2966_v58  ;;  %v3084_v26 = vadd.f32 1.0, %v6561_v2  ;;  %v4507_v58 = vcombine.low %v10205_v47, %v10215_v60 }
 0x329   : > { %v6565_v24 = vpop.eup %6564  ;;  %6584 = vpow2.f32 %v5087_v16  ;;  %5379 = vmatprep.subr.bf16.mxu1 %v5378_v56  ;;  %v4959_v56 = vmul.f32 -1.442695, %v10202_v63 }
 0x32a   : > { %v6567_v46 = vpop.eup %6566  ;;  %6586 = vrcp.f32 %v3084_v26  ;;  %v3093_v55 = vadd.f32 1.0, %v6565_v24  ;;  %5381 = vmatpush1.bf16.msra.mxu1 %v5380_v18 }
 0x32b   : > { %v6569_v20 = vpop.eup %6568  ;;  %v3094_v34 = vadd.f32 1.0, %v6567_v46  ;;  %6588 = vpow2.f32 %v4958_v41  ;;  %v4033_v41 = vmul.f32 %v6559_v35, %v10095_v50  ;;  %v5106_v35 = vmul.f32 -1.442695, %v10213_v30 }
 0x32c   : > { %v6571_v57 = vpop.eup %6570  ;;  %6590 = vrcp.f32 %v3093_v55  ;;  %v2975_v1 = vadd.f32 1.0, %v6569_v20  ;;  %v10227_v55 = vadd.f32 %v11043_v38, %v9391_v52  ;;  %v11044_v20 = vld [vmem:[#allocation15_spill] sm:$0xff] }
 0x32d   : > { %v6573_v18 = vpop.eup %6572  ;;  %v3925_v16 = vmul.f32 %v6571_v57, %v10117_v14  ;;  %6592 = vrcp.f32 %v3094_v34  ;;  %v5097_v14 = vmul.f32 -1.442695, %v10209_v28  ;;  %v10232_v34 = vadd.f32 %v11044_v20, %v9666_v49  ;;  %v11048_v20 = vld [vmem:[#allocation36_spill] sm:$0xff] }
 0x32e   : > { %v6575_v2 = vpop.eup %6574  ;;  %6594 = vrcp.f32 %v2975_v1  ;;  %v3103_v39 = vadd.f32 1.0, %v6573_v18 }
 0x32f   : > { %v6577_v54 = vpop.eup %6576  ;;  %v5424_v26 = vpack.c.bf16 %v3925_v16, %v3915_v32  ;;  %v2976_v24 = vadd.f32 1.0, %v6575_v2  ;;  %6596 = vpow2.f32 %v5096_v13  ;;  %v3916_v32 = vmul.f32 %v10189_v9, %v10081_v37  ;;  %v11047_v9 = vld [vmem:[#allocation40_spill] sm:$0xff] }
 0x330   : > { %v6579_v46 = vpop.eup %6578  ;;  %v4043_v51 = vmul.f32 %v6577_v54, %v10121_v29  ;;  %6598 = vrcp.f32 %v3103_v39  ;;  %v11045_v29 = vld [vmem:[#allocation41_spill] sm:$0xff]  ;;  %v4034_v16 = vmul.f32 %v6563_v3, %v10106_v44  ;;  %v10251_v3 = vadd.f32 %v11047_v9, %v9391_v52 }
 0x331   : > { %v6581_v0 = vpop.eup %6580  ;;  %6600 = vrcp.f32 %v2976_v24  ;;  %v3104_v50 = vadd.f32 1.0, %v6579_v46  ;;  %v10236_v6 = vadd.f32 %v11045_v29, %v9385_v23  ;;  %v11046_v46 = vld [vmem:[#allocation43_spill] sm:$0xff] }
 0x332   : > { %v6583_v13 = vpop.eup %6582  ;;  %v5384_v57 = vpack.c.bf16 %v4043_v51, %v4033_v41  ;;  %v3113_v1 = vadd.f32 1.0, %v6581_v0  ;;  %6602 = vpow2.f32 %v4959_v56  ;;  %v5107_v41 = vmul.f32 -1.442695, %v10227_v55 }
 0x333   : > { %v6585_v18 = vpop.eup %6584  ;;  %v3926_v2 = vmul.f32 %v6583_v13, %v10126_v7  ;;  %6604 = vrcp.f32 %v3104_v50  ;;  %v10246_v51 = vadd.f32 %v11046_v46, %v9690_v40  ;;  %v4968_v7 = vmul.f32 -1.442695, %v10232_v34 }
 0x334   : > { %v6587_v39 = vpop.eup %6586  ;;  %6606 = vrcp.f32 %v3113_v1  ;;  %v3114_v54 = vadd.f32 1.0, %v6585_v18  ;;  %v5116_v50 = vmul.f32 -1.442695, %v10236_v6  ;;  %v10256_v13 = vadd.f32 %v11048_v20, %v9385_v23  ;;  %v11049_v1 = vld [vmem:[#allocation50_spill] sm:$0xff] }
 0x335   : > { %v6589_v24 = vpop.eup %6588  ;;  %v4044_v56 = vmul.f32 %v6587_v39, %v10130_v59  ;;  %6608 = vpow2.f32 %v5097_v14  ;;  %v5422_v38 = vpack.c.bf16 %v3926_v2, %v3916_v32  ;;  %v10260_v29 = vadd.f32 %v11049_v1, %v9391_v52 }
 0x336   : > { %v6591_v37 = vpop.eup %6590  ;;  %6610 = vrcp.f32 %v3114_v54  ;;  %v2985_v44 = vadd.f32 1.0, %v6589_v24  ;;  %v5117_v39 = vmul.f32 -1.442695, %v10251_v3  ;;  %v5126_v46 = vmul.f32 -1.442695, %v10256_v13 }
 0x337   : > { %v6593_v0 = vpop.eup %6592  ;;  %6612 = vpow2.f32 %v5106_v35  ;;  %5423 = vmatprep.subr.bf16.mxu0 %v5422_v38  ;;  %v5382_v59 = vpack.c.bf16 %v4044_v56, %v4034_v16  ;;  %v4053_v32 = vmul.f32 %v6591_v37, %v10135_v8  ;;  %v4969_v35 = vmul.f32 -1.442695, %v10246_v51 }
 0x338   : > { %v6595_v14 = vpop.eup %6594  ;;  %6614 = vrcp.f32 %v2985_v44  ;;  %5425 = vmatpush1.bf16.msra.mxu0 %v5424_v26  ;;  %v11050_v26 = vld [vmem:[#allocation47_spill] sm:$0xff]  ;;  %v5127_v38 = vmul.f32 -1.442695, %v10260_v29  ;;  %v10283_v20 = vadd.f32 %v9800_v42, %v9690_v40 }
 0x339   : > { %v6597_v18 = vpop.eup %6596  ;;  %6616 = vpow2.f32 %v5107_v41  ;;  %5383 = vmatprep.subr.bf16.mxu1 %v5382_v59  ;;  %v10270_v56 = vadd.f32 %v11050_v26, %v9666_v49  ;;  %v4054_v41 = vmul.f32 %v6593_v0, %v10145_v53 }
 0x33a   : > { %v6599_v2 = vpop.eup %6598  ;;  %v3123_v16 = vadd.f32 1.0, %v6597_v18  ;;  %6618 = vpow2.f32 %v4968_v7  ;;  %5385 = vmatpush1.bf16.msra.mxu1 %v5384_v57 }
 0x33b   : > { %v10265_v54 = vpop.eup %6600  ;;  %v4063_v24 = vmul.f32 %v6599_v2, %v10157_v5  ;;  %6620 = vpow2.f32 %v5116_v50  ;;  %v10277_v5 = vadd.f32 %v9793_v43, %v9385_v23  ;;  %v4978_v53 = vmul.f32 -1.442695, %v10270_v56 }
 0x33c   : > { %v6603_v8 = vpop.eup %6602  ;;  %6622 = vrcp.f32 %v3123_v16 }
 0x33d   : > { %v6605_v37 = vpop.eup %6604  ;;  %v5388_v44 = vpack.c.bf16 %v4063_v24, %v4053_v32  ;;  %v2986_v57 = vadd.f32 1.0, %v6603_v8  ;;  %6624 = vpow2.f32 %v4969_v35  ;;  %v5136_v23 = vmul.f32 -1.442695, %v10277_v5  ;;  %v11051_v24 = vld [vmem:[#allocation17_spill] sm:$0xff] }
 0x33e   : > { %v6607_v7 = vpop.eup %6606  ;;  %v4064_v9 = vmul.f32 %v6605_v37, %v10170_v48  ;;  %6626 = vpow2.f32 %v5117_v39  ;;  %v3935_v35 = vmul.f32 %v6595_v14, %v10151_v33  ;;  %v4979_v39 = vmul.f32 -1.442695, %v10283_v20 }
 0x33f   : > { %v6609_v50 = vpop.eup %6608  ;;  %6628 = vrcp.f32 %v2986_v57  ;;  %v10291_v26 = vadd.f32 %v11051_v24, %v9391_v52  ;;  %v11055_v24 = vld [vmem:[#allocation6_spill] sm:$0xff] }
 0x340   : > { %v6611_v0 = vpop.eup %6610  ;;  %v3124_v59 = vadd.f32 1.0, %v6609_v50  ;;  %6630 = vpow2.f32 %v5126_v46  ;;  %v5386_v1 = vpack.c.bf16 %v4064_v9, %v4054_v41  ;;  %v10294_v41 = vmul.f32 %v6607_v7, %v10175_v62 }
 0x341   : > { %v6613_v18 = vpop.eup %6612  ;;  %6632 = vpow2.f32 %v5127_v38  ;;  %v5137_v62 = vmul.f32 -1.442695, %v10291_v26 }
 0x342   : > { %v6615_v43 = vpop.eup %6614  ;;  %6634 = vrcp.f32 %v3124_v59  ;;  %v3133_v48 = vadd.f32 1.0, %v6613_v18  ;;  %5387 = vmatprep.subr.bf16.mxu1 %v5386_v1  ;;  %v11053_v59 = vld [vmem:[#allocation62_spill] sm:$0xff]  ;;  %v3936_v18 = vmul.f32 %v10265_v54, %v10164_v15  ;;  %v10318_v15 = vadd.f32 %v11055_v24, %v9690_v40 }
 0x343   : > { %v6617_v32 = vpop.eup %6616  ;;  %v3945_v2 = vmul.f32 %v6615_v43, %v10187_v4  ;;  %6636 = vpow2.f32 %v4978_v53  ;;  %5389 = vmatpush1.bf16.msra.mxu1 %v5388_v44  ;;  %v11052_v44 = vld [vmem:[#allocation5_spill] sm:$0xff]  ;;  %v10305_v1 = vadd.f32 %v11053_v59, %v9690_v40  ;;  %v11054_v43 = vld [vmem:[#allocation58_spill] sm:$0xff] }
 0x344   : > { %v6619_v16 = vpop.eup %6618  ;;  %6638 = vrcp.f32 %v3133_v48  ;;  %v3134_v42 = vadd.f32 1.0, %v6617_v32  ;;  %v10299_v57 = vadd.f32 %v11052_v44, %v9666_v49  ;;  %v10312_v48 = vadd.f32 %v11054_v43, %v9666_v49 }
 0x345   : > { %v6621_v8 = vpop.eup %6620  ;;  %v5428_v46 = vpack.c.bf16 %v3945_v2, %v3935_v35  ;;  %v2995_v38 = vadd.f32 1.0, %v6619_v16  ;;  %6640 = vpow2.f32 %v5136_v23  ;;  %v4074_v35 = vmul.f32 %v6611_v0, %v10181_v25 }
 0x346   : > { %v6623_v33 = vpop.eup %6622  ;;  %6642 = vrcp.f32 %v3134_v42  ;;  %v3143_v4 = vadd.f32 1.0, %v6621_v8  ;;  %v4988_v16 = vmul.f32 -1.442695, %v10299_v57  ;;  %v10324_v25 = vadd.f32 %v9882_v36, %v9666_v49 }
 0x347   : > { %v6625_v14 = vpop.eup %6624  ;;  %v4083_v37 = vmul.f32 %v6623_v33, %v10198_v27  ;;  %6644 = vrcp.f32 %v2995_v38  ;;  %v4998_v33 = vmul.f32 -1.442695, %v10312_v48  ;;  %v4999_v36 = vmul.f32 -1.442695, %v10318_v15 }
 0x348   : > { %v6627_v52 = vpop.eup %6626  ;;  %6646 = vrcp.f32 %v3143_v4  ;;  %v2996_v9 = vadd.f32 1.0, %v6625_v14  ;;  %v10329_v14 = vadd.f32 %v9886_v45, %v9690_v40  ;;  %v10340_v45 = vadd.f32 %v9901_v19, %v9690_v40 }
 0x349   : > { %v6629_v7 = vpop.eup %6628  ;;  %v5392_v50 = vpack.c.bf16 %v4083_v37, %v10294_v41  ;;  %v3144_v53 = vadd.f32 1.0, %v6627_v52  ;;  %6648 = vpow2.f32 %v4979_v39  ;;  %v4989_v41 = vmul.f32 -1.442695, %v10305_v1 }
 0x34a   : > { %v6631_v27 = vpop.eup %6630  ;;  %v3946_v23 = vmul.f32 %v6629_v7, %v10202_v63  ;;  %6650 = vrcp.f32 %v2996_v9  ;;  %v10334_v52 = vadd.f32 %v9895_v22, %v9666_v49  ;;  %v5008_v7 = vmul.f32 -1.442695, %v10324_v25 }
 0x34b   : > { %v6633_v32 = vpop.eup %6632  ;;  %6652 = vrcp.f32 %v3144_v53  ;;  %v3153_v2 = vadd.f32 1.0, %v6631_v27  ;;  %v6863_v53 = vmov 1983009808  }
 0x34c   : > { %v6635_v42 = vpop.eup %6634  ;;  %v3154_v39 = vadd.f32 1.0, %v6633_v32  ;;  %6654 = vpow2.f32 %v5137_v62  ;;  %v5426_v63 = vpack.c.bf16 %v3946_v23, %v3936_v18  ;;  %v4510_v59 = vunpack.c.l.s4 %v6863_v53 }
 0x34d   : > { %v6637_v54 = vpop.eup %6636  ;;  %v4084_v8 = vmul.f32 %v6635_v42, %v10209_v28  ;;  %6656 = vrcp.f32 %v3153_v2  ;;  %v5009_v18 = vmul.f32 -1.442695, %v10329_v14  ;;  %v10355_v2 = vadd.f32 %v9913_v61, %v9690_v40 }
 0x34e   : > { %v6639_v0 = vpop.eup %6638  ;;  %6658 = vrcp.f32 %v3154_v39  ;;  %v3005_v38 = vadd.f32 1.0, %v6637_v54  ;;  %5427 = vmatprep.subr.bf16.mxu0 %v5426_v63  ;;  %v4511_v42 = vunpack.c.0.s8 %v4510_v59 }
 0x34f   : > { %v6641_v4 = vpop.eup %6640  ;;  %6660 = vpow2.f32 %v4988_v16  ;;  %v5390_v28 = vpack.c.bf16 %v4084_v8, %v4074_v35  ;;  %5429 = vmatpush1.bf16.msra.mxu0 %v5428_v46  ;;  %v4093_v62 = vmul.f32 %v6639_v0, %v10213_v30  ;;  %v10346_v30 = vadd.f32 %v9906_v31, %v9666_v49 }
 0x350   : > { %v6643_v37 = vpop.eup %6642  ;;  %6662 = vrcp.f32 %v3005_v38  ;;  %v3163_v44 = vadd.f32 1.0, %v6641_v4  ;;  %v5029_v61 = vmul.f32 -1.442695, %v10355_v2 }
 0x351   : > { %v6645_v9 = vpop.eup %6644  ;;  %6664 = vpow2.f32 %v4989_v41  ;;  %5391 = vmatprep.subr.bf16.mxu1 %v5390_v28  ;;  %v4094_v19 = vmul.f32 %v6643_v37, %v10227_v55  ;;  %v10360_v55 = vadd.f32 %v9925_v21, %v9666_v49  ;;  %v5028_v63 = vmul.f32 -1.442695, %v10346_v30 }
 0x352   : > { %v6647_v46 = vpop.eup %6646  ;;  %6666 = vrcp.f32 %v3163_v44  ;;  %5393 = vmatpush1.bf16.msra.mxu1 %v5392_v50  ;;  %v5018_v50 = vmul.f32 -1.442695, %v10334_v52  ;;  %v3955_v37 = vmul.f32 %v6645_v9, %v10232_v34  ;;  %v10382_v34 = vadd.f32 %v9939_v10, %v9666_v49 }
 0x353   : > { %v6649_v27 = vpop.eup %6648  ;;  %v4103_v22 = vmul.f32 %v6647_v46, %v10236_v6  ;;  %6668 = vpow2.f32 %v4998_v33  ;;  %v5019_v6 = vmul.f32 -1.442695, %v10340_v45  ;;  %v5038_v38 = vmul.f32 -1.442695, %v10360_v55  ;;  %v11056_v33 = vld [vmem:[#allocation4_spill] sm:$0xff] }
 0x354   : > { %v10348_v23 = vpop.eup %6650  ;;  %v3006_v43 = vadd.f32 1.0, %v6649_v27  ;;  %6670 = vpow2.f32 %v4999_v36  ;;  %v10370_v4 = vsub.s32 %v4511_v42, %v11056_v33 }
 0x355   : > { %v6653_v32 = vpop.eup %6652  ;;  %v5396_v35 = vpack.c.bf16 %v4103_v22, %v4093_v62  ;;  %6672 = vpow2.f32 %v5008_v7  ;;  %v3956_v60 = vmul.f32 %v10348_v23, %v10246_v51 }
 0x356   : > { %v6655_v16 = vpop.eup %6654  ;;  %v4104_v31 = vmul.f32 %v6653_v32, %v10251_v3  ;;  %6674 = vrcp.f32 %v3006_v43  ;;  %v10366_v3 = vadd.f32 %v9928_v11, %v9690_v40  ;;  %v4515_v27 = vrot.slane %v4507_v58, %v10370_v4 }
 0x357   : > { %v6657_v39 = vpop.eup %6656  ;;  %v3164_v24 = vadd.f32 1.0, %v6655_v16  ;;  %6676 = vpow2.f32 %v5009_v18  ;;  %v10393_v32 = vadd.f32 %v9945_v17, %v9690_v40  ;;  %v4127_v16 = vld [vmem:[#allocation2] sm:$0xff] }
 0x358   : > { %v6659_v54 = vpop.eup %6658  ;;  %6678 = vpow2.f32 %v5018_v50  ;;  %v5394_v8 = vpack.c.bf16 %v4104_v31, %v4094_v19  ;;  %v10374_v44 = vmul.f32 %v6657_v39, %v10256_v13  ;;  %v5039_v43 = vmul.f32 -1.442695, %v10366_v3 }
 0x359   : > { %v6661_v41 = vpop.eup %6660  ;;  %6680 = vrcp.f32 %v3164_v24  ;;  %v4114_v42 = vmul.f32 %v6659_v54, %v10260_v29  ;;  %v5049_v29 = vmul.f32 -1.442695, %v10393_v32  ;;  %v11058_v54 = vld [vmem:[#allocation24_spill] sm:$0xff] }
 0x35a   : > { %v6663_v0 = vpop.eup %6662  ;;  %v3015_v21 = vadd.f32 1.0, %v6661_v41  ;;  %6682 = vpow2.f32 %v5019_v6  ;;  %5395 = vmatprep.subr.bf16.mxu1 %v5394_v8  ;;  %v5048_v6 = vmul.f32 -1.442695, %v10382_v34  ;;  %v11057_v8 = vld [vmem:[#allocation21_spill] sm:$0xff] }
 0x35b   : > { %v6665_v28 = vpop.eup %6664  ;;  %v3965_v36 = vmul.f32 %v6663_v0, %v10270_v56  ;;  %6684 = vpow2.f32 %v5028_v63  ;;  %5397 = vmatpush1.bf16.msra.mxu1 %v5396_v35  ;;  %v10403_v41 = vadd.f32 %v11057_v8, %v9666_v49 }
 0x35c   : > { %v6667_v11 = vpop.eup %6666  ;;  %6686 = vrcp.f32 %v3015_v21  ;;  %v3016_v62 = vadd.f32 1.0, %v6665_v28  ;;  %v4279_v7 = vpop.f32.mrb[146].mxu1 }
 0x35d   : > { %v6669_v46 = vpop.eup %6668  ;;  %v5432_v53 = vpack.c.bf16 %v3965_v36, %v3955_v37  ;;  %v10378_v59 = vmul.f32 %v6667_v11, %v10277_v5  ;;  %6688 = vpow2.f32 %v5029_v61  ;;  %v4281_v13 = vpop.f32.mrb[147].mxu1  ;;  %v5058_v11 = vmul.f32 -1.442695, %v10403_v41 }
 0x35e   : > { %v6671_v9 = vpop.eup %6670  ;;  %6690 = vrcp.f32 %v3016_v62  ;;  %v3025_v56 = vadd.f32 1.0, %v6669_v46  ;;  %v4508_v22 = vcombine.low %v4279_v7, %v4281_v13  ;;  %v11060_v62 = vld [vmem:[#allocation42_spill] sm:$0xff] }
 0x35f   : > { %v6673_v18 = vpop.eup %6672  ;;  %v5400_v5 = vpack.c.bf16 %v10378_v59, %v10374_v44  ;;  %v3026_v19 = vadd.f32 1.0, %v6671_v9  ;;  %6692 = vpow2.f32 %v5038_v38  ;;  %v10409_v38 = vadd.f32 %v11058_v54, %v9690_v40  ;;  %v11059_v44 = vld [vmem:[#allocation45_spill] sm:$0xff]  ;;  %v11061_v9 = vld [vmem:[#allocation8_spill] sm:$0xff] }
 0x360   : > { %v6675_v10 = vpop.eup %6674  ;;  %6694 = vrcp.f32 %v3025_v56  ;;  %v3035_v50 = vadd.f32 1.0, %v6673_v18  ;;  %v4522_v35 = vrot.slane %v4508_v22, %v10370_v4  ;;  %v10418_v7 = vadd.f32 %v11060_v62, %v9690_v40 }
 0x361   : > { %v6677_v47 = vpop.eup %6676  ;;  %v3966_v58 = vmul.f32 %v6675_v10, %v10283_v20  ;;  %6696 = vrcp.f32 %v3026_v19  ;;  %v10423_v56 = vadd.f32 %v11061_v9, %v9666_v49  ;;  %v11062_v19 = vld [vmem:[#allocation70_spill] sm:$0xff] }
 0x362   : > { %v6679_v31 = vpop.eup %6678  ;;  %6698 = vrcp.f32 %v3035_v50  ;;  %v3036_v39 = vadd.f32 1.0, %v6677_v47  ;;  %v4523_v24 = vcombine.low %v4515_v27, %v4522_v35 }
 0x363   : > { %v6681_v17 = vpop.eup %6680  ;;  %v3045_v63 = vadd.f32 1.0, %v6679_v31  ;;  %6700 = vpow2.f32 %v5039_v43  ;;  %v5430_v51 = vpack.c.bf16 %v3966_v58, %v3956_v60  ;;  %v10428_v43 = vadd.f32 %v11062_v19, %v9690_v40 }
 0x364   : > { %v6683_v23 = vpop.eup %6682  ;;  %v4124_v20 = vmul.f32 %v6681_v17, %v10291_v26  ;;  %6702 = vrcp.f32 %v3036_v39  ;;  %v4552_v61 = vadd.f32 %v4523_v24, %v4127_v16  ;;  %v10413_v26 = vadd.f32 %v11059_v44, %v9666_v49 }
 0x365   : > { %v6685_v0 = vpop.eup %6684  ;;  %6704 = vrcp.f32 %v3045_v63  ;;  %v3046_v21 = vadd.f32 1.0, %v6683_v23  ;;  %5431 = vmatprep.subr.bf16.mxu0 %v5430_v51  ;;  %v5079_v17 = vmul.f32 -1.442695, %v10428_v43  ;;  %v11065_v51 = vld [vmem:[#allocation66_spill] sm:$0xff] }
 0x366   : > { %v6687_v33 = vpop.eup %6686  ;;  %v3055_v28 = vadd.f32 1.0, %v6685_v0  ;;  %6706 = vpow2.f32 %v5048_v6  ;;  %v5398_v37 = vpack.c.bf16 %v4124_v20, %v4114_v42  ;;  %5433 = vmatpush1.bf16.msra.mxu0 %v5432_v53  ;;  %4555 = vst [vmem:[#allocation2] sm:$0xff] %v4552_v61  ;;  %v5059_v53 = vmul.f32 -1.442695, %v10409_v38 }
 0x367   : > { %v6689_v36 = vpop.eup %6688  ;;  %6708 = vrcp.f32 %v3046_v21  ;;  %v5068_v18 = vmul.f32 -1.442695, %v10413_v26  ;;  %v3975_v50 = vmul.f32 %v6687_v33, %v10299_v57  ;;  %v10438_v6 = vld.sshfl [vmem:[%s10563_s3] sm:$0x33 pattern:$0x76325410]  ;;  %v10453_v23 = vadd.f32 %v11065_v51, %v9666_v49 }
 0x368   : > { %v6691_v46 = vpop.eup %6690  ;;  %6710 = vrcp.f32 %v3055_v28  ;;  %v3056_v59 = vadd.f32 1.0, %v6689_v36  ;;  %5399 = vmatprep.subr.bf16.mxu1 %v5398_v37  ;;  %v11063_v57 = vld [vmem:[#allocation48_spill] sm:$0xff]  ;;  %v5078_v42 = vmul.f32 -1.442695, %v10423_v56  ;;  %v11066_v28 = vld [vmem:[#allocation7_spill] sm:$0xff] }
 0x369   : > { %v6693_v13 = vpop.eup %6692  ;;  %6712 = vpow2.f32 %v5049_v29  ;;  %5401 = vmatpush1.bf16.msra.mxu1 %v5400_v5  ;;  %v5069_v5 = vmul.f32 -1.442695, %v10418_v7  ;;  %v3976_v60 = vmul.f32 %v6691_v46, %v10305_v1  ;;  %v10443_v16 = vadd.f32 %v11063_v57, %v9666_v49  ;;  %v11064_v1 = vld [vmem:[#allocation49_spill] sm:$0xff] }
 0x36a   : > { %v6695_v27 = vpop.eup %6694  ;;  %6714 = vrcp.f32 %v3056_v59  ;;  %v3065_v22 = vadd.f32 1.0, %v6693_v13  ;;  %v10461_v37 = vadd.f32 %v11066_v28, %v9690_v40  ;;  %v5098_v62 = vmul.f32 -1.442695, %v10453_v23 }
 0x36b   : > { %v6697_v10 = vpop.eup %6696  ;;  %v3985_v35 = vmul.f32 %v6695_v27, %v10312_v48  ;;  %6716 = vpow2.f32 %v5058_v11  ;;  %v5088_v21 = vmul.f32 -1.442695, %v10443_v16  ;;  %v11067_v27 = vld [vmem:[#allocation18_spill] sm:$0xff] }
 0x36c   : > { %v6699_v47 = vpop.eup %6698  ;;  %v3986_v58 = vmul.f32 %v6697_v10, %v10318_v15  ;;  %6718 = vrcp.f32 %v3065_v22  ;;  %4420 = vmatmul.mubr.f32.vlgmr.msra.gmra.mrb[148].mxu1 %v10438_v6  ;;  %v10448_v15 = vadd.f32 %v11064_v1, %v9690_v40  ;;  %v5099_v9 = vmul.f32 -1.442695, %v10461_v37 }
 0x36d   : > { %v6701_v48 = vpop.eup %6700  ;;  %v5436_v31 = vpack.c.bf16 %v3985_v35, %v3975_v50  ;;  %6720 = vpow2.f32 %v5059_v53  ;;  %v3995_v61 = vmul.f32 %v6699_v47, %v10324_v25  ;;  %v10469_v22 = vadd.f32 %v11067_v27, %v9666_v49 }
 0x36e   : > { %v6703_v39 = vpop.eup %6702  ;;  %v3066_v24 = vadd.f32 1.0, %v6701_v48  ;;  %6722 = vpow2.f32 %v5068_v18  ;;  %v5434_v63 = vpack.c.bf16 %v3986_v58, %v3976_v60  ;;  %v5089_v33 = vmul.f32 -1.442695, %v10448_v15 }
 0x36f   : > { %v6705_v8 = vpop.eup %6704  ;;  %6724 = vpow2.f32 %v5069_v5  ;;  %v3996_v36 = vmul.f32 %v6703_v39, %v10329_v14  ;;  %v11068_v5 = vld [vmem:[#allocation64_spill] sm:$0xff]  ;;  %v5108_v48 = vmul.f32 -1.442695, %v10469_v22 }
 0x370   : > { %v6707_v20 = vpop.eup %6706  ;;  %v4005_v0 = vmul.f32 %v6705_v8, %v10334_v52  ;;  %6726 = vrcp.f32 %v3066_v24  ;;  %5435 = vmatprep.subr.bf16.mxu0 %v5434_v63  ;;  %v10475_v47 = vadd.f32 %v11068_v5, %v9690_v40  ;;  %v11069_v39 = vld [vmem:[#allocation12_spill] sm:$0xff] }
 0x371   : > { %v6709_v29 = vpop.eup %6708  ;;  %v3075_v54 = vadd.f32 1.0, %v6707_v20  ;;  %6728 = vpow2.f32 %v5078_v42  ;;  %5437 = vmatpush1.bf16.msra.mxu0 %v5436_v31  ;;  %v10482_v24 = vadd.f32 %v11069_v39, %v9666_v49 }
 0x372   : > { %v6711_v44 = vpop.eup %6710  ;;  %v5440_v25 = vpack.c.bf16 %v4005_v0, %v3995_v61  ;;  %v4006_v52 = vmul.f32 %v6709_v29, %v10340_v45  ;;  %6730 = vpow2.f32 %v5079_v17  ;;  %v5109_v8 = vmul.f32 -1.442695, %v10475_v47  ;;  %v11070_v61 = vld [vmem:[#allocation65_spill] sm:$0xff] }
 0x373   : > { %v6713_v11 = vpop.eup %6712  ;;  %6732 = vrcp.f32 %v3075_v54  ;;  %v4015_v19 = vmul.f32 %v6711_v44, %v10346_v30  ;;  %v10487_v0 = vadd.f32 %v11070_v61, %v9690_v40 }
 0x374   : > { %v6715_v46 = vpop.eup %6714  ;;  %v3076_v59 = vadd.f32 1.0, %v6713_v11  ;;  %6734 = vpow2.f32 %v5088_v21  ;;  %v5438_v13 = vpack.c.bf16 %v4006_v52, %v3996_v36  ;;  %v11071_v36 = vld [vmem:[#allocation51_spill] sm:$0xff]  ;;  %v11072_v52 = vld [vmem:[#allocation52_spill] sm:$0xff] }
 0x375   : > { %v6717_v53 = vpop.eup %6716  ;;  %6736 = vpow2.f32 %v5089_v33  ;;  %v5118_v33 = vmul.f32 -1.442695, %v10482_v24  ;;  %v10500_v11 = vadd.f32 %v11072_v52, %v9666_v49 }
 0x376   : > { %v6719_v14 = vpop.eup %6718  ;;  %6738 = vrcp.f32 %v3076_v59  ;;  %v3085_v45 = vadd.f32 1.0, %v6717_v53  ;;  %5439 = vmatprep.subr.bf16.mxu0 %v5438_v13 }
 0x377   : > { %v6721_v18 = vpop.eup %6720  ;;  %v4025_v10 = vmul.f32 %v6719_v14, %v10360_v55  ;;  %6740 = vpow2.f32 %v5098_v62  ;;  %5441 = vmatpush1.bf16.msra.mxu0 %v5440_v25  ;;  %v4016_v55 = vmul.f32 %v6715_v46, %v10355_v2  ;;  %v10496_v25 = vadd.f32 %v11071_v36, %v9690_v40  ;;  %v11073_v14 = vld [vmem:[#allocation53_spill] sm:$0xff] }
 0x378   : > { %v6723_v50 = vpop.eup %6722  ;;  %6742 = vrcp.f32 %v3085_v45  ;;  %v3086_v35 = vadd.f32 1.0, %v6721_v18  ;;  %v5119_v62 = vmul.f32 -1.442695, %v10487_v0  ;;  %v10508_v45 = vadd.f32 %v11073_v14, %v9690_v40 }
 0x379   : > { %v6725_v60 = vpop.eup %6724  ;;  %v5444_v58 = vpack.c.bf16 %v4025_v10, %v4015_v19  ;;  %v3095_v57 = vadd.f32 1.0, %v6723_v50  ;;  %6744 = vpow2.f32 %v5099_v9  ;;  %v5129_v19 = vmul.f32 -1.442695, %v10496_v25 }
 0x37a   : > { %v6727_v31 = vpop.eup %6726  ;;  %6746 = vrcp.f32 %v3086_v35  ;;  %v3096_v30 = vadd.f32 1.0, %v6725_v60  ;;  %v5138_v10 = vmul.f32 -1.442695, %v10500_v11  ;;  %v5139_v40 = vmul.f32 -1.442695, %v10508_v45 }
 0x37b   : > { %v6729_v42 = vpop.eup %6728  ;;  %v4026_v1 = vmul.f32 %v6727_v31, %v10366_v3  ;;  %6748 = vrcp.f32 %v3095_v57  ;;  %v10491_v3 = vadd.f32 %v10075_v12, %v9666_v49 }
 0x37c   : > { %v6731_v17 = vpop.eup %6730  ;;  %6750 = vrcp.f32 %v3096_v30  ;;  %v3105_v63 = vadd.f32 1.0, %v6729_v42 }
 0x37d   : > { %v6733_v51 = vpop.eup %6732  ;;  %v3106_v20 = vadd.f32 1.0, %v6731_v17  ;;  %6752 = vpow2.f32 %v5108_v48  ;;  %v5442_v2 = vpack.c.bf16 %v4026_v1, %v4016_v55  ;;  %v5128_v13 = vmul.f32 -1.442695, %v10491_v3 }
 0x37e   : > { %v6735_v21 = vpop.eup %6734  ;;  %6754 = vrcp.f32 %v3105_v63  ;;  %v4035_v9 = vmul.f32 %v6733_v51, %v10382_v34 }
 0x37f   : > { %v6737_v29 = vpop.eup %6736  ;;  %6756 = vrcp.f32 %v3106_v20  ;;  %v3115_v54 = vadd.f32 1.0, %v6735_v21  ;;  %5443 = vmatprep.subr.bf16.mxu0 %v5442_v2 }
 0x380   : > { %v6739_v28 = vpop.eup %6738  ;;  %v3116_v44 = vadd.f32 1.0, %v6737_v29  ;;  %6758 = vpow2.f32 %v5109_v8  ;;  %5445 = vmatpush1.bf16.msra.mxu0 %v5444_v58 }
 0x381   : > { %v6741_v12 = vpop.eup %6740  ;;  %6760 = vrcp.f32 %v3115_v54  ;;  %v4036_v35 = vmul.f32 %v6739_v28, %v10393_v32 }
 0x382   : > { %v6743_v46 = vpop.eup %6742  ;;  %6762 = vrcp.f32 %v3116_v44  ;;  %v3125_v59 = vadd.f32 1.0, %v6741_v12 }
 0x383   : > { %v6745_v53 = vpop.eup %6744  ;;  %v4045_v27 = vmul.f32 %v6743_v46, %v10403_v41  ;;  %6764 = vpow2.f32 %v5118_v33 }
 0x384   : > { %v6747_v49 = vpop.eup %6746  ;;  %6766 = vrcp.f32 %v3125_v59  ;;  %v3126_v18 = vadd.f32 1.0, %v6745_v53 }
 0x385   : > { %v6749_v50 = vpop.eup %6748  ;;  %v5448_v5 = vpack.c.bf16 %v4045_v27, %v4035_v9  ;;  %v4046_v34 = vmul.f32 %v6747_v49, %v10409_v38  ;;  %6768 = vpow2.f32 %v5119_v62 }
 0x386   : > { %v6751_v41 = vpop.eup %6750  ;;  %6770 = vrcp.f32 %v3126_v18  ;;  %v4055_v31 = vmul.f32 %v6749_v50, %v10413_v26 }
 0x387   : > { %v6753_v60 = vpop.eup %6752  ;;  %6772 = vpow2.f32 %v5128_v13  ;;  %v5446_v58 = vpack.c.bf16 %v4046_v34, %v4036_v35  ;;  %v4056_v38 = vmul.f32 %v6751_v41, %v10418_v7 }
 0x388   : > { %v6755_v57 = vpop.eup %6754  ;;  %6774 = vpow2.f32 %v5129_v19  ;;  %v3135_v55 = vadd.f32 1.0, %v6753_v60 }
 0x389   : > { %v6757_v48 = vpop.eup %6756  ;;  %v4065_v30 = vmul.f32 %v6755_v57, %v10423_v56  ;;  %6776 = vpow2.f32 %v5138_v10  ;;  %5447 = vmatprep.subr.bf16.mxu0 %v5446_v58 }
 0x38a   : > { %v6759_v32 = vpop.eup %6758  ;;  %v4066_v42 = vmul.f32 %v6757_v48, %v10428_v43  ;;  %5449 = vmatpush1.bf16.msra.mxu0 %v5448_v5  ;;  %6778 = vpow2.f32 %v5139_v40  ;;  %v4128_v48 = vld [vmem:[#allocation2 + $0x8] sm:$0xff] }
 0x38b   : > { %v6761_v1 = vpop.eup %6760  ;;  %v5452_v39 = vpack.c.bf16 %v4065_v30, %v4055_v31  ;;  %v3136_v17 = vadd.f32 1.0, %v6759_v32  ;;  %6780 = vrcp.f32 %v3135_v55  ;;  %v4562_v55 = vld [vmem:[#allocation2] sm:$0xff] (!%p5141_p10) }
 0x38c   : > { %v6763_v63 = vpop.eup %6762  ;;  %v5450_v8 = vpack.c.bf16 %v4066_v42, %v4056_v38  ;;  %v4075_v61 = vmul.f32 %v6761_v1, %v10443_v16  ;;  %v4129_v38 = vld [vmem:[#allocation2 + $0x10] sm:$0xf] }
 0x38d   : > { %v6765_v51 = vpop.eup %6764  ;;  %6782 = vrcp.f32 %v3136_v17  ;;  %v4076_v29 = vmul.f32 %v6763_v63, %v10448_v15  ;;  %v4565_v17 = vmul.f32 (!%p5141_p10), 0.00390625, %v4562_v55 }
 0x38e   : > { %v6767_v20 = vpop.eup %6766  ;;  %v3145_v26 = vadd.f32 1.0, %v6765_v51  ;;  %5451 = vmatprep.subr.bf16.mxu0 %v5450_v8 }
 0x38f   : > { %v6769_v56 = vpop.eup %6768  ;;  %v4085_v7 = vmul.f32 %v6767_v20, %v10453_v23  ;;  %5453 = vmatpush1.bf16.msra.mxu0 %v5452_v39  ;;  %4568 = vst [vmem:[%s10564_s4] sm:$0xff] (!%p5141_p10), %v4565_v17 }
 0x390   : > { %v6771_v43 = vpop.eup %6770  ;;  %6784 = vrcp.f32 %v3145_v26  ;;  %v3146_v2 = vadd.f32 1.0, %v6769_v56 }
 0x391   : > { %v6773_v21 = vpop.eup %6772  ;;  %v5456_v54 = vpack.c.bf16 %v4085_v7, %v4075_v61  ;;  %v4086_v33 = vmul.f32 %v6771_v43, %v10461_v37 }
 0x392   : > { %v6775_v28 = vpop.eup %6774  ;;  %6786 = vrcp.f32 %v3146_v2  ;;  %v3155_v44 = vadd.f32 1.0, %v6773_v21 }
 0x393   : > { %v6777_v36 = vpop.eup %6776  ;;  %v3156_v52 = vadd.f32 1.0, %v6775_v28  ;;  %v5454_v12 = vpack.c.bf16 %v4086_v33, %v4076_v29 }
 0x394   : > { %6788 = vrcp.f32 %v3155_v44  ;;  %v3165_v16 = vadd.f32 1.0, %v6777_v36  ;;  %v6779_v23 = vpop.eup %6778 }
 0x395   : > { %6790 = vrcp.f32 %v3156_v52  ;;  %5455 = vmatprep.subr.bf16.mxu0 %v5454_v12  ;;  %v3166_v62 = vadd.f32 1.0, %v6779_v23  ;;  %v6781_v46 = vpop.eup %6780 }
 0x396   : > { %6792 = vrcp.f32 %v3165_v16  ;;  %5457 = vmatpush1.bf16.msra.mxu0 %v5456_v54  ;;  %v4095_v37 = vmul.f32 %v6781_v46, %v10469_v22 }
 0x397   : > { %6794 = vrcp.f32 %v3166_v62  ;;  %v6783_v15 = vpop.eup %6782 }
 0x398   : > { %v4096_v27 = vmul.f32 %v6783_v15, %v10475_v47 }
 0x39a   : > { %v6785_v59 = vpop.eup %6784 }
 0x39b   : > { %v4105_v13 = vmul.f32 %v6785_v59, %v10482_v24 }
 0x39c   : > { %v6787_v53 = vpop.eup %6786  ;;  %v4350_v9 = vpop.f32.mrb[176].mxu0 }
 0x39d   : > { %v5460_v14 = vpack.c.bf16 %v4105_v13, %v4095_v37  ;;  %v4106_v49 = vmul.f32 %v6787_v53, %v10487_v0  ;;  %v4352_v0 = vpop.f32.mrb[177].mxu0 }
 0x39e   : > { %v6789_v18 = vpop.eup %6788  ;;  %v4524_v60 = vcombine.low %v4350_v9, %v4352_v0 }
 0x39f   : > { %v6791_v19 = vpop.eup %6790  ;;  %v5458_v10 = vpack.c.bf16 %v4106_v49, %v4096_v27  ;;  %v4115_v35 = vmul.f32 %v6789_v18, %v10491_v3 }
 0x3a0   : > { %v6793_v50 = vpop.eup %6792  ;;  %v4116_v22 = vmul.f32 %v6791_v19, %v10496_v25  ;;  %v4532_v3 = vrot.slane %v4524_v60, %v10370_v4 }
 0x3a1   : > { %v4125_v5 = vmul.f32 %v6793_v50, %v10500_v11  ;;  %5459 = vmatprep.subr.bf16.mxu0 %v5458_v10  ;;  %v6795_v34 = vpop.eup %6794 }
 0x3a2   : > { %5461 = vmatpush1.bf16.msra.mxu0 %v5460_v14  ;;  %v4126_v41 = vmul.f32 %v6795_v34, %v10508_v45 }
 0x3a3   : > { %v5464_v24 = vpack.c.bf16 %v4125_v5, %v4115_v35 }
 0x3a4   : > { %v5462_v47 = vpack.c.bf16 %v4126_v41, %v4116_v22 }
 0x3a6   : > { %5463 = vmatprep.subr.bf16.mxu0 %v5462_v47 }
 0x3a7   : > { %5465 = vmatpush1.bf16.msra.mxu0 %v5464_v24 }
 0x3aa   : > { %4491 = vmatmul.mubr.f32.vlgmr.msra.gmra.mrb[178].mxu0 %v10438_v6 }
 0x43f   : > { %v4421_v40 = vpop.f32.mrb[148].mxu1 }
 0x440   : > { %v4423_v58 = vpop.f32.mrb[149].mxu1 }
 0x441   : > { %v4525_v11 = vcombine.low %v4421_v40, %v4423_v58 }
 0x443   : > { %v4539_v57 = vrot.slane %v4525_v11, %v10370_v4 }
 0x445   : > { %v4540_v31 = vcombine.low %v4532_v3, %v4539_v57 }
 0x447   : > { %v4553_v25 = vadd.f32 %v4540_v31, %v4128_v48 }
 0x449   : > { %4556 = vst [vmem:[#allocation2 + $0x8] sm:$0xff] %v4553_v25 }
 0x450   : > { %v4563_v1 = vld [vmem:[#allocation2 + $0x8] sm:$0xff] (!%p5141_p10) }
 0x451   : > { %v4566_v63 = vmul.f32 (!%p5141_p10), 0.00390625, %v4563_v1 }
 0x453   : > { %4569 = vst [vmem:[%s10564_s4 + $0x8] sm:$0xff] (!%p5141_p10), %v4566_v63 }
 0x47d   : > { %v4492_v30 = vpop.f32.mrb[178].mxu0 }
 0x47e   : > { %v4494_v45 = vpop.f32.mrb[179].mxu0 }
 0x47f   : > { %v4541_v32 = vcombine.low %v4492_v30, %v4494_v45  ;;  %4561 = sbr.rel (%p5141_p10) target bundleno = 1168 (0x490), region = 82 }
 0x481   : > { %v4548_v42 = vrot.slane %v4541_v32, %v10370_v4 }
 0x483   : > { %v4554_v6 = vadd.f32 %v4548_v42, %v4129_v38 }
 0x485   : > { %4557 = vst [vmem:[#allocation2 + $0x10] sm:$0xf] %v4554_v6 }
 0x48c   : > { %v4564_v39 = vld [vmem:[#allocation2 + $0x10] sm:$0xf] }
 0x48d   : > { %v4567_v8 = vmul.f32 0.00390625, %v4564_v39 }
 0x48f   : > { %4570 = vst [vmem:[%s10564_s4 + $0x10] sm:$0xf] %v4567_v8 }
 0x490 PF: > { %s14_s19 = sadd.s32 1, %s6859_s19   ;;  %s11074_s15 = smov %s6847_s16 }
 0x491   : > { %p11_p11 = scmp.ge.s32.totalorder %s14_s19, 4   ;;  %s11075_s16 = smov %s6924_s23 }
 0x492   : > { %s11076_s17 = smov %s6855_s18  ;;  %s11077_s18 = smov %s11079_s20 }
 0x493   :  { %13 = sbr.rel (!%p11_p11) target bundleno = 3 (0x3), region = 117 }

</bundles_post_ra>
